<compile_context>
chip_gen: v6e
topology: v6e:2x2x1
jax: 0.10.0
libtpu: 0.0.40
codegen_flags: <defaults>
</compile_context>

<pallas_src>
import math

import jax
import jax.numpy as jnp
from jax.experimental import pallas as pl
from jax.experimental.pallas import tpu as pltpu

# ---- model dimensions (small, consistent with the module's forward) ----
B, S, D, H, DFF, V, L = 4, 8, 32, 4, 64, 26, 2
DH = D // H
BB = 2                      # batch elements per grid block
NB = B // BB                # grid size: 2 "parallel" steps -> both v7x TensorCores are busy
VP = 128                    # generator output padded to a full 128-lane width (unmasked stores)
VOCAB_IN = 29               # 26 letters + pad + mask-token + unk
EPS = 1e-6
NEG = -1e9


def _layer_norm(t, a, b):
    # Matches the module's LayerNorm exactly: torch.std is unbiased (N-1), denom = (std + eps).
    mean = jnp.mean(t, axis=-1, keepdims=True)
    c = t - mean
    var = jnp.sum(c * c, axis=-1, keepdims=True) * (1.0 / (D - 1))
    inv = pl.reciprocal(jnp.sqrt(var) + EPS, approx=True)   # EUP slot, off the VALU path
    return a * c * inv + b


def _softmax(s):
    m = jnp.max(s, axis=-1, keepdims=True)
    e = jnp.exp(s - m)
    return e * pl.reciprocal(jnp.sum(e, axis=-1, keepdims=True), approx=True)


# ---------------------------- Pallas kernel ----------------------------
def bert_kernel(x_ref, kbias_ref, cand_ref,
                wqkv_ref, bqkv_ref, wo_ref, vec_ref, w1_ref, b1_ref, w2_ref,
                lnf_ref, wg_ref, bg_ref,
                out_ref, attn_ref):
    bf16 = jnp.bfloat16
    x = x_ref[...].reshape(BB * S, D)                       # (16, 32) f32 residual stream
    kbias = kbias_ref[...]                                  # (BB, 1, S) additive key-mask bias

    for l in range(L):                                      # static unroll over encoder layers (L=2)
        vec = vec_ref[l]                                    # (6, D): ln1a, ln1b, bo, ln2a, ln2b, b2
        ln1a, ln1b, bo = vec[0:1], vec[1:2], vec[2:3]
        ln2a, ln2b, b2 = vec[3:4], vec[4:5], vec[5:6]

        # --- sublayer 1: (pre-norm) multi-head self-attention + residual ---
        xn = _layer_norm(x, ln1a, ln1b)
        # fused Q/K/V projection: one (16,32)x(32,96) MXU matmul, bf16 operands, f32 accumulation.
        # 1/sqrt(d_head) is already folded into the Q columns of wqkv/bqkv by the wrapper.
        qkv = (jnp.dot(xn.astype(bf16), wqkv_ref[l], preferred_element_type=jnp.float32)
               + bqkv_ref[l]).astype(bf16)                  # (16, 96)
        for h in range(H):                                  # heads batched over the BB samples
            qh = qkv[:, h * DH:(h + 1) * DH].reshape(BB, S, DH)
            kh = qkv[:, D + h * DH:D + (h + 1) * DH].reshape(BB, S, DH)
            vh = qkv[:, 2 * D + h * DH:2 * D + (h + 1) * DH].reshape(BB, S, DH)
            sc = jnp.einsum("bqd,bkd->bqk", qh, kh,
                            preferred_element_type=jnp.float32) + kbias            # (BB, S, S)
            p = _softmax(sc)
            oh = jnp.einsum("bqk,bkd->bqd", p.astype(bf16), vh,
                            preferred_element_type=jnp.float32)                    # (BB, S, DH)
            attn_ref[:, :, h * DH:(h + 1) * DH] = oh        # slice write, no lane concatenate
        attn = attn_ref[...].reshape(BB * S, D).astype(bf16)
        x = x + jnp.dot(attn, wo_ref[l], preferred_element_type=jnp.float32) + bo

        # --- sublayer 2: (pre-norm) position-wise feed-forward + residual ---
        xn2 = _layer_norm(x, ln2a, ln2b)
        hdn = jnp.maximum(
            jnp.dot(xn2.astype(bf16), w1_ref[l], preferred_element_type=jnp.float32)
            + b1_ref[l], 0.0)
        x = x + jnp.dot(hdn.astype(bf16), w2_ref[l], preferred_element_type=jnp.float32) + b2

    # --- Bert.layer_norm (final LayerNorm) ---
    x = _layer_norm(x, lnf_ref[0:1], lnf_ref[1:2])

    # --- generator: lane-dense (128-wide) linear -> mask used letters -> log_softmax ---
    logits = (jnp.dot(x.astype(bf16), wg_ref[...], preferred_element_type=jnp.float32)
              + bg_ref[...]).reshape(BB, S, VP)
    logits = jnp.where(cand_ref[...] > 0.5, NEG, logits)    # padded columns are pre-masked (==1)
    m = jnp.max(logits, axis=-1, keepdims=True)
    lse = m + jnp.log(jnp.sum(jnp.exp(logits - m), axis=-1, keepdims=True))
    out_ref[...] = (logits - lse).astype(out_ref.dtype)


def _const_map(ndim):
    return lambda i: (0,) * ndim


def bert_pallas(params, x_emb, mask, cand):
    bf16 = jnp.bfloat16
    scale = 1.0 / math.sqrt(DH)
    # --- parameter packing: fused (scaled-Q)/K/V, stacked per-layer vectors, lane-padded generator ---
    wqkv = jnp.concatenate([params["wq"] * scale, params["wk"], params["wv"]],
                           axis=-1).astype(bf16)                                              # (L,D,3D)
    bqkv = jnp.concatenate([params["bq"] * scale, params["bk"], params["bv"]], axis=-1)       # (L,1,3D)
    vec = jnp.concatenate([params["ln1a"], params["ln1b"], params["bo"],
                           params["ln2a"], params["ln2b"], params["b2"]], axis=1)             # (L,6,D)
    lnf = jnp.concatenate([params["lnfa"], params["lnfb"]], axis=0)                           # (2,D)
    wg = jnp.pad(params["wg"], ((0, 0), (0, VP - V))).astype(bf16)                            # (D,128)
    bg = jnp.pad(params["bg"], ((0, 0), (0, VP - V)))                                         # (1,128)

    weights = [wqkv, bqkv, params["wo"].astype(bf16), vec,
               params["w1"].astype(bf16), params["b1"], params["w2"].astype(bf16),
               lnf, wg, bg]

    # additive key-mask bias precomputed once in the wrapper (one vadd per score tile in-kernel)
    kbias = jnp.where(mask == 0.0, jnp.float32(NEG), jnp.float32(0.0)).reshape(B, 1, S)
    # pad candidates with 1.0 ("already used") so the padded logit columns are masked out too
    cand_p = jnp.pad(cand, ((0, 0), (0, VP - V)), constant_values=1.0).reshape(B, 1, VP)

    in_specs = [
        pl.BlockSpec((BB, S, D), lambda i: (i, 0, 0)),      # embedded activations, BB samples/block
        pl.BlockSpec((BB, 1, S), lambda i: (i, 0, 0)),      # additive key-mask bias
        pl.BlockSpec((BB, 1, VP), lambda i: (i, 0, 0)),     # candidates / exist_mask (padded)
    ] + [pl.BlockSpec(w.shape, _const_map(w.ndim)) for w in weights]

    out = pl.pallas_call(
        bert_kernel,
        out_shape=jax.ShapeDtypeStruct((B, S, VP), jnp.float32),
        grid=(NB,),
        in_specs=in_specs,
        out_specs=pl.BlockSpec((BB, S, VP), lambda i: (i, 0, 0)),
        scratch_shapes=[pltpu.VMEM((BB, S, D), jnp.float32)],
        compiler_params=pltpu.CompilerParams(dimension_semantics=("parallel",)),
    )(x_emb, kbias, cand_p, *weights)
    return out[:, :, :V]


# ---------------------------- params / reference ----------------------------
def init_params(key):
    ks = iter(jax.random.split(key, 40))

    def nrm(shape, scale=0.08):
        return scale * jax.random.normal(next(ks), shape, dtype=jnp.float32)

    p = {}
    p["emb"] = nrm((VOCAB_IN, D), 0.1)
    p["pos"] = nrm((S, D), 0.1)
    p["wq"] = nrm((L, D, D)); p["bq"] = nrm((L, 1, D), 0.02)
    p["wk"] = nrm((L, D, D)); p["bk"] = nrm((L, 1, D), 0.02)
    p["wv"] = nrm((L, D, D)); p["bv"] = nrm((L, 1, D), 0.02)
    p["wo"] = nrm((L, D, D)); p["bo"] = nrm((L, 1, D), 0.02)
    p["w1"] = nrm((L, D, DFF)); p["b1"] = nrm((L, 1, DFF), 0.02)
    p["w2"] = nrm((L, DFF, D)); p["b2"] = nrm((L, 1, D), 0.02)
    p["ln1a"] = jnp.ones((L, 1, D), jnp.float32); p["ln1b"] = jnp.zeros((L, 1, D), jnp.float32)
    p["ln2a"] = jnp.ones((L, 1, D), jnp.float32); p["ln2b"] = jnp.zeros((L, 1, D), jnp.float32)
    p["lnfa"] = jnp.ones((1, D), jnp.float32); p["lnfb"] = jnp.zeros((1, D), jnp.float32)
    p["wg"] = nrm((D, V)); p["bg"] = nrm((1, V), 0.02)
    return p


def ref_forward(p, x_emb, mask, cand):
    def ln(t, a, b):
        mean = jnp.mean(t, -1, keepdims=True)
        var = jnp.sum((t - mean) ** 2, -1, keepdims=True) / (D - 1)
        return a * (t - mean) / (jnp.sqrt(var) + EPS) + b

    def sm(s):
        m = jnp.max(s, -1, keepdims=True)
        e = jnp.exp(s - m)
        return e / jnp.sum(e, -1, keepdims=True)

    x = x_emb
    for l in range(L):
        xn = ln(x, p["ln1a"][l], p["ln1b"][l])
        q = xn @ p["wq"][l] + p["bq"][l]
        k = xn @ p["wk"][l] + p["bk"][l]
        v = xn @ p["wv"][l] + p["bv"][l]
        qh = q.reshape(B, S, H, DH).transpose(0, 2, 1, 3)
        kh = k.reshape(B, S, H, DH).transpose(0, 2, 1, 3)
        vh = v.reshape(B, S, H, DH).transpose(0, 2, 1, 3)
        sc = jnp.einsum("bhqd,bhkd->bhqk", qh, kh) / math.sqrt(DH)
        sc = jnp.where(mask[:, None, None, :] == 0.0, NEG, sc)
        att = sm(sc)
        o = jnp.einsum("bhqk,bhkd->bhqd", att, vh).transpose(0, 2, 1, 3).reshape(B, S, D)
        x = x + o @ p["wo"][l] + p["bo"][l]
        xn = ln(x, p["ln2a"][l], p["ln2b"][l])
        hdn = jnp.maximum(xn @ p["w1"][l] + p["b1"][l], 0.0)
        x = x + hdn @ p["w2"][l] + p["b2"][l]
    x = ln(x, p["lnfa"], p["lnfb"])
    logits = x @ p["wg"] + p["bg"]
    logits = jnp.where(cand[:, None, :] > 0.5, NEG, logits)
    m = jnp.max(logits, -1, keepdims=True)
    lse = m + jnp.log(jnp.sum(jnp.exp(logits - m), -1, keepdims=True))
    return logits - lse


# ---------------------------- main ----------------------------
if __name__ == "__main__":
    params = init_params(jax.random.PRNGKey(0))

    # deterministic example inputs (forward: x (B, max_word_length), src_mask, candidates/exist_mask)
    tokens = jax.random.randint(jax.random.PRNGKey(1), (B, S), 0, VOCAB_IN)
    mask = jnp.array([[1, 1, 1, 1, 1, 1, 0, 0],
                      [1, 1, 1, 1, 1, 1, 1, 1],
                      [1, 1, 1, 1, 0, 0, 0, 0],
                      [1, 1, 1, 1, 1, 1, 1, 0]], dtype=jnp.float32)
    cand = (jax.random.uniform(jax.random.PRNGKey(2), (B, V)) < 0.3).astype(jnp.float32)
    cand = cand.at[:, 0].set(0.0)   # keep at least one available letter per example

    # TODO(synk): embedding gather could be fused in-kernel via PrefetchScalarGridSpec + pl.Element
    # row gather; kept as JAX glue since it is off the hot path.
    x_emb = params["emb"][tokens] * math.sqrt(D) + params["pos"][None]

    out = jax.block_until_ready(bert_pallas(params, x_emb, mask, cand))

    ref = ref_forward(params, x_emb, mask, cand)
    err = float(jnp.max(jnp.abs(out - ref)))
    assert out.shape == (B, S, V)
    # bf16 MXU operands (f32 accumulation) + EUP approx reciprocals, compared vs. a pure-f32 reference
    assert err < 3e-2, f"kernel mismatch vs pure-JAX reference: {err}"
    # TODO(synk): dropout inside the injected encoder sub-layers is omitted (eval-mode semantics).
    print("KERNEL_OK")
</pallas_src>

<mosaic_0001>
module attributes {stable_mosaic.version = 11 : i64} {
  func.func @bert_kernel(%arg0: i32, %arg1: memref<2x8x32xf32, #tpu.memory_space<vmem>>, %arg2: memref<2x1x8xf32, #tpu.memory_space<vmem>>, %arg3: memref<2x1x128xf32, #tpu.memory_space<vmem>>, %arg4: memref<2x32x96xbf16, #tpu.memory_space<vmem>>, %arg5: memref<2x1x96xf32, #tpu.memory_space<vmem>>, %arg6: memref<2x32x32xbf16, #tpu.memory_space<vmem>>, %arg7: memref<2x6x32xf32, #tpu.memory_space<vmem>>, %arg8: memref<2x32x64xbf16, #tpu.memory_space<vmem>>, %arg9: memref<2x1x64xf32, #tpu.memory_space<vmem>>, %arg10: memref<2x64x32xbf16, #tpu.memory_space<vmem>>, %arg11: memref<2x32xf32, #tpu.memory_space<vmem>>, %arg12: memref<32x128xbf16, #tpu.memory_space<vmem>>, %arg13: memref<1x128xf32, #tpu.memory_space<vmem>>, %arg14: memref<2x8x128xf32, #tpu.memory_space<vmem>>, %arg15: memref<2x8x32xf32, #tpu.memory_space<vmem>>) attributes {dimension_semantics = [#tpu.dimension_semantics<parallel>], iteration_bounds = array<i64: 2>, scalar_prefetch = 0 : i64, scratch_operands = 1 : i64, tpu.core_type = #tpu.core_type<tc>, window_params = [{transform_indices = @transform_0, window_bounds = array<i64: 2, 8, 32>}, {transform_indices = @transform_1, window_bounds = array<i64: 2, 1, 8>}, {transform_indices = @transform_2, window_bounds = array<i64: 2, 1, 128>}, {pipeline_mode = #tpu.pipeline_mode<synchronous>, transform_indices = @transform_3, window_bounds = array<i64: 2, 32, 96>}, {pipeline_mode = #tpu.pipeline_mode<synchronous>, transform_indices = @transform_4, window_bounds = array<i64: 2, 1, 96>}, {pipeline_mode = #tpu.pipeline_mode<synchronous>, transform_indices = @transform_5, window_bounds = array<i64: 2, 32, 32>}, {pipeline_mode = #tpu.pipeline_mode<synchronous>, transform_indices = @transform_6, window_bounds = array<i64: 2, 6, 32>}, {pipeline_mode = #tpu.pipeline_mode<synchronous>, transform_indices = @transform_7, window_bounds = array<i64: 2, 32, 64>}, {pipeline_mode = #tpu.pipeline_mode<synchronous>, transform_indices = @transform_8, window_bounds = array<i64: 2, 1, 64>}, {pipeline_mode = #tpu.pipeline_mode<synchronous>, transform_indices = @transform_9, window_bounds = array<i64: 2, 64, 32>}, {pipeline_mode = #tpu.pipeline_mode<synchronous>, transform_indices = @transform_10, window_bounds = array<i64: 2, 32>}, {pipeline_mode = #tpu.pipeline_mode<synchronous>, transform_indices = @transform_11, window_bounds = array<i64: 32, 128>}, {pipeline_mode = #tpu.pipeline_mode<synchronous>, transform_indices = @transform_12, window_bounds = array<i64: 1, 128>}, {transform_indices = @transform_13, window_bounds = array<i64: 2, 8, 128>}]} {
    %c0 = arith.constant 0 : index
    %c0_0 = arith.constant 0 : index
    %c0_1 = arith.constant 0 : index
    %0 = vector.load %arg1[%c0, %c0_0, %c0_1] : memref<2x8x32xf32, #tpu.memory_space<vmem>>, vector<2x8x32xf32>
    %1 = vector.shape_cast %0 : vector<2x8x32xf32> to vector<16x32xf32>
    %c0_2 = arith.constant 0 : index
    %c0_3 = arith.constant 0 : index
    %c0_4 = arith.constant 0 : index
    %2 = vector.load %arg2[%c0_2, %c0_3, %c0_4] : memref<2x1x8xf32, #tpu.memory_space<vmem>>, vector<2x1x8xf32>
    %c0_5 = arith.constant 0 : index
    %c0_6 = arith.constant 0 : index
    %c0_7 = arith.constant 0 : index
    %3 = vector.load %arg7[%c0_5, %c0_6, %c0_7] : memref<2x6x32xf32, #tpu.memory_space<vmem>>, vector<1x6x32xf32>
    %4 = vector.shape_cast %3 : vector<1x6x32xf32> to vector<6x32xf32>
    %5 = vector.extract_strided_slice %4 {offsets = [0, 0], sizes = [1, 32], strides = [1, 1]} : vector<6x32xf32> to vector<1x32xf32>
    %6 = vector.extract_strided_slice %4 {offsets = [1, 0], sizes = [1, 32], strides = [1, 1]} : vector<6x32xf32> to vector<1x32xf32>
    %7 = vector.extract_strided_slice %4 {offsets = [2, 0], sizes = [1, 32], strides = [1, 1]} : vector<6x32xf32> to vector<1x32xf32>
    %8 = vector.extract_strided_slice %4 {offsets = [3, 0], sizes = [1, 32], strides = [1, 1]} : vector<6x32xf32> to vector<1x32xf32>
    %9 = vector.extract_strided_slice %4 {offsets = [4, 0], sizes = [1, 32], strides = [1, 1]} : vector<6x32xf32> to vector<1x32xf32>
    %10 = vector.extract_strided_slice %4 {offsets = [5, 0], sizes = [1, 32], strides = [1, 1]} : vector<6x32xf32> to vector<1x32xf32>
    %cst = arith.constant dense<0.000000e+00> : vector<16xf32>
    %11 = vector.multi_reduction <add>, %1, %cst [1] : vector<16x32xf32> to vector<16xf32>
    %12 = vector.shape_cast %11 : vector<16xf32> to vector<16x1xf32>
    %cst_8 = arith.constant 3.200000e+01 : f32
    %13 = vector.broadcast %cst_8 : f32 to vector<16x1xf32>
    %14 = arith.divf %12, %13 : vector<16x1xf32>
    %15 = vector.broadcast %14 : vector<16x1xf32> to vector<16x32xf32>
    %16 = arith.subf %1, %15 : vector<16x32xf32>
    %17 = arith.mulf %16, %16 : vector<16x32xf32>
    %cst_9 = arith.constant dense<0.000000e+00> : vector<16xf32>
    %18 = vector.multi_reduction <add>, %17, %cst_9 [1] : vector<16x32xf32> to vector<16xf32>
    %19 = vector.shape_cast %18 : vector<16xf32> to vector<16x1xf32>
    %cst_10 = arith.constant 0.0322580636 : f32
    %20 = vector.broadcast %cst_10 : f32 to vector<16x1xf32>
    %21 = arith.mulf %19, %20 : vector<16x1xf32>
    %22 = math.sqrt %21 : vector<16x1xf32>
    %cst_11 = arith.constant 9.99999997E-7 : f32
    %23 = vector.broadcast %cst_11 : f32 to vector<16x1xf32>
    %24 = arith.addf %22, %23 : vector<16x1xf32>
    %25 = tpu.reciprocal %24 {approx = true} : vector<16x1xf32> -> vector<16x1xf32>
    %26 = vector.broadcast %5 : vector<1x32xf32> to vector<16x32xf32>
    %27 = arith.mulf %26, %16 : vector<16x32xf32>
    %28 = vector.broadcast %25 : vector<16x1xf32> to vector<16x32xf32>
    %29 = arith.mulf %27, %28 : vector<16x32xf32>
    %30 = vector.broadcast %6 : vector<1x32xf32> to vector<16x32xf32>
    %31 = arith.addf %29, %30 : vector<16x32xf32>
    %32 = arith.truncf %31 : vector<16x32xf32> to vector<16x32xbf16>
    %c0_12 = arith.constant 0 : index
    %c0_13 = arith.constant 0 : index
    %c0_14 = arith.constant 0 : index
    %33 = vector.load %arg4[%c0_12, %c0_13, %c0_14] : memref<2x32x96xbf16, #tpu.memory_space<vmem>>, vector<1x32x96xbf16>
    %34 = vector.shape_cast %33 : vector<1x32x96xbf16> to vector<32x96xbf16>
    %cst_15 = arith.constant dense<0.000000e+00> : vector<16x96xf32>
    %35 = tpu.matmul %32, %34, %cst_15 {dimension_numbers = #tpu.dot_dimension_numbers<[1], [0], [0], [1], [0, 0, 1, 1], [], []>} : vector<16x32xbf16>, vector<32x96xbf16>, vector<16x96xf32> -> vector<16x96xf32>
    %c0_16 = arith.constant 0 : index
    %c0_17 = arith.constant 0 : index
    %c0_18 = arith.constant 0 : index
    %36 = vector.load %arg5[%c0_16, %c0_17, %c0_18] : memref<2x1x96xf32, #tpu.memory_space<vmem>>, vector<1x1x96xf32>
    %37 = vector.shape_cast %36 : vector<1x1x96xf32> to vector<1x96xf32>
    %38 = vector.broadcast %37 : vector<1x96xf32> to vector<16x96xf32>
    %39 = arith.addf %35, %38 : vector<16x96xf32>
    %40 = arith.truncf %39 : vector<16x96xf32> to vector<16x96xbf16>
    %41 = vector.extract_strided_slice %40 {offsets = [0, 0], sizes = [16, 8], strides = [1, 1]} : vector<16x96xbf16> to vector<16x8xbf16>
    %42 = vector.shape_cast %41 : vector<16x8xbf16> to vector<2x8x8xbf16>
    %43 = vector.extract_strided_slice %40 {offsets = [0, 32], sizes = [16, 8], strides = [1, 1]} : vector<16x96xbf16> to vector<16x8xbf16>
    %44 = vector.shape_cast %43 : vector<16x8xbf16> to vector<2x8x8xbf16>
    %45 = vector.extract_strided_slice %40 {offsets = [0, 64], sizes = [16, 8], strides = [1, 1]} : vector<16x96xbf16> to vector<16x8xbf16>
    %46 = vector.shape_cast %45 : vector<16x8xbf16> to vector<2x8x8xbf16>
    "tpu.trace_start"() <{level = 10 : i32, message = "bqd,bkd->bqk"}> : () -> ()
    %cst_19 = arith.constant dense<0.000000e+00> : vector<2x8x8xf32>
    %47 = tpu.matmul %42, %44, %cst_19 {dimension_numbers = #tpu.dot_dimension_numbers<[2], [2], [1], [1], [0, 0, 0, 1, 1, 1], [0], [0]>} : vector<2x8x8xbf16>, vector<2x8x8xbf16>, vector<2x8x8xf32> -> vector<2x8x8xf32>
    "tpu.trace_stop"() : () -> ()
    %48 = vector.broadcast %2 : vector<2x1x8xf32> to vector<2x8x8xf32>
    %49 = arith.addf %47, %48 : vector<2x8x8xf32>
    %cst_20 = arith.constant dense<0xFF800000> : vector<2x8xf32>
    %50 = vector.multi_reduction <maximumf>, %49, %cst_20 [2] : vector<2x8x8xf32> to vector<2x8xf32>
    %51 = vector.shape_cast %50 : vector<2x8xf32> to vector<2x8x1xf32>
    %52 = vector.broadcast %51 : vector<2x8x1xf32> to vector<2x8x8xf32>
    %53 = arith.subf %49, %52 : vector<2x8x8xf32>
    %54 = math.exp %53 : vector<2x8x8xf32>
    %cst_21 = arith.constant dense<0.000000e+00> : vector<2x8xf32>
    %55 = vector.multi_reduction <add>, %54, %cst_21 [2] : vector<2x8x8xf32> to vector<2x8xf32>
    %56 = vector.shape_cast %55 : vector<2x8xf32> to vector<2x8x1xf32>
    %57 = tpu.reciprocal %56 {approx = true} : vector<2x8x1xf32> -> vector<2x8x1xf32>
    %58 = vector.broadcast %57 : vector<2x8x1xf32> to vector<2x8x8xf32>
    %59 = arith.mulf %54, %58 : vector<2x8x8xf32>
    %60 = arith.truncf %59 : vector<2x8x8xf32> to vector<2x8x8xbf16>
    "tpu.trace_start"() <{level = 10 : i32, message = "bqk,bkd->bqd"}> : () -> ()
    %cst_22 = arith.constant dense<0.000000e+00> : vector<2x8x8xf32>
    %61 = tpu.matmul %60, %46, %cst_22 {dimension_numbers = #tpu.dot_dimension_numbers<[2], [1], [1], [2], [0, 0, 0, 1, 1, 2], [0], [0]>} : vector<2x8x8xbf16>, vector<2x8x8xbf16>, vector<2x8x8xf32> -> vector<2x8x8xf32>
    "tpu.trace_stop"() : () -> ()
    %c0_23 = arith.constant 0 : index
    %c0_24 = arith.constant 0 : index
    %c0_25 = arith.constant 0 : index
    %62 = vector.load %arg15[%c0_23, %c0_24, %c0_25] : memref<2x8x32xf32, #tpu.memory_space<vmem>>, vector<2x8x8xf32>
    tpu.vector_store %arg15[%c0_23, %c0_24, %c0_25], %61 {strides = array<i32>} : memref<2x8x32xf32, #tpu.memory_space<vmem>>, vector<2x8x8xf32>,
    %63 = vector.extract_strided_slice %40 {offsets = [0, 8], sizes = [16, 8], strides = [1, 1]} : vector<16x96xbf16> to vector<16x8xbf16>
    %64 = vector.shape_cast %63 : vector<16x8xbf16> to vector<2x8x8xbf16>
    %65 = vector.extract_strided_slice %40 {offsets = [0, 40], sizes = [16, 8], strides = [1, 1]} : vector<16x96xbf16> to vector<16x8xbf16>
    %66 = vector.shape_cast %65 : vector<16x8xbf16> to vector<2x8x8xbf16>
    %67 = vector.extract_strided_slice %40 {offsets = [0, 72], sizes = [16, 8], strides = [1, 1]} : vector<16x96xbf16> to vector<16x8xbf16>
    %68 = vector.shape_cast %67 : vector<16x8xbf16> to vector<2x8x8xbf16>
    "tpu.trace_start"() <{level = 10 : i32, message = "bqd,bkd->bqk"}> : () -> ()
    %cst_26 = arith.constant dense<0.000000e+00> : vector<2x8x8xf32>
    %69 = tpu.matmul %64, %66, %cst_26 {dimension_numbers = #tpu.dot_dimension_numbers<[2], [2], [1], [1], [0, 0, 0, 1, 1, 1], [0], [0]>} : vector<2x8x8xbf16>, vector<2x8x8xbf16>, vector<2x8x8xf32> -> vector<2x8x8xf32>
    "tpu.trace_stop"() : () -> ()
    %70 = vector.broadcast %2 : vector<2x1x8xf32> to vector<2x8x8xf32>
    %71 = arith.addf %69, %70 : vector<2x8x8xf32>
    %cst_27 = arith.constant dense<0xFF800000> : vector<2x8xf32>
    %72 = vector.multi_reduction <maximumf>, %71, %cst_27 [2] : vector<2x8x8xf32> to vector<2x8xf32>
    %73 = vector.shape_cast %72 : vector<2x8xf32> to vector<2x8x1xf32>
    %74 = vector.broadcast %73 : vector<2x8x1xf32> to vector<2x8x8xf32>
    %75 = arith.subf %71, %74 : vector<2x8x8xf32>
    %76 = math.exp %75 : vector<2x8x8xf32>
    %cst_28 = arith.constant dense<0.000000e+00> : vector<2x8xf32>
    %77 = vector.multi_reduction <add>, %76, %cst_28 [2] : vector<2x8x8xf32> to vector<2x8xf32>
    %78 = vector.shape_cast %77 : vector<2x8xf32> to vector<2x8x1xf32>
    %79 = tpu.reciprocal %78 {approx = true} : vector<2x8x1xf32> -> vector<2x8x1xf32>
    %80 = vector.broadcast %79 : vector<2x8x1xf32> to vector<2x8x8xf32>
    %81 = arith.mulf %76, %80 : vector<2x8x8xf32>
    %82 = arith.truncf %81 : vector<2x8x8xf32> to vector<2x8x8xbf16>
    "tpu.trace_start"() <{level = 10 : i32, message = "bqk,bkd->bqd"}> : () -> ()
    %cst_29 = arith.constant dense<0.000000e+00> : vector<2x8x8xf32>
    %83 = tpu.matmul %82, %68, %cst_29 {dimension_numbers = #tpu.dot_dimension_numbers<[2], [1], [1], [2], [0, 0, 0, 1, 1, 2], [0], [0]>} : vector<2x8x8xbf16>, vector<2x8x8xbf16>, vector<2x8x8xf32> -> vector<2x8x8xf32>
    "tpu.trace_stop"() : () -> ()
    %c0_30 = arith.constant 0 : index
    %c0_31 = arith.constant 0 : index
    %c8 = arith.constant 8 : index
    %84 = vector.load %arg15[%c0_30, %c0_31, %c8] : memref<2x8x32xf32, #tpu.memory_space<vmem>>, vector<2x8x8xf32>
    tpu.vector_store %arg15[%c0_30, %c0_31, %c8], %83 {strides = array<i32>} : memref<2x8x32xf32, #tpu.memory_space<vmem>>, vector<2x8x8xf32>,
    %85 = vector.extract_strided_slice %40 {offsets = [0, 16], sizes = [16, 8], strides = [1, 1]} : vector<16x96xbf16> to vector<16x8xbf16>
    %86 = vector.shape_cast %85 : vector<16x8xbf16> to vector<2x8x8xbf16>
    %87 = vector.extract_strided_slice %40 {offsets = [0, 48], sizes = [16, 8], strides = [1, 1]} : vector<16x96xbf16> to vector<16x8xbf16>
    %88 = vector.shape_cast %87 : vector<16x8xbf16> to vector<2x8x8xbf16>
    %89 = vector.extract_strided_slice %40 {offsets = [0, 80], sizes = [16, 8], strides = [1, 1]} : vector<16x96xbf16> to vector<16x8xbf16>
    %90 = vector.shape_cast %89 : vector<16x8xbf16> to vector<2x8x8xbf16>
    "tpu.trace_start"() <{level = 10 : i32, message = "bqd,bkd->bqk"}> : () -> ()
    %cst_32 = arith.constant dense<0.000000e+00> : vector<2x8x8xf32>
    %91 = tpu.matmul %86, %88, %cst_32 {dimension_numbers = #tpu.dot_dimension_numbers<[2], [2], [1], [1], [0, 0, 0, 1, 1, 1], [0], [0]>} : vector<2x8x8xbf16>, vector<2x8x8xbf16>, vector<2x8x8xf32> -> vector<2x8x8xf32>
    "tpu.trace_stop"() : () -> ()
    %92 = vector.broadcast %2 : vector<2x1x8xf32> to vector<2x8x8xf32>
    %93 = arith.addf %91, %92 : vector<2x8x8xf32>
    %cst_33 = arith.constant dense<0xFF800000> : vector<2x8xf32>
    %94 = vector.multi_reduction <maximumf>, %93, %cst_33 [2] : vector<2x8x8xf32> to vector<2x8xf32>
    %95 = vector.shape_cast %94 : vector<2x8xf32> to vector<2x8x1xf32>
    %96 = vector.broadcast %95 : vector<2x8x1xf32> to vector<2x8x8xf32>
    %97 = arith.subf %93, %96 : vector<2x8x8xf32>
    %98 = math.exp %97 : vector<2x8x8xf32>
    %cst_34 = arith.constant dense<0.000000e+00> : vector<2x8xf32>
    %99 = vector.multi_reduction <add>, %98, %cst_34 [2] : vector<2x8x8xf32> to vector<2x8xf32>
    %100 = vector.shape_cast %99 : vector<2x8xf32> to vector<2x8x1xf32>
    %101 = tpu.reciprocal %100 {approx = true} : vector<2x8x1xf32> -> vector<2x8x1xf32>
    %102 = vector.broadcast %101 : vector<2x8x1xf32> to vector<2x8x8xf32>
    %103 = arith.mulf %98, %102 : vector<2x8x8xf32>
    %104 = arith.truncf %103 : vector<2x8x8xf32> to vector<2x8x8xbf16>
    "tpu.trace_start"() <{level = 10 : i32, message = "bqk,bkd->bqd"}> : () -> ()
    %cst_35 = arith.constant dense<0.000000e+00> : vector<2x8x8xf32>
    %105 = tpu.matmul %104, %90, %cst_35 {dimension_numbers = #tpu.dot_dimension_numbers<[2], [1], [1], [2], [0, 0, 0, 1, 1, 2], [0], [0]>} : vector<2x8x8xbf16>, vector<2x8x8xbf16>, vector<2x8x8xf32> -> vector<2x8x8xf32>
    "tpu.trace_stop"() : () -> ()
    %c0_36 = arith.constant 0 : index
    %c0_37 = arith.constant 0 : index
    %c16 = arith.constant 16 : index
    %106 = vector.load %arg15[%c0_36, %c0_37, %c16] : memref<2x8x32xf32, #tpu.memory_space<vmem>>, vector<2x8x8xf32>
    tpu.vector_store %arg15[%c0_36, %c0_37, %c16], %105 {strides = array<i32>} : memref<2x8x32xf32, #tpu.memory_space<vmem>>, vector<2x8x8xf32>,
    %107 = vector.extract_strided_slice %40 {offsets = [0, 24], sizes = [16, 8], strides = [1, 1]} : vector<16x96xbf16> to vector<16x8xbf16>
    %108 = vector.shape_cast %107 : vector<16x8xbf16> to vector<2x8x8xbf16>
    %109 = vector.extract_strided_slice %40 {offsets = [0, 56], sizes = [16, 8], strides = [1, 1]} : vector<16x96xbf16> to vector<16x8xbf16>
    %110 = vector.shape_cast %109 : vector<16x8xbf16> to vector<2x8x8xbf16>
    %111 = vector.extract_strided_slice %40 {offsets = [0, 88], sizes = [16, 8], strides = [1, 1]} : vector<16x96xbf16> to vector<16x8xbf16>
    %112 = vector.shape_cast %111 : vector<16x8xbf16> to vector<2x8x8xbf16>
    "tpu.trace_start"() <{level = 10 : i32, message = "bqd,bkd->bqk"}> : () -> ()
    %cst_38 = arith.constant dense<0.000000e+00> : vector<2x8x8xf32>
    %113 = tpu.matmul %108, %110, %cst_38 {dimension_numbers = #tpu.dot_dimension_numbers<[2], [2], [1], [1], [0, 0, 0, 1, 1, 1], [0], [0]>} : vector<2x8x8xbf16>, vector<2x8x8xbf16>, vector<2x8x8xf32> -> vector<2x8x8xf32>
    "tpu.trace_stop"() : () -> ()
    %114 = vector.broadcast %2 : vector<2x1x8xf32> to vector<2x8x8xf32>
    %115 = arith.addf %113, %114 : vector<2x8x8xf32>
    %cst_39 = arith.constant dense<0xFF800000> : vector<2x8xf32>
    %116 = vector.multi_reduction <maximumf>, %115, %cst_39 [2] : vector<2x8x8xf32> to vector<2x8xf32>
    %117 = vector.shape_cast %116 : vector<2x8xf32> to vector<2x8x1xf32>
    %118 = vector.broadcast %117 : vector<2x8x1xf32> to vector<2x8x8xf32>
    %119 = arith.subf %115, %118 : vector<2x8x8xf32>
    %120 = math.exp %119 : vector<2x8x8xf32>
    %cst_40 = arith.constant dense<0.000000e+00> : vector<2x8xf32>
    %121 = vector.multi_reduction <add>, %120, %cst_40 [2] : vector<2x8x8xf32> to vector<2x8xf32>
    %122 = vector.shape_cast %121 : vector<2x8xf32> to vector<2x8x1xf32>
    %123 = tpu.reciprocal %122 {approx = true} : vector<2x8x1xf32> -> vector<2x8x1xf32>
    %124 = vector.broadcast %123 : vector<2x8x1xf32> to vector<2x8x8xf32>
    %125 = arith.mulf %120, %124 : vector<2x8x8xf32>
    %126 = arith.truncf %125 : vector<2x8x8xf32> to vector<2x8x8xbf16>
    "tpu.trace_start"() <{level = 10 : i32, message = "bqk,bkd->bqd"}> : () -> ()
    %cst_41 = arith.constant dense<0.000000e+00> : vector<2x8x8xf32>
    %127 = tpu.matmul %126, %112, %cst_41 {dimension_numbers = #tpu.dot_dimension_numbers<[2], [1], [1], [2], [0, 0, 0, 1, 1, 2], [0], [0]>} : vector<2x8x8xbf16>, vector<2x8x8xbf16>, vector<2x8x8xf32> -> vector<2x8x8xf32>
    "tpu.trace_stop"() : () -> ()
    %c0_42 = arith.constant 0 : index
    %c0_43 = arith.constant 0 : index
    %c24 = arith.constant 24 : index
    %128 = vector.load %arg15[%c0_42, %c0_43, %c24] : memref<2x8x32xf32, #tpu.memory_space<vmem>>, vector<2x8x8xf32>
    tpu.vector_store %arg15[%c0_42, %c0_43, %c24], %127 {strides = array<i32>} : memref<2x8x32xf32, #tpu.memory_space<vmem>>, vector<2x8x8xf32>,
    %c0_44 = arith.constant 0 : index
    %c0_45 = arith.constant 0 : index
    %c0_46 = arith.constant 0 : index
    %129 = vector.load %arg15[%c0_44, %c0_45, %c0_46] : memref<2x8x32xf32, #tpu.memory_space<vmem>>, vector<2x8x32xf32>
    %130 = vector.shape_cast %129 : vector<2x8x32xf32> to vector<16x32xf32>
    %131 = arith.truncf %130 : vector<16x32xf32> to vector<16x32xbf16>
    %c0_47 = arith.constant 0 : index
    %c0_48 = arith.constant 0 : index
    %c0_49 = arith.constant 0 : index
    %132 = vector.load %arg6[%c0_47, %c0_48, %c0_49] : memref<2x32x32xbf16, #tpu.memory_space<vmem>>, vector<1x32x32xbf16>
    %133 = vector.shape_cast %132 : vector<1x32x32xbf16> to vector<32x32xbf16>
    %cst_50 = arith.constant dense<0.000000e+00> : vector<16x32xf32>
    %134 = tpu.matmul %131, %133, %cst_50 {dimension_numbers = #tpu.dot_dimension_numbers<[1], [0], [0], [1], [0, 0, 1, 1], [], []>} : vector<16x32xbf16>, vector<32x32xbf16>, vector<16x32xf32> -> vector<16x32xf32>
    %135 = arith.addf %1, %134 : vector<16x32xf32>
    %136 = vector.broadcast %7 : vector<1x32xf32> to vector<16x32xf32>
    %137 = arith.addf %135, %136 : vector<16x32xf32>
    %cst_51 = arith.constant dense<0.000000e+00> : vector<16xf32>
    %138 = vector.multi_reduction <add>, %137, %cst_51 [1] : vector<16x32xf32> to vector<16xf32>
    %139 = vector.shape_cast %138 : vector<16xf32> to vector<16x1xf32>
    %cst_52 = arith.constant 3.200000e+01 : f32
    %140 = vector.broadcast %cst_52 : f32 to vector<16x1xf32>
    %141 = arith.divf %139, %140 : vector<16x1xf32>
    %142 = vector.broadcast %141 : vector<16x1xf32> to vector<16x32xf32>
    %143 = arith.subf %137, %142 : vector<16x32xf32>
    %144 = arith.mulf %143, %143 : vector<16x32xf32>
    %cst_53 = arith.constant dense<0.000000e+00> : vector<16xf32>
    %145 = vector.multi_reduction <add>, %144, %cst_53 [1] : vector<16x32xf32> to vector<16xf32>
    %146 = vector.shape_cast %145 : vector<16xf32> to vector<16x1xf32>
    %cst_54 = arith.constant 0.0322580636 : f32
    %147 = vector.broadcast %cst_54 : f32 to vector<16x1xf32>
    %148 = arith.mulf %146, %147 : vector<16x1xf32>
    %149 = math.sqrt %148 : vector<16x1xf32>
    %cst_55 = arith.constant 9.99999997E-7 : f32
    %150 = vector.broadcast %cst_55 : f32 to vector<16x1xf32>
    %151 = arith.addf %149, %150 : vector<16x1xf32>
    %152 = tpu.reciprocal %151 {approx = true} : vector<16x1xf32> -> vector<16x1xf32>
    %153 = vector.broadcast %8 : vector<1x32xf32> to vector<16x32xf32>
    %154 = arith.mulf %153, %143 : vector<16x32xf32>
    %155 = vector.broadcast %152 : vector<16x1xf32> to vector<16x32xf32>
    %156 = arith.mulf %154, %155 : vector<16x32xf32>
    %157 = vector.broadcast %9 : vector<1x32xf32> to vector<16x32xf32>
    %158 = arith.addf %156, %157 : vector<16x32xf32>
    %159 = arith.truncf %158 : vector<16x32xf32> to vector<16x32xbf16>
    %c0_56 = arith.constant 0 : index
    %c0_57 = arith.constant 0 : index
    %c0_58 = arith.constant 0 : index
    %160 = vector.load %arg8[%c0_56, %c0_57, %c0_58] : memref<2x32x64xbf16, #tpu.memory_space<vmem>>, vector<1x32x64xbf16>
    %161 = vector.shape_cast %160 : vector<1x32x64xbf16> to vector<32x64xbf16>
    %cst_59 = arith.constant dense<0.000000e+00> : vector<16x64xf32>
    %162 = tpu.matmul %159, %161, %cst_59 {dimension_numbers = #tpu.dot_dimension_numbers<[1], [0], [0], [1], [0, 0, 1, 1], [], []>} : vector<16x32xbf16>, vector<32x64xbf16>, vector<16x64xf32> -> vector<16x64xf32>
    %c0_60 = arith.constant 0 : index
    %c0_61 = arith.constant 0 : index
    %c0_62 = arith.constant 0 : index
    %163 = vector.load %arg9[%c0_60, %c0_61, %c0_62] : memref<2x1x64xf32, #tpu.memory_space<vmem>>, vector<1x1x64xf32>
    %164 = vector.shape_cast %163 : vector<1x1x64xf32> to vector<1x64xf32>
    %165 = vector.broadcast %164 : vector<1x64xf32> to vector<16x64xf32>
    %166 = arith.addf %162, %165 : vector<16x64xf32>
    %cst_63 = arith.constant 0.000000e+00 : f32
    %167 = vector.broadcast %cst_63 : f32 to vector<16x64xf32>
    %168 = arith.maximumf %166, %167 : vector<16x64xf32>
    %169 = arith.truncf %168 : vector<16x64xf32> to vector<16x64xbf16>
    %c0_64 = arith.constant 0 : index
    %c0_65 = arith.constant 0 : index
    %c0_66 = arith.constant 0 : index
    %170 = vector.load %arg10[%c0_64, %c0_65, %c0_66] : memref<2x64x32xbf16, #tpu.memory_space<vmem>>, vector<1x64x32xbf16>
    %171 = vector.shape_cast %170 : vector<1x64x32xbf16> to vector<64x32xbf16>
    %cst_67 = arith.constant dense<0.000000e+00> : vector<16x32xf32>
    %172 = tpu.matmul %169, %171, %cst_67 {dimension_numbers = #tpu.dot_dimension_numbers<[1], [0], [0], [1], [0, 0, 1, 1], [], []>} : vector<16x64xbf16>, vector<64x32xbf16>, vector<16x32xf32> -> vector<16x32xf32>
    %173 = arith.addf %137, %172 : vector<16x32xf32>
    %174 = vector.broadcast %10 : vector<1x32xf32> to vector<16x32xf32>
    %175 = arith.addf %173, %174 : vector<16x32xf32>
    %c1 = arith.constant 1 : index
    %c0_68 = arith.constant 0 : index
    %c0_69 = arith.constant 0 : index
    %176 = vector.load %arg7[%c1, %c0_68, %c0_69] : memref<2x6x32xf32, #tpu.memory_space<vmem>>, vector<1x6x32xf32>
    %177 = vector.shape_cast %176 : vector<1x6x32xf32> to vector<6x32xf32>
    %178 = vector.extract_strided_slice %177 {offsets = [0, 0], sizes = [1, 32], strides = [1, 1]} : vector<6x32xf32> to vector<1x32xf32>
    %179 = vector.extract_strided_slice %177 {offsets = [1, 0], sizes = [1, 32], strides = [1, 1]} : vector<6x32xf32> to vector<1x32xf32>
    %180 = vector.extract_strided_slice %177 {offsets = [2, 0], sizes = [1, 32], strides = [1, 1]} : vector<6x32xf32> to vector<1x32xf32>
    %181 = vector.extract_strided_slice %177 {offsets = [3, 0], sizes = [1, 32], strides = [1, 1]} : vector<6x32xf32> to vector<1x32xf32>
    %182 = vector.extract_strided_slice %177 {offsets = [4, 0], sizes = [1, 32], strides = [1, 1]} : vector<6x32xf32> to vector<1x32xf32>
    %183 = vector.extract_strided_slice %177 {offsets = [5, 0], sizes = [1, 32], strides = [1, 1]} : vector<6x32xf32> to vector<1x32xf32>
    %cst_70 = arith.constant dense<0.000000e+00> : vector<16xf32>
    %184 = vector.multi_reduction <add>, %175, %cst_70 [1] : vector<16x32xf32> to vector<16xf32>
    %185 = vector.shape_cast %184 : vector<16xf32> to vector<16x1xf32>
    %cst_71 = arith.constant 3.200000e+01 : f32
    %186 = vector.broadcast %cst_71 : f32 to vector<16x1xf32>
    %187 = arith.divf %185, %186 : vector<16x1xf32>
    %188 = vector.broadcast %187 : vector<16x1xf32> to vector<16x32xf32>
    %189 = arith.subf %175, %188 : vector<16x32xf32>
    %190 = arith.mulf %189, %189 : vector<16x32xf32>
    %cst_72 = arith.constant dense<0.000000e+00> : vector<16xf32>
    %191 = vector.multi_reduction <add>, %190, %cst_72 [1] : vector<16x32xf32> to vector<16xf32>
    %192 = vector.shape_cast %191 : vector<16xf32> to vector<16x1xf32>
    %cst_73 = arith.constant 0.0322580636 : f32
    %193 = vector.broadcast %cst_73 : f32 to vector<16x1xf32>
    %194 = arith.mulf %192, %193 : vector<16x1xf32>
    %195 = math.sqrt %194 : vector<16x1xf32>
    %cst_74 = arith.constant 9.99999997E-7 : f32
    %196 = vector.broadcast %cst_74 : f32 to vector<16x1xf32>
    %197 = arith.addf %195, %196 : vector<16x1xf32>
    %198 = tpu.reciprocal %197 {approx = true} : vector<16x1xf32> -> vector<16x1xf32>
    %199 = vector.broadcast %178 : vector<1x32xf32> to vector<16x32xf32>
    %200 = arith.mulf %199, %189 : vector<16x32xf32>
    %201 = vector.broadcast %198 : vector<16x1xf32> to vector<16x32xf32>
    %202 = arith.mulf %200, %201 : vector<16x32xf32>
    %203 = vector.broadcast %179 : vector<1x32xf32> to vector<16x32xf32>
    %204 = arith.addf %202, %203 : vector<16x32xf32>
    %205 = arith.truncf %204 : vector<16x32xf32> to vector<16x32xbf16>
    %c1_75 = arith.constant 1 : index
    %c0_76 = arith.constant 0 : index
    %c0_77 = arith.constant 0 : index
    %206 = vector.load %arg4[%c1_75, %c0_76, %c0_77] : memref<2x32x96xbf16, #tpu.memory_space<vmem>>, vector<1x32x96xbf16>
    %207 = vector.shape_cast %206 : vector<1x32x96xbf16> to vector<32x96xbf16>
    %cst_78 = arith.constant dense<0.000000e+00> : vector<16x96xf32>
    %208 = tpu.matmul %205, %207, %cst_78 {dimension_numbers = #tpu.dot_dimension_numbers<[1], [0], [0], [1], [0, 0, 1, 1], [], []>} : vector<16x32xbf16>, vector<32x96xbf16>, vector<16x96xf32> -> vector<16x96xf32>
    %c1_79 = arith.constant 1 : index
    %c0_80 = arith.constant 0 : index
    %c0_81 = arith.constant 0 : index
    %209 = vector.load %arg5[%c1_79, %c0_80, %c0_81] : memref<2x1x96xf32, #tpu.memory_space<vmem>>, vector<1x1x96xf32>
    %210 = vector.shape_cast %209 : vector<1x1x96xf32> to vector<1x96xf32>
    %211 = vector.broadcast %210 : vector<1x96xf32> to vector<16x96xf32>
    %212 = arith.addf %208, %211 : vector<16x96xf32>
    %213 = arith.truncf %212 : vector<16x96xf32> to vector<16x96xbf16>
    %214 = vector.extract_strided_slice %213 {offsets = [0, 0], sizes = [16, 8], strides = [1, 1]} : vector<16x96xbf16> to vector<16x8xbf16>
    %215 = vector.shape_cast %214 : vector<16x8xbf16> to vector<2x8x8xbf16>
    %216 = vector.extract_strided_slice %213 {offsets = [0, 32], sizes = [16, 8], strides = [1, 1]} : vector<16x96xbf16> to vector<16x8xbf16>
    %217 = vector.shape_cast %216 : vector<16x8xbf16> to vector<2x8x8xbf16>
    %218 = vector.extract_strided_slice %213 {offsets = [0, 64], sizes = [16, 8], strides = [1, 1]} : vector<16x96xbf16> to vector<16x8xbf16>
    %219 = vector.shape_cast %218 : vector<16x8xbf16> to vector<2x8x8xbf16>
    "tpu.trace_start"() <{level = 10 : i32, message = "bqd,bkd->bqk"}> : () -> ()
    %cst_82 = arith.constant dense<0.000000e+00> : vector<2x8x8xf32>
    %220 = tpu.matmul %215, %217, %cst_82 {dimension_numbers = #tpu.dot_dimension_numbers<[2], [2], [1], [1], [0, 0, 0, 1, 1, 1], [0], [0]>} : vector<2x8x8xbf16>, vector<2x8x8xbf16>, vector<2x8x8xf32> -> vector<2x8x8xf32>
    "tpu.trace_stop"() : () -> ()
    %221 = vector.broadcast %2 : vector<2x1x8xf32> to vector<2x8x8xf32>
    %222 = arith.addf %220, %221 : vector<2x8x8xf32>
    %cst_83 = arith.constant dense<0xFF800000> : vector<2x8xf32>
    %223 = vector.multi_reduction <maximumf>, %222, %cst_83 [2] : vector<2x8x8xf32> to vector<2x8xf32>
    %224 = vector.shape_cast %223 : vector<2x8xf32> to vector<2x8x1xf32>
    %225 = vector.broadcast %224 : vector<2x8x1xf32> to vector<2x8x8xf32>
    %226 = arith.subf %222, %225 : vector<2x8x8xf32>
    %227 = math.exp %226 : vector<2x8x8xf32>
    %cst_84 = arith.constant dense<0.000000e+00> : vector<2x8xf32>
    %228 = vector.multi_reduction <add>, %227, %cst_84 [2] : vector<2x8x8xf32> to vector<2x8xf32>
    %229 = vector.shape_cast %228 : vector<2x8xf32> to vector<2x8x1xf32>
    %230 = tpu.reciprocal %229 {approx = true} : vector<2x8x1xf32> -> vector<2x8x1xf32>
    %231 = vector.broadcast %230 : vector<2x8x1xf32> to vector<2x8x8xf32>
    %232 = arith.mulf %227, %231 : vector<2x8x8xf32>
    %233 = arith.truncf %232 : vector<2x8x8xf32> to vector<2x8x8xbf16>
    "tpu.trace_start"() <{level = 10 : i32, message = "bqk,bkd->bqd"}> : () -> ()
    %cst_85 = arith.constant dense<0.000000e+00> : vector<2x8x8xf32>
    %234 = tpu.matmul %233, %219, %cst_85 {dimension_numbers = #tpu.dot_dimension_numbers<[2], [1], [1], [2], [0, 0, 0, 1, 1, 2], [0], [0]>} : vector<2x8x8xbf16>, vector<2x8x8xbf16>, vector<2x8x8xf32> -> vector<2x8x8xf32>
    "tpu.trace_stop"() : () -> ()
    %c0_86 = arith.constant 0 : index
    %c0_87 = arith.constant 0 : index
    %c0_88 = arith.constant 0 : index
    %235 = vector.load %arg15[%c0_86, %c0_87, %c0_88] : memref<2x8x32xf32, #tpu.memory_space<vmem>>, vector<2x8x8xf32>
    tpu.vector_store %arg15[%c0_86, %c0_87, %c0_88], %234 {strides = array<i32>} : memref<2x8x32xf32, #tpu.memory_space<vmem>>, vector<2x8x8xf32>,
    %236 = vector.extract_strided_slice %213 {offsets = [0, 8], sizes = [16, 8], strides = [1, 1]} : vector<16x96xbf16> to vector<16x8xbf16>
    %237 = vector.shape_cast %236 : vector<16x8xbf16> to vector<2x8x8xbf16>
    %238 = vector.extract_strided_slice %213 {offsets = [0, 40], sizes = [16, 8], strides = [1, 1]} : vector<16x96xbf16> to vector<16x8xbf16>
    %239 = vector.shape_cast %238 : vector<16x8xbf16> to vector<2x8x8xbf16>
    %240 = vector.extract_strided_slice %213 {offsets = [0, 72], sizes = [16, 8], strides = [1, 1]} : vector<16x96xbf16> to vector<16x8xbf16>
    %241 = vector.shape_cast %240 : vector<16x8xbf16> to vector<2x8x8xbf16>
    "tpu.trace_start"() <{level = 10 : i32, message = "bqd,bkd->bqk"}> : () -> ()
    %cst_89 = arith.constant dense<0.000000e+00> : vector<2x8x8xf32>
    %242 = tpu.matmul %237, %239, %cst_89 {dimension_numbers = #tpu.dot_dimension_numbers<[2], [2], [1], [1], [0, 0, 0, 1, 1, 1], [0], [0]>} : vector<2x8x8xbf16>, vector<2x8x8xbf16>, vector<2x8x8xf32> -> vector<2x8x8xf32>
    "tpu.trace_stop"() : () -> ()
    %243 = vector.broadcast %2 : vector<2x1x8xf32> to vector<2x8x8xf32>
    %244 = arith.addf %242, %243 : vector<2x8x8xf32>
    %cst_90 = arith.constant dense<0xFF800000> : vector<2x8xf32>
    %245 = vector.multi_reduction <maximumf>, %244, %cst_90 [2] : vector<2x8x8xf32> to vector<2x8xf32>
    %246 = vector.shape_cast %245 : vector<2x8xf32> to vector<2x8x1xf32>
    %247 = vector.broadcast %246 : vector<2x8x1xf32> to vector<2x8x8xf32>
    %248 = arith.subf %244, %247 : vector<2x8x8xf32>
    %249 = math.exp %248 : vector<2x8x8xf32>
    %cst_91 = arith.constant dense<0.000000e+00> : vector<2x8xf32>
    %250 = vector.multi_reduction <add>, %249, %cst_91 [2] : vector<2x8x8xf32> to vector<2x8xf32>
    %251 = vector.shape_cast %250 : vector<2x8xf32> to vector<2x8x1xf32>
    %252 = tpu.reciprocal %251 {approx = true} : vector<2x8x1xf32> -> vector<2x8x1xf32>
    %253 = vector.broadcast %252 : vector<2x8x1xf32> to vector<2x8x8xf32>
    %254 = arith.mulf %249, %253 : vector<2x8x8xf32>
    %255 = arith.truncf %254 : vector<2x8x8xf32> to vector<2x8x8xbf16>
    "tpu.trace_start"() <{level = 10 : i32, message = "bqk,bkd->bqd"}> : () -> ()
    %cst_92 = arith.constant dense<0.000000e+00> : vector<2x8x8xf32>
    %256 = tpu.matmul %255, %241, %cst_92 {dimension_numbers = #tpu.dot_dimension_numbers<[2], [1], [1], [2], [0, 0, 0, 1, 1, 2], [0], [0]>} : vector<2x8x8xbf16>, vector<2x8x8xbf16>, vector<2x8x8xf32> -> vector<2x8x8xf32>
    "tpu.trace_stop"() : () -> ()
    %c0_93 = arith.constant 0 : index
    %c0_94 = arith.constant 0 : index
    %c8_95 = arith.constant 8 : index
    %257 = vector.load %arg15[%c0_93, %c0_94, %c8_95] : memref<2x8x32xf32, #tpu.memory_space<vmem>>, vector<2x8x8xf32>
    tpu.vector_store %arg15[%c0_93, %c0_94, %c8_95], %256 {strides = array<i32>} : memref<2x8x32xf32, #tpu.memory_space<vmem>>, vector<2x8x8xf32>,
    %258 = vector.extract_strided_slice %213 {offsets = [0, 16], sizes = [16, 8], strides = [1, 1]} : vector<16x96xbf16> to vector<16x8xbf16>
    %259 = vector.shape_cast %258 : vector<16x8xbf16> to vector<2x8x8xbf16>
    %260 = vector.extract_strided_slice %213 {offsets = [0, 48], sizes = [16, 8], strides = [1, 1]} : vector<16x96xbf16> to vector<16x8xbf16>
    %261 = vector.shape_cast %260 : vector<16x8xbf16> to vector<2x8x8xbf16>
    %262 = vector.extract_strided_slice %213 {offsets = [0, 80], sizes = [16, 8], strides = [1, 1]} : vector<16x96xbf16> to vector<16x8xbf16>
    %263 = vector.shape_cast %262 : vector<16x8xbf16> to vector<2x8x8xbf16>
    "tpu.trace_start"() <{level = 10 : i32, message = "bqd,bkd->bqk"}> : () -> ()
    %cst_96 = arith.constant dense<0.000000e+00> : vector<2x8x8xf32>
    %264 = tpu.matmul %259, %261, %cst_96 {dimension_numbers = #tpu.dot_dimension_numbers<[2], [2], [1], [1], [0, 0, 0, 1, 1, 1], [0], [0]>} : vector<2x8x8xbf16>, vector<2x8x8xbf16>, vector<2x8x8xf32> -> vector<2x8x8xf32>
    "tpu.trace_stop"() : () -> ()
    %265 = vector.broadcast %2 : vector<2x1x8xf32> to vector<2x8x8xf32>
    %266 = arith.addf %264, %265 : vector<2x8x8xf32>
    %cst_97 = arith.constant dense<0xFF800000> : vector<2x8xf32>
    %267 = vector.multi_reduction <maximumf>, %266, %cst_97 [2] : vector<2x8x8xf32> to vector<2x8xf32>
    %268 = vector.shape_cast %267 : vector<2x8xf32> to vector<2x8x1xf32>
    %269 = vector.broadcast %268 : vector<2x8x1xf32> to vector<2x8x8xf32>
    %270 = arith.subf %266, %269 : vector<2x8x8xf32>
    %271 = math.exp %270 : vector<2x8x8xf32>
    %cst_98 = arith.constant dense<0.000000e+00> : vector<2x8xf32>
    %272 = vector.multi_reduction <add>, %271, %cst_98 [2] : vector<2x8x8xf32> to vector<2x8xf32>
    %273 = vector.shape_cast %272 : vector<2x8xf32> to vector<2x8x1xf32>
    %274 = tpu.reciprocal %273 {approx = true} : vector<2x8x1xf32> -> vector<2x8x1xf32>
    %275 = vector.broadcast %274 : vector<2x8x1xf32> to vector<2x8x8xf32>
    %276 = arith.mulf %271, %275 : vector<2x8x8xf32>
    %277 = arith.truncf %276 : vector<2x8x8xf32> to vector<2x8x8xbf16>
    "tpu.trace_start"() <{level = 10 : i32, message = "bqk,bkd->bqd"}> : () -> ()
    %cst_99 = arith.constant dense<0.000000e+00> : vector<2x8x8xf32>
    %278 = tpu.matmul %277, %263, %cst_99 {dimension_numbers = #tpu.dot_dimension_numbers<[2], [1], [1], [2], [0, 0, 0, 1, 1, 2], [0], [0]>} : vector<2x8x8xbf16>, vector<2x8x8xbf16>, vector<2x8x8xf32> -> vector<2x8x8xf32>
    "tpu.trace_stop"() : () -> ()
    %c0_100 = arith.constant 0 : index
    %c0_101 = arith.constant 0 : index
    %c16_102 = arith.constant 16 : index
    %279 = vector.load %arg15[%c0_100, %c0_101, %c16_102] : memref<2x8x32xf32, #tpu.memory_space<vmem>>, vector<2x8x8xf32>
    tpu.vector_store %arg15[%c0_100, %c0_101, %c16_102], %278 {strides = array<i32>} : memref<2x8x32xf32, #tpu.memory_space<vmem>>, vector<2x8x8xf32>,
    %280 = vector.extract_strided_slice %213 {offsets = [0, 24], sizes = [16, 8], strides = [1, 1]} : vector<16x96xbf16> to vector<16x8xbf16>
    %281 = vector.shape_cast %280 : vector<16x8xbf16> to vector<2x8x8xbf16>
    %282 = vector.extract_strided_slice %213 {offsets = [0, 56], sizes = [16, 8], strides = [1, 1]} : vector<16x96xbf16> to vector<16x8xbf16>
    %283 = vector.shape_cast %282 : vector<16x8xbf16> to vector<2x8x8xbf16>
    %284 = vector.extract_strided_slice %213 {offsets = [0, 88], sizes = [16, 8], strides = [1, 1]} : vector<16x96xbf16> to vector<16x8xbf16>
    %285 = vector.shape_cast %284 : vector<16x8xbf16> to vector<2x8x8xbf16>
    "tpu.trace_start"() <{level = 10 : i32, message = "bqd,bkd->bqk"}> : () -> ()
    %cst_103 = arith.constant dense<0.000000e+00> : vector<2x8x8xf32>
    %286 = tpu.matmul %281, %283, %cst_103 {dimension_numbers = #tpu.dot_dimension_numbers<[2], [2], [1], [1], [0, 0, 0, 1, 1, 1], [0], [0]>} : vector<2x8x8xbf16>, vector<2x8x8xbf16>, vector<2x8x8xf32> -> vector<2x8x8xf32>
    "tpu.trace_stop"() : () -> ()
    %287 = vector.broadcast %2 : vector<2x1x8xf32> to vector<2x8x8xf32>
    %288 = arith.addf %286, %287 : vector<2x8x8xf32>
    %cst_104 = arith.constant dense<0xFF800000> : vector<2x8xf32>
    %289 = vector.multi_reduction <maximumf>, %288, %cst_104 [2] : vector<2x8x8xf32> to vector<2x8xf32>
    %290 = vector.shape_cast %289 : vector<2x8xf32> to vector<2x8x1xf32>
    %291 = vector.broadcast %290 : vector<2x8x1xf32> to vector<2x8x8xf32>
    %292 = arith.subf %288, %291 : vector<2x8x8xf32>
    %293 = math.exp %292 : vector<2x8x8xf32>
    %cst_105 = arith.constant dense<0.000000e+00> : vector<2x8xf32>
    %294 = vector.multi_reduction <add>, %293, %cst_105 [2] : vector<2x8x8xf32> to vector<2x8xf32>
    %295 = vector.shape_cast %294 : vector<2x8xf32> to vector<2x8x1xf32>
    %296 = tpu.reciprocal %295 {approx = true} : vector<2x8x1xf32> -> vector<2x8x1xf32>
    %297 = vector.broadcast %296 : vector<2x8x1xf32> to vector<2x8x8xf32>
    %298 = arith.mulf %293, %297 : vector<2x8x8xf32>
    %299 = arith.truncf %298 : vector<2x8x8xf32> to vector<2x8x8xbf16>
    "tpu.trace_start"() <{level = 10 : i32, message = "bqk,bkd->bqd"}> : () -> ()
    %cst_106 = arith.constant dense<0.000000e+00> : vector<2x8x8xf32>
    %300 = tpu.matmul %299, %285, %cst_106 {dimension_numbers = #tpu.dot_dimension_numbers<[2], [1], [1], [2], [0, 0, 0, 1, 1, 2], [0], [0]>} : vector<2x8x8xbf16>, vector<2x8x8xbf16>, vector<2x8x8xf32> -> vector<2x8x8xf32>
    "tpu.trace_stop"() : () -> ()
    %c0_107 = arith.constant 0 : index
    %c0_108 = arith.constant 0 : index
    %c24_109 = arith.constant 24 : index
    %301 = vector.load %arg15[%c0_107, %c0_108, %c24_109] : memref<2x8x32xf32, #tpu.memory_space<vmem>>, vector<2x8x8xf32>
    tpu.vector_store %arg15[%c0_107, %c0_108, %c24_109], %300 {strides = array<i32>} : memref<2x8x32xf32, #tpu.memory_space<vmem>>, vector<2x8x8xf32>,
    %c0_110 = arith.constant 0 : index
    %c0_111 = arith.constant 0 : index
    %c0_112 = arith.constant 0 : index
    %302 = vector.load %arg15[%c0_110, %c0_111, %c0_112] : memref<2x8x32xf32, #tpu.memory_space<vmem>>, vector<2x8x32xf32>
    %303 = vector.shape_cast %302 : vector<2x8x32xf32> to vector<16x32xf32>
    %304 = arith.truncf %303 : vector<16x32xf32> to vector<16x32xbf16>
    %c1_113 = arith.constant 1 : index
    %c0_114 = arith.constant 0 : index
    %c0_115 = arith.constant 0 : index
    %305 = vector.load %arg6[%c1_113, %c0_114, %c0_115] : memref<2x32x32xbf16, #tpu.memory_space<vmem>>, vector<1x32x32xbf16>
    %306 = vector.shape_cast %305 : vector<1x32x32xbf16> to vector<32x32xbf16>
    %cst_116 = arith.constant dense<0.000000e+00> : vector<16x32xf32>
    %307 = tpu.matmul %304, %306, %cst_116 {dimension_numbers = #tpu.dot_dimension_numbers<[1], [0], [0], [1], [0, 0, 1, 1], [], []>} : vector<16x32xbf16>, vector<32x32xbf16>, vector<16x32xf32> -> vector<16x32xf32>
    %308 = arith.addf %175, %307 : vector<16x32xf32>
    %309 = vector.broadcast %180 : vector<1x32xf32> to vector<16x32xf32>
    %310 = arith.addf %308, %309 : vector<16x32xf32>
    %cst_117 = arith.constant dense<0.000000e+00> : vector<16xf32>
    %311 = vector.multi_reduction <add>, %310, %cst_117 [1] : vector<16x32xf32> to vector<16xf32>
    %312 = vector.shape_cast %311 : vector<16xf32> to vector<16x1xf32>
    %cst_118 = arith.constant 3.200000e+01 : f32
    %313 = vector.broadcast %cst_118 : f32 to vector<16x1xf32>
    %314 = arith.divf %312, %313 : vector<16x1xf32>
    %315 = vector.broadcast %314 : vector<16x1xf32> to vector<16x32xf32>
    %316 = arith.subf %310, %315 : vector<16x32xf32>
    %317 = arith.mulf %316, %316 : vector<16x32xf32>
    %cst_119 = arith.constant dense<0.000000e+00> : vector<16xf32>
    %318 = vector.multi_reduction <add>, %317, %cst_119 [1] : vector<16x32xf32> to vector<16xf32>
    %319 = vector.shape_cast %318 : vector<16xf32> to vector<16x1xf32>
    %cst_120 = arith.constant 0.0322580636 : f32
    %320 = vector.broadcast %cst_120 : f32 to vector<16x1xf32>
    %321 = arith.mulf %319, %320 : vector<16x1xf32>
    %322 = math.sqrt %321 : vector<16x1xf32>
    %cst_121 = arith.constant 9.99999997E-7 : f32
    %323 = vector.broadcast %cst_121 : f32 to vector<16x1xf32>
    %324 = arith.addf %322, %323 : vector<16x1xf32>
    %325 = tpu.reciprocal %324 {approx = true} : vector<16x1xf32> -> vector<16x1xf32>
    %326 = vector.broadcast %181 : vector<1x32xf32> to vector<16x32xf32>
    %327 = arith.mulf %326, %316 : vector<16x32xf32>
    %328 = vector.broadcast %325 : vector<16x1xf32> to vector<16x32xf32>
    %329 = arith.mulf %327, %328 : vector<16x32xf32>
    %330 = vector.broadcast %182 : vector<1x32xf32> to vector<16x32xf32>
    %331 = arith.addf %329, %330 : vector<16x32xf32>
    %332 = arith.truncf %331 : vector<16x32xf32> to vector<16x32xbf16>
    %c1_122 = arith.constant 1 : index
    %c0_123 = arith.constant 0 : index
    %c0_124 = arith.constant 0 : index
    %333 = vector.load %arg8[%c1_122, %c0_123, %c0_124] : memref<2x32x64xbf16, #tpu.memory_space<vmem>>, vector<1x32x64xbf16>
    %334 = vector.shape_cast %333 : vector<1x32x64xbf16> to vector<32x64xbf16>
    %cst_125 = arith.constant dense<0.000000e+00> : vector<16x64xf32>
    %335 = tpu.matmul %332, %334, %cst_125 {dimension_numbers = #tpu.dot_dimension_numbers<[1], [0], [0], [1], [0, 0, 1, 1], [], []>} : vector<16x32xbf16>, vector<32x64xbf16>, vector<16x64xf32> -> vector<16x64xf32>
    %c1_126 = arith.constant 1 : index
    %c0_127 = arith.constant 0 : index
    %c0_128 = arith.constant 0 : index
    %336 = vector.load %arg9[%c1_126, %c0_127, %c0_128] : memref<2x1x64xf32, #tpu.memory_space<vmem>>, vector<1x1x64xf32>
    %337 = vector.shape_cast %336 : vector<1x1x64xf32> to vector<1x64xf32>
    %338 = vector.broadcast %337 : vector<1x64xf32> to vector<16x64xf32>
    %339 = arith.addf %335, %338 : vector<16x64xf32>
    %cst_129 = arith.constant 0.000000e+00 : f32
    %340 = vector.broadcast %cst_129 : f32 to vector<16x64xf32>
    %341 = arith.maximumf %339, %340 : vector<16x64xf32>
    %342 = arith.truncf %341 : vector<16x64xf32> to vector<16x64xbf16>
    %c1_130 = arith.constant 1 : index
    %c0_131 = arith.constant 0 : index
    %c0_132 = arith.constant 0 : index
    %343 = vector.load %arg10[%c1_130, %c0_131, %c0_132] : memref<2x64x32xbf16, #tpu.memory_space<vmem>>, vector<1x64x32xbf16>
    %344 = vector.shape_cast %343 : vector<1x64x32xbf16> to vector<64x32xbf16>
    %cst_133 = arith.constant dense<0.000000e+00> : vector<16x32xf32>
    %345 = tpu.matmul %342, %344, %cst_133 {dimension_numbers = #tpu.dot_dimension_numbers<[1], [0], [0], [1], [0, 0, 1, 1], [], []>} : vector<16x64xbf16>, vector<64x32xbf16>, vector<16x32xf32> -> vector<16x32xf32>
    %346 = arith.addf %310, %345 : vector<16x32xf32>
    %347 = vector.broadcast %183 : vector<1x32xf32> to vector<16x32xf32>
    %348 = arith.addf %346, %347 : vector<16x32xf32>
    %c0_134 = arith.constant 0 : index
    %c0_135 = arith.constant 0 : index
    %349 = vector.load %arg11[%c0_134, %c0_135] : memref<2x32xf32, #tpu.memory_space<vmem>>, vector<1x32xf32>
    %c1_136 = arith.constant 1 : index
    %c0_137 = arith.constant 0 : index
    %350 = vector.load %arg11[%c1_136, %c0_137] : memref<2x32xf32, #tpu.memory_space<vmem>>, vector<1x32xf32>
    %cst_138 = arith.constant dense<0.000000e+00> : vector<16xf32>
    %351 = vector.multi_reduction <add>, %348, %cst_138 [1] : vector<16x32xf32> to vector<16xf32>
    %352 = vector.shape_cast %351 : vector<16xf32> to vector<16x1xf32>
    %cst_139 = arith.constant 3.200000e+01 : f32
    %353 = vector.broadcast %cst_139 : f32 to vector<16x1xf32>
    %354 = arith.divf %352, %353 : vector<16x1xf32>
    %355 = vector.broadcast %354 : vector<16x1xf32> to vector<16x32xf32>
    %356 = arith.subf %348, %355 : vector<16x32xf32>
    %357 = arith.mulf %356, %356 : vector<16x32xf32>
    %cst_140 = arith.constant dense<0.000000e+00> : vector<16xf32>
    %358 = vector.multi_reduction <add>, %357, %cst_140 [1] : vector<16x32xf32> to vector<16xf32>
    %359 = vector.shape_cast %358 : vector<16xf32> to vector<16x1xf32>
    %cst_141 = arith.constant 0.0322580636 : f32
    %360 = vector.broadcast %cst_141 : f32 to vector<16x1xf32>
    %361 = arith.mulf %359, %360 : vector<16x1xf32>
    %362 = math.sqrt %361 : vector<16x1xf32>
    %cst_142 = arith.constant 9.99999997E-7 : f32
    %363 = vector.broadcast %cst_142 : f32 to vector<16x1xf32>
    %364 = arith.addf %362, %363 : vector<16x1xf32>
    %365 = tpu.reciprocal %364 {approx = true} : vector<16x1xf32> -> vector<16x1xf32>
    %366 = vector.broadcast %349 : vector<1x32xf32> to vector<16x32xf32>
    %367 = arith.mulf %366, %356 : vector<16x32xf32>
    %368 = vector.broadcast %365 : vector<16x1xf32> to vector<16x32xf32>
    %369 = arith.mulf %367, %368 : vector<16x32xf32>
    %370 = vector.broadcast %350 : vector<1x32xf32> to vector<16x32xf32>
    %371 = arith.addf %369, %370 : vector<16x32xf32>
    %372 = arith.truncf %371 : vector<16x32xf32> to vector<16x32xbf16>
    %c0_143 = arith.constant 0 : index
    %c0_144 = arith.constant 0 : index
    %373 = vector.load %arg12[%c0_143, %c0_144] : memref<32x128xbf16, #tpu.memory_space<vmem>>, vector<32x128xbf16>
    %cst_145 = arith.constant dense<0.000000e+00> : vector<16x128xf32>
    %374 = tpu.matmul %372, %373, %cst_145 {dimension_numbers = #tpu.dot_dimension_numbers<[1], [0], [0], [1], [0, 0, 1, 1], [], []>} : vector<16x32xbf16>, vector<32x128xbf16>, vector<16x128xf32> -> vector<16x128xf32>
    %c0_146 = arith.constant 0 : index
    %c0_147 = arith.constant 0 : index
    %375 = vector.load %arg13[%c0_146, %c0_147] : memref<1x128xf32, #tpu.memory_space<vmem>>, vector<1x128xf32>
    %376 = vector.broadcast %375 : vector<1x128xf32> to vector<16x128xf32>
    %377 = arith.addf %374, %376 : vector<16x128xf32>
    %378 = vector.shape_cast %377 : vector<16x128xf32> to vector<2x8x128xf32>
    %c0_148 = arith.constant 0 : index
    %c0_149 = arith.constant 0 : index
    %c0_150 = arith.constant 0 : index
    %379 = vector.load %arg3[%c0_148, %c0_149, %c0_150] : memref<2x1x128xf32, #tpu.memory_space<vmem>>, vector<2x1x128xf32>
    %cst_151 = arith.constant 5.000000e-01 : f32
    %380 = vector.broadcast %cst_151 : f32 to vector<2x1x128xf32>
    %381 = arith.cmpf ogt, %379, %380 : vector<2x1x128xf32>
    %cst_152 = arith.constant -1.000000e+09 : f32
    %382 = vector.shape_cast %381 : vector<2x1x128xi1> to vector<2x1x128xi1>
    %383 = vector.broadcast %382 : vector<2x1x128xi1> to vector<2x8x128xi1>
    %384 = vector.broadcast %cst_152 : f32 to vector<2x8x128xf32>
    %385 = arith.select %383, %384, %378 : vector<2x8x128xi1>, vector<2x8x128xf32>
    %cst_153 = arith.constant dense<0xFF800000> : vector<2x8xf32>
    %386 = vector.multi_reduction <maximumf>, %385, %cst_153 [2] : vector<2x8x128xf32> to vector<2x8xf32>
    %387 = vector.shape_cast %386 : vector<2x8xf32> to vector<2x8x1xf32>
    %388 = vector.broadcast %387 : vector<2x8x1xf32> to vector<2x8x128xf32>
    %389 = arith.subf %385, %388 : vector<2x8x128xf32>
    %390 = math.exp %389 : vector<2x8x128xf32>
    %cst_154 = arith.constant dense<0.000000e+00> : vector<2x8xf32>
    %391 = vector.multi_reduction <add>, %390, %cst_154 [2] : vector<2x8x128xf32> to vector<2x8xf32>
    %392 = vector.shape_cast %391 : vector<2x8xf32> to vector<2x8x1xf32>
    %393 = math.log %392 : vector<2x8x1xf32>
    %394 = arith.addf %387, %393 : vector<2x8x1xf32>
    %395 = vector.broadcast %394 : vector<2x8x1xf32> to vector<2x8x128xf32>
    %396 = arith.subf %385, %395 : vector<2x8x128xf32>
    %c0_155 = arith.constant 0 : index
    %c0_156 = arith.constant 0 : index
    %c0_157 = arith.constant 0 : index
    %397 = vector.load %arg14[%c0_155, %c0_156, %c0_157] : memref<2x8x128xf32, #tpu.memory_space<vmem>>, vector<2x8x128xf32>
    tpu.vector_store %arg14[%c0_155, %c0_156, %c0_157], %396 {strides = array<i32>} : memref<2x8x128xf32, #tpu.memory_space<vmem>>, vector<2x8x128xf32>,
    return
  }
  func.func @transform_0(%arg0: i32) -> (i32, i32, i32) {
    %c0_i32 = arith.constant 0 : i32
    %c0_i32_0 = arith.constant 0 : i32
    %c0_i32_1 = arith.constant 0 : i32
    return %arg0, %c0_i32, %c0_i32_0 : i32, i32, i32
  }
  func.func @transform_1(%arg0: i32) -> (i32, i32, i32) {
    %c0_i32 = arith.constant 0 : i32
    %c0_i32_0 = arith.constant 0 : i32
    %c0_i32_1 = arith.constant 0 : i32
    return %arg0, %c0_i32, %c0_i32_0 : i32, i32, i32
  }
  func.func @transform_2(%arg0: i32) -> (i32, i32, i32) {
    %c0_i32 = arith.constant 0 : i32
    %c0_i32_0 = arith.constant 0 : i32
    %c0_i32_1 = arith.constant 0 : i32
    return %arg0, %c0_i32, %c0_i32_0 : i32, i32, i32
  }
  func.func @transform_3(%arg0: i32) -> (i32, i32, i32) {
    %c0_i32 = arith.constant 0 : i32
    %c0_i32_0 = arith.constant 0 : i32
    %c0_i32_1 = arith.constant 0 : i32
    %c0_i32_2 = arith.constant 0 : i32
    return %c0_i32, %c0_i32_0, %c0_i32_1 : i32, i32, i32
  }
  func.func @transform_4(%arg0: i32) -> (i32, i32, i32) {
    %c0_i32 = arith.constant 0 : i32
    %c0_i32_0 = arith.constant 0 : i32
    %c0_i32_1 = arith.constant 0 : i32
    %c0_i32_2 = arith.constant 0 : i32
    return %c0_i32, %c0_i32_0, %c0_i32_1 : i32, i32, i32
  }
  func.func @transform_5(%arg0: i32) -> (i32, i32, i32) {
    %c0_i32 = arith.constant 0 : i32
    %c0_i32_0 = arith.constant 0 : i32
    %c0_i32_1 = arith.constant 0 : i32
    %c0_i32_2 = arith.constant 0 : i32
    return %c0_i32, %c0_i32_0, %c0_i32_1 : i32, i32, i32
  }
  func.func @transform_6(%arg0: i32) -> (i32, i32, i32) {
    %c0_i32 = arith.constant 0 : i32
    %c0_i32_0 = arith.constant 0 : i32
    %c0_i32_1 = arith.constant 0 : i32
    %c0_i32_2 = arith.constant 0 : i32
    return %c0_i32, %c0_i32_0, %c0_i32_1 : i32, i32, i32
  }
  func.func @transform_7(%arg0: i32) -> (i32, i32, i32) {
    %c0_i32 = arith.constant 0 : i32
    %c0_i32_0 = arith.constant 0 : i32
    %c0_i32_1 = arith.constant 0 : i32
    %c0_i32_2 = arith.constant 0 : i32
    return %c0_i32, %c0_i32_0, %c0_i32_1 : i32, i32, i32
  }
  func.func @transform_8(%arg0: i32) -> (i32, i32, i32) {
    %c0_i32 = arith.constant 0 : i32
    %c0_i32_0 = arith.constant 0 : i32
    %c0_i32_1 = arith.constant 0 : i32
    %c0_i32_2 = arith.constant 0 : i32
    return %c0_i32, %c0_i32_0, %c0_i32_1 : i32, i32, i32
  }
  func.func @transform_9(%arg0: i32) -> (i32, i32, i32) {
    %c0_i32 = arith.constant 0 : i32
    %c0_i32_0 = arith.constant 0 : i32
    %c0_i32_1 = arith.constant 0 : i32
    %c0_i32_2 = arith.constant 0 : i32
    return %c0_i32, %c0_i32_0, %c0_i32_1 : i32, i32, i32
  }
  func.func @transform_10(%arg0: i32) -> (i32, i32) {
    %c0_i32 = arith.constant 0 : i32
    %c0_i32_0 = arith.constant 0 : i32
    %c0_i32_1 = arith.constant 0 : i32
    return %c0_i32, %c0_i32_0 : i32, i32
  }
  func.func @transform_11(%arg0: i32) -> (i32, i32) {
    %c0_i32 = arith.constant 0 : i32
    %c0_i32_0 = arith.constant 0 : i32
    %c0_i32_1 = arith.constant 0 : i32
    return %c0_i32, %c0_i32_0 : i32, i32
  }
  func.func @transform_12(%arg0: i32) -> (i32, i32) {
    %c0_i32 = arith.constant 0 : i32
    %c0_i32_0 = arith.constant 0 : i32
    %c0_i32_1 = arith.constant 0 : i32
    return %c0_i32, %c0_i32_0 : i32, i32
  }
  func.func @transform_13(%arg0: i32) -> (i32, i32, i32) {
    %c0_i32 = arith.constant 0 : i32
    %c0_i32_0 = arith.constant 0 : i32
    %c0_i32_1 = arith.constant 0 : i32
    return %arg0, %c0_i32, %c0_i32_0 : i32, i32, i32
  }
}

</mosaic_0001>

<bundles_post_ra>
// kernel: tpu_custom_call.1
= control target key start
LH: loop header
LB: loop body
LE: loop exit
PB: predicated region body
PF: predicated region fallthrough
CT: control target
= control target key end

     0   :  { %s5443_s0 = inlined_call_operand.vmem [shape: f32[4,8,32], index: 0, kind: input, shape index: {}]   ;;  %s5444_s1 = inlined_call_operand.hbm [shape: f32[4,1,8], index: 1, kind: input, shape index: {}]   ;;  %s5445_s2 = inlined_call_operand.hbm [shape: f32[4,1,128], index: 2, kind: input, shape index: {}]   ;;  %s5446_s3 = inlined_call_operand.vmem [shape: bf16[2,32,96], index: 3, kind: input, shape index: {}]   ;;  %s5447_s4 = inlined_call_operand.hbm [shape: f32[2,1,96], index: 4, kind: input, shape index: {}]   ;;  %s5448_s5 = inlined_call_operand.vmem [shape: bf16[2,32,32], index: 5, kind: input, shape index: {}]   ;;  %s5449_s6 = inlined_call_operand.vmem [shape: f32[2,6,32], index: 6, kind: input, shape index: {}]   ;;  %s5450_s7 = inlined_call_operand.vmem [shape: bf16[2,32,64], index: 7, kind: input, shape index: {}]   ;;  %s5451_s8 = inlined_call_operand.hbm [shape: f32[2,1,64], index: 8, kind: input, shape index: {}]   ;;  %s5452_s9 = inlined_call_operand.vmem [shape: bf16[2,64,32], index: 9, kind: input, shape index: {}]   ;;  %s5453_s10 = inlined_call_operand.hbm [shape: f32[2,32], index: 10, kind: input, shape index: {}]   ;;  %s5454_s11 = inlined_call_operand.vmem [shape: bf16[32,128], index: 11, kind: input, shape index: {}]   ;;  %s5455_s12 = inlined_call_operand.vmem [shape: f32[1,128], index: 12, kind: input, shape index: {}]   ;;  %s5456_s13 = inlined_call_operand.hbm [shape: f32[4,8,128], index: 13, kind: output, shape index: {}]  }
   0x1   :  { %5478 = sst [smem:[#allocation24_spill]] %s5444_s1 }
   0x2   :  { %5479 = sst [smem:[#allocation25_spill]] %s5447_s4 }
   0x3   :  { %5480 = sst [smem:[#allocation26_spill]] %s5451_s8 }
   0x4   :  { %5481 = sst [smem:[#allocation27_spill]] %s5453_s10 }
   0x5   :  { %5482 = sst [smem:[#allocation28_spill]] %s5455_s12 }
   0x6   :  { %5483 = sst [smem:[#allocation29_spill]] %s5456_s13 }
   0x7   :  { %18 = vsyncpa [#allocation4], 0 }
   0x8   :  { %20 = vsyncpa [#allocation4 + $0x1], 0 }
   0x9   :  { %21 = vsyncpa [#allocation7], 0 }
   0xa   :  { %23 = vsyncpa [#allocation7 + $0x1], 0 }
   0xb   :  { %24 = vsyncpa [#allocation10], 0 }
   0xc   :  { %25 = vsyncpa [#allocation5], 0 }
   0xd   :  { %27 = vsyncpa [#allocation5 + $0x1], 0  ;;  %s4580_s25 = smov 0   ;;  %s4582_s26 = smov 0  }
   0xe   :  { %s4584_s27 = smov 0   ;;  %s4586_s28 = smov 0  }
   0xf LB: > { %5484 = sst [smem:[#allocation18_spill]] %s4470_s25  ;;  %s4601_s29 = sadd.s32 4294967295, %s4482_s28   ;;  %s4482_s28 = sphi %s4586_s28, %s5518_s28   ;;  %s4478_s27 = sphi %s4584_s27, %s5520_s27   ;;  %s4474_s26 = sphi %s4582_s26, %s5522_s26   ;;  %s4470_s25 = sphi %s4580_s25, %s5521_s25  }
  0x10   : > { %5485 = sst [smem:[#allocation19_spill]] %s4478_s27  ;;  %s3537_s30 = sadd.s32 4294967294, %s4482_s28  }
  0x11   : > { %p79_p0 = scmp.ne.s32.totalorder %s4474_s26, %s4470_s25  ;;  %p5459_p1 = scmp.eq.s32.totalorder %s4601_s29, 0 }
  0x12   : > { %p339_p2 = scmp.eq.s32.totalorder %s4601_s29, 1  ;;  %p345_p3 = scmp.eq.s32.totalorder %s3537_s30, 1 }
  0x13   : > { %p4610_p4 = por %p5459_p1, %p79_p0  ;;  %p3538_p5 = scmp.ge.s32.totalorder %s4482_s28, 1 }
  0x14   : > { %p4615_p6 = por %p345_p3, %p79_p0  ;;  %p352_p7 = scmp.lt.s32.totalorder %s4482_s28, 3 }
  0x15   : > { %s5486_s14 = scalar_select %p4610_p4, 1, 0 }
  0x16   : > { %s5487_s15 = scalar_select %p4615_p6, 1, 0 }
  0x17   : > { %p4620_p8 = pnand %p3538_p5, %p352_p7  ;;  %s4484_s17 = smov [#allocation8]  }
  0x18   : > { %5488 = sst [smem:[#allocation20_spill]] %s5487_s15  ;;  %s367_s18 = sshll.u32 %s4484_s17, 4  ;;  %s368_s18 = int_to_ptr.vmem [resolvable:$true] %s367_s18 }
  0x19   : > { %p4052_p9 = pneg %p4620_p8  ;;  %s4485_s20 = smov [#allocation9]  }
  0x1a   : > { %s389_s21 = sshll.u32 %s4485_s20, 4  ;;  %s4486_s22 = smov [#allocation11]   ;;  %s390_s21 = int_to_ptr.vmem [resolvable:$true] %s389_s21 }
  0x1b   : > { %p4629_p11 = pnand %p4052_p9, %p5459_p1  ;;  %s406_s23 = sshll.u32 %s4486_s22, 4  ;;  %s407_s23 = int_to_ptr.vmem [resolvable:$true] %s406_s23 }
  0x1c   : > { %s4283_s24 = scalar_lea.vmem %s368_s18, 32  ;;  %p4291_p5 = scmp.lt.s32.totalorder %s368_s18, %s368_s18 }
  0x1d   : > { %p4274_p12 = pneg %p4629_p11  ;;  %p4284_p13 = scmp.ne.s32.totalorder %s368_s18, %s4283_s24 }
  0x1e   : > { %p4292_p7 = scmp.lt.s32.totalorder %s4283_s24, %s4283_s24 }
  0x1f   : > { %p4286_p0 = pnand %p4284_p13, %p4274_p12 }
  0x20   : > { %p4293_p9 = por %p4292_p7, %p4291_p5 }
  0x21   : > { %p4287_p3 = pneg %p4286_p0 }
  0x23   : > { %p4294_p10 = pnand %p4293_p9, %p4287_p3 }
  0x25   : > { %4297 = shalt.err (!%p4294_p10)
}
  0x26   : > { %s5460_s30 = smov 16   ;;  %s5462_s17 = smov 1  }
  0x27   : > { %s5491_s4 = sld [smem:[#allocation25_spill]]  ;;  %s4309_s15 = scalar_lea.vmem %s390_s21, 32 }
  0x28   : > { %p4310_p13 = scmp.ne.s32.totalorder %s390_s21, %s4309_s15  ;;  %p4317_p3 = scmp.lt.s32.totalorder %s390_s21, %s390_s21 }
  0x29   : > { %p4318_p10 = scmp.lt.s32.totalorder %s4309_s15, %s4309_s15 }
  0x2a   : > { %p4312_p0 = pnand %p4310_p13, %p4274_p12 }
  0x2b   : > { %p4319_p7 = por %p4318_p10, %p4317_p3 }
  0x2c   : > { %p4313_p5 = pneg %p4312_p0 }
  0x2d   : > { %4055 = dma.hbm_to_vmem [thread:$0]  (!%p4629_p11), %s5491_s4, 32, %s368_s18, [#allocation7], %s5460_s30, %s5460_s30, %s5462_s17  }
  0x2e   : > { %p4320_p9 = pnand %p4319_p7, %p4313_p5 }
  0x30   : > { %4323 = shalt.err (!%p4320_p9)
}
  0x31   : > { %s5492_s8 = sld [smem:[#allocation26_spill]]  ;;  %s4335_s18 = scalar_lea.vmem %s407_s23, 32 }
  0x32   : > { %p4336_p1 = scmp.ne.s32.totalorder %s407_s23, %s4335_s18  ;;  %p4343_p3 = scmp.lt.s32.totalorder %s407_s23, %s407_s23 }
  0x33   : > { %p4344_p5 = scmp.lt.s32.totalorder %s4335_s18, %s4335_s18 }
  0x34   : > { %p4338_p13 = pnand %p4336_p1, %p4274_p12 }
  0x35   : > { %p4345_p10 = por %p4344_p5, %p4343_p3 }
  0x36   : > { %p4339_p0 = pneg %p4338_p13 }
  0x37   : > { %4058 = dma.hbm_to_vmem [thread:$0]  (!%p4629_p11), %s5492_s8, 32, %s390_s21, [#allocation10], %s5460_s30, %s5460_s30, %s5462_s17  }
  0x38   : > { %p4346_p7 = pnand %p4345_p10, %p4339_p0 }
  0x3a   : > { %4349 = shalt.err (!%p4346_p7)
}
  0x3b   : > { %s5493_s10 = sld [smem:[#allocation27_spill]]  ;;  %s4666_s25 = sadd.s32 1, %s4482_s28  }
  0x3c   : > { %5494 = sst [smem:[#allocation21_spill]] %s4666_s25  ;;  %s63_s21 = ssub.s32 %s4482_s28, %s4666_s25 }
  0x3d   : > { %s66_s19 = sadd.s32 1, %s4478_s27  ;;  %p64_p1 = scmp.eq.s32.totalorder %s63_s21, 0 }
  0x3e   : > { %p73_p12 = scmp.ne.s32.totalorder %s4478_s27, %s4474_s26  ;;  %p74_p9 = scmp.eq.s32.totalorder %s4482_s28, 0 }
  0x3f   : > { %p4076_p13 = scmp.lt.s32.totalorder %s4482_s28, 2  ;;  %s432_s18 = sand.u32 1, %s4478_s27  }
  0x40   : > { %s4676_s22 = scalar_select %p64_p1, %s4478_s27, %s66_s19  }
  0x41   : > { %4061 = dma.hbm_to_vmem [thread:$0]  (!%p4629_p11), %s5493_s10, 32, %s407_s23, [#allocation10]  }
  0x42   : > { %5495 = sst [smem:[#allocation22_spill]] %s4676_s22  ;;  %p75_p0 = por %p74_p9, %p73_p12 }
  0x43   : > { %p4680_p3 = por %p339_p2, %p73_p12  ;;  %s3660_s15 = sshll.u32 %s4482_s28, 5 }
  0x44   : > { %s4686_s23 = sshll.u32 %s432_s18, 1  ;;  %s5498_s1 = sld [smem:[#allocation24_spill]] }
  0x45   : > { %s5496_s24 = scalar_select %p4680_p3, 1, 0 }
  0x46   : > { %s436_s19 = scalar_lea.vmem [#allocation3], %s4686_s23  ;;  %p4694_p11 = pnand %p4076_p13, %p75_p0 }
  0x47   : > { %5497 = sst [smem:[#allocation23_spill]] %s5496_s24  ;;  %s443_s17 = sshll.u32 %s436_s19, 4  ;;  %s4698_s17 = int_to_ptr.vmem [resolvable:$true] %s443_s17 }
  0x48   : > { %s4703_s30 = scalar_lea.hbm %s5445_s2, %s3660_s15  ;;  %s4705_s20 = scalar_lea.sflag [#allocation4], %s432_s18 }
  0x49   : > { %p4352_p5 = pneg %p4694_p11 }
  0x4a   : > { %s4691_s21 = scalar_lea.hbm %s5498_s1, %s3660_s15  ;;  %s4355_s25 = scalar_lea.hbm %s5498_s1, 64 }
  0x4b   : > { %s4350_s22 = scalar_lea.hbm %s4691_s21, 32  ;;  %p4356_p1 = scmp.lt.s32.totalorder %s4691_s21, %s5498_s1 }
  0x4c   : > { %p4351_p2 = scmp.ne.s32.totalorder %s4691_s21, %s4350_s22  ;;  %p4357_p12 = scmp.lt.s32.totalorder %s4355_s25, %s4350_s22 }
  0x4e   : > { %p4353_p10 = pnand %p4352_p5, %p4351_p2  ;;  %p4358_p9 = por %p4357_p12, %p4356_p1 }
  0x50   : > { %p4354_p7 = pneg %p4353_p10 }
  0x52   : > { %p4359_p13 = pnand %p4358_p9, %p4354_p7 }
  0x54   : > { %4362 = shalt.err (!%p4359_p13)
}
  0x55   : > { %s4363_s8 = scalar_lea.vmem %s4698_s17, 32  ;;  %s4489_s10 = smov [#allocation3]  }
  0x56   : > { %p4364_p0 = scmp.ne.s32.totalorder %s4698_s17, %s4363_s8  ;;  %s4368_s27 = sshll.u32 %s4489_s10, 4  ;;  %s4369_s27 = int_to_ptr.vmem [resolvable:$false] %s4368_s27 }
  0x57   : > { %s4370_s18 = scalar_lea.vmem %s4369_s27, 64  ;;  %p4371_p6 = scmp.lt.s32.totalorder %s4698_s17, %s4369_s27 }
  0x58   : > { %p4366_p2 = pnand %p4364_p0, %p4352_p5  ;;  %p4372_p3 = scmp.lt.s32.totalorder %s4370_s18, %s4363_s8 }
  0x5a   : > { %p4367_p10 = pneg %p4366_p2  ;;  %p4373_p4 = por %p4372_p3, %p4371_p6 }
  0x5c   : > { %p4374_p1 = pnand %p4373_p4, %p4367_p10 }
  0x5e   : > { %4377 = shalt.err (!%p4374_p1)
}
  0x5f   : > { %s5500_s13 = smov 1   ;;  %s5501_s25 = smov 16  }
  0x60   : > { %4065 = dma.hbm_to_vmem [thread:$0]  (!%p4694_p11), %s4691_s21, 32, %s4698_s17, %s4705_s20, %s5501_s25, %s5501_s25, %s5500_s13  }
  0x61   : > { %s457_s22 = scalar_lea.vmem [#allocation6], %s4686_s23  ;;  %s453_s15 = sand.u32 1, %s4482_s28  }
  0x62   : > { %s464_s24 = sshll.u32 %s457_s22, 4  ;;  %s454_s19 = scalar_lea.sflag [#allocation7], %s453_s15  ;;  %s4737_s24 = int_to_ptr.vmem [resolvable:$true] %s464_s24 }
  0x63   : > { %s4378_s8 = scalar_lea.hbm %s4703_s30, 32  ;;  %s4383_s18 = scalar_lea.hbm %s5445_s2, 64 }
  0x64   : > { %p4379_p4 = scmp.ne.s32.totalorder %s4703_s30, %s4378_s8  ;;  %p4384_p7 = scmp.lt.s32.totalorder %s4703_s30, %s5445_s2 }
  0x65   : > { %p4385_p12 = scmp.lt.s32.totalorder %s4383_s18, %s4378_s8 }
  0x66   : > { %p4381_p6 = pnand %p4379_p4, %p4352_p5 }
  0x67   : > { %p4386_p9 = por %p4385_p12, %p4384_p7 }
  0x68   : > { %p4382_p3 = pneg %p4381_p6 }
  0x6a   : > { %p4387_p13 = pnand %p4386_p9, %p4382_p3 }
  0x6c   : > { %4390 = shalt.err (!%p4387_p13)
}
  0x6d   : > { %s4391_s17 = scalar_lea.vmem %s4737_s24, 32  ;;  %s4490_s23 = smov [#allocation6]  }
  0x6e   : > { %p4392_p0 = scmp.ne.s32.totalorder %s4737_s24, %s4391_s17  ;;  %s4396_s21 = sshll.u32 %s4490_s23, 4  ;;  %s4397_s21 = int_to_ptr.vmem [resolvable:$false] %s4396_s21 }
  0x6f   : > { %s4398_s20 = scalar_lea.vmem %s4397_s21, 64  ;;  %p4399_p1 = scmp.lt.s32.totalorder %s4737_s24, %s4397_s21 }
  0x70   : > { %p4394_p2 = pnand %p4392_p0, %p4352_p5  ;;  %p4400_p4 = scmp.lt.s32.totalorder %s4398_s20, %s4391_s17 }
  0x72   : > { %p4395_p10 = pneg %p4394_p2  ;;  %p4401_p6 = por %p4400_p4, %p4399_p1 }
  0x74   : > { %p4402_p7 = pnand %p4401_p6, %p4395_p10 }
  0x76   : > { %4405 = shalt.err (!%p4402_p7)
}
  0x77   : > { %4068 = dma.hbm_to_vmem [thread:$0]  (!%p4694_p11), %s4703_s30, 32, %s4737_s24, %s454_s19, %s5501_s25, %s5501_s25, %s5500_s13  }
  0x78   : > { %476 = sbr.rel (%p4620_p8) target bundleno = 8918 (0x22d6), region = 72  ;;  %s4767_s1 = sand.u32 (!%p4620_p8), 1, %s4474_s26  }
  0x79   : > { %s3550_s12 = sshll.u32 (!%p4620_p8), %s4767_s1, 1  ;;  %s479_s22 = scalar_lea.sflag (!%p4620_p8), [#allocation4], %s4767_s1 }
  0x7a   : > { %s4771_s15 = scalar_lea.vmem (!%p4620_p8), [#allocation3], %s3550_s12  ;;  %p5502_p5 = scmp.ne.s32.totalorder (!%p4620_p8), %s5486_s14, 0 }
  0x7d   : > { %4449 = dma.done.wait (%p5502_p5), %s479_s22, 32  }
  0x7e   : > { %4451 = vsyncadd (%p5502_p5), %s479_s22, 4294967264  ;;  %s487_s4 = sand.u32 1, %s4601_s29   ;;  %s4778_s30 = scalar_lea.vmem [#allocation6], %s3550_s12 }
  0x7f   : > { %s488_s16 = scalar_lea.sflag [#allocation7], %s487_s4 }
  0x80   : > { %4453 = dma.done.wait (%p5502_p5), %s488_s16, 32  }
  0x81   : > { %4455 = vsyncadd (%p5502_p5), %s488_s16, 4294967264  ;;  %p5503_p8 = scmp.eq.s32.totalorder %s4601_s29, 0 }
  0x83   : > { %4457 = dma.done.wait (%p5503_p8), [#allocation7], 32   ;;  %p5504_p11 = pmov %p5503_p8 }
  0x84   : > { %p5505_p3 = pmov %p5503_p8 }
  0x85   : > { %4459 = vsyncadd (%p5504_p11), [#allocation7], 4294967264 }
  0x86   : > { %4461 = dma.done.wait (%p5505_p3), [#allocation10], 64   ;;  %p5506_p12 = pmov %p5505_p3 }
  0x87   : > { %s3556_s13 = sshll.u32 %s4601_s29, 1  ;;  %vm571_vm0 = vcmask 261120   ;;  %v4136_v14 = vld [vmem:[%s5446_s3 + $0x8] sm:$0xff]   ;;  %v4491_v15 = vmov 0.0   ;;  %vm4492_vm1 = vmmov 0   ;;  %v4137_v16 = vld [vmem:[%s5446_s3] sm:$0xff]   ;;  %v611_v27 = vlaneseq }
  0x88   : > { %4463 = vsyncadd (%p5506_p12), [#allocation10], 4294967232  ;;  %p557_p9 = scmp.lt.s32.totalorder %s3556_s13, 3  ;;  %3762 = vmatprep.subr.bf16.mxu0 %v4491_v15  ;;  %3766 = vmatprep.mubr.msk.bf16.mxu0 %vm4492_vm1, %v4491_v15  ;;  %v4830_v36 = vld [vmem:[%s5449_s6] sm:$0x3f]  ;;  %s4493_s21 = smov 96  }
  0x89   : > { %3763 = vmatpush3.bf16.msra.mxu0 %v4136_v14  ;;  %3770 = vmatprep.subr.bf16.mxu1 %v4491_v15  ;;  %v4822_v33 = vshrl.u32 %v611_v27, 7  ;;  %v3558_v49 = vld [vmem:[#allocation8] ss:$0 sm:$0xff]  ;;  %vm713_vm6 = vcmask 64512   ;;  %v4862_v62 = vld [vmem:[%s4771_s15] ss:$0 sm:$0xff] }
  0x8a   : > { %s5524_s13 = smov (!%p557_p9, %s3556_s13), 3  ;;  %3764 = vmatprep.subr.bf16.mxu0 %v4491_v15  ;;  %3772 = vmatprep.mubr.msk.bf16.mxu1 %vm4492_vm1, %v4491_v15  ;;  %s4494_s20 = smov 64   ;;  %vm837_vm7 = vcmask 1043456   ;;  %vm1159_vm8 = vcmask 130112   ;;  %vm1390_vm9 = vcmask 195712   ;;  %vm1621_vm10 = vcmask 261312  }
  0x8b   : > { %s3557_s25 = sshll.u32 %s5524_s13, 3  ;;  %v4825_v35 = vsub.s32 0, %v4822_v33  ;;  %v621_v38 = vsub.s32 1, %v4822_v33  ;;  %s4495_s12 = smov 88   ;;  %vm1850_vm15 = vcmask 523264  }
  0x8c   : > { %s560_s19 = scalar_lea.vmem %s5443_s0, %s3557_s25  ;;  %s4496_s22 = smov 120  }
  0x8d   : > { %v4796_v0 = vld [vmem:[%s560_s19] sm:$0xff]  ;;  %v4798_v1 = vld [vmem:[%s560_s19 + $0x8] sm:$0xff]  ;;  %3765 = vmatpush3.bf16.msra.mxu0 %v4137_v16  ;;  %v614_v37 = vrot.slane %v4830_v36, %v4825_v35  ;;  %v622_v43 = vrot.slane %v4830_v36, %v621_v38  ;;  %s4497_s4 = smov 56   ;;  %s4498_s16 = smov 80  }
  0x8e   : > { %v572_v2 = vsel %vm571_vm0, %v4796_v0, 0.0  ;;  %v575_v3 = vsel %vm571_vm0, %v4798_v1, 0.0  ;;  %3776 = vmatprep.subr.bf16.mxu0 %v4491_v15  ;;  %s4499_s13 = smov 112   ;;  %s4500_s25 = smov 48  }
  0x8f   : > { %573 = vadd.xlane.f32.xlu0 %v572_v2  ;;  %s4501_s14 = smov 72   ;;  %s4502_s24 = smov 104  }
  0x90   : > { %s4503_s19 = smov 40   ;;  %s5476_s8 = smov 8  }
  0x91   : > { %s5472_s10 = smov 16   ;;  %s5512_s18 = sld [smem:[#allocation29_spill]] }
  0x92   : > { %s3388_s23 = scalar_lea.sflag [#allocation5], %s4767_s1 }
  0x93   : > { %576 = vadd.xlane.f32.xlu0 %v575_v3 }
 0x118   : > { %v574_v4 = vpop.xlane.xlu0 %573 }
 0x119   : > { %v579_v5 = vmul.f32 0.03125, %v574_v4  ;;  %v4866_v4 = vld [vmem:[%s4771_s15 + $0x1] ss:$0 sm:$0xff] }
 0x11b   : > { %v581_v6 = vsub.f32 %v4796_v0, %v579_v5 }
 0x11c   : > { %v577_v7 = vpop.xlane.xlu0 %576 }
 0x11d   : > { %v580_v8 = vmul.f32 0.03125, %v577_v7  ;;  %v583_v9 = vmul.f32 %v581_v6, %v581_v6  ;;  %v615_v40 = vmul.f32 %v614_v37, %v581_v6 }
 0x11f   : > { %v582_v10 = vsub.f32 %v4798_v1, %v580_v8  ;;  %v585_v11 = vsel %vm571_vm0, %v583_v9, 0.0 }
 0x120   : > { %586 = vadd.xlane.f32.xlu1 %v585_v11 }
 0x121   : > { %v584_v12 = vmul.f32 %v582_v10, %v582_v10  ;;  %v616_v41 = vmul.f32 %v614_v37, %v582_v10 }
 0x123   : > { %v588_v13 = vsel %vm571_vm0, %v584_v12, 0.0 }
 0x124   : > { %589 = vadd.xlane.f32.xlu1 %v588_v13 }
 0x1a9   : > { %v587_v17 = vpop.xlane.xlu1 %586 }
 0x1aa   : > { %v591_v18 = vmul.f32 0.032258064, %v587_v17 }
 0x1ac   : > { %4158 = vrsqrt.f32 %v591_v18  ;;  %vm595_vm2 = vcmp.eq.f32.partialorder %v591_v18, inf  ;;  %v598_v23 = vand.u32 2147483648, %v591_v18  ;;  %vm597_vm3 = vcmp.eq.f32.partialorder %v591_v18, 0.0 }
 0x1ad   : > { %v590_v19 = vpop.xlane.xlu1 %589 }
 0x1ae   : > { %v592_v20 = vmul.f32 0.032258064, %v590_v19 }
 0x1b0   : > { %4160 = vrsqrt.f32 %v592_v20  ;;  %vm602_vm4 = vcmp.eq.f32.partialorder %v592_v20, inf  ;;  %v605_v30 = vand.u32 2147483648, %v592_v20  ;;  %vm604_vm5 = vcmp.eq.f32.partialorder %v592_v20, 0.0 }
 0x1b9   : > { %v4159_v21 = vpop.eup %4158 }
 0x1ba   : > { %v594_v22 = vmul.f32 %v4159_v21, %v591_v18 }
 0x1bc   : > { %v596_v24 = vsel %vm595_vm2, %v591_v18, %v594_v22 }
 0x1bd   : > { %v4161_v25 = vpop.eup %4160  ;;  %v599_v26 = vsel %vm597_vm3, %v598_v23, %v596_v24 }
 0x1be   : > { %v607_v28 = vadd.f32 1e-06, %v599_v26  ;;  %v601_v29 = vmul.f32 %v4161_v25, %v592_v20 }
 0x1c0   : > { %4162 = vrcp.f32 %v607_v28  ;;  %v603_v31 = vsel %vm602_vm4, %v592_v20, %v601_v29 }
 0x1c1   : > { %v606_v32 = vsel %vm604_vm5, %v605_v30, %v603_v31 }
 0x1c2   : > { %v608_v34 = vadd.f32 1e-06, %v606_v32 }
 0x1c4   : > { %4164 = vrcp.f32 %v608_v34 }
 0x1cd   : > { %v4163_v39 = vpop.eup %4162 }
 0x1ce   : > { %v617_v42 = vmul.f32 %v4163_v39, %v615_v40 }
 0x1d0   : > { %v623_v46 = vadd.f32 %v622_v43, %v617_v42 }
 0x1d1   : > { %v4165_v44 = vpop.eup %4164 }
 0x1d2   : > { %v618_v45 = vmul.f32 %v4165_v44, %v616_v41 }
 0x1d4   : > { %v624_v47 = vadd.f32 %v622_v43, %v618_v45 }
 0x1d6   : > { %v625_v48 = vpack.c.bf16 %v624_v47, %v623_v46 }
 0x1d8   : > { %3767 = vmatmul.mubr.msk.bf16.vlgmr.msra.gmra.mxu0 %vm571_vm0, %v625_v48 }
 0x1d9   : > { %3778 = vmatprep.mubr.msk.bf16.mxu0 %vm4492_vm1, %v4491_v15 }
 0x298   : > { %v686_v50 = vpop.f32.mrf.mxu0 }
 0x299   : > { %v687_v51 = vadd.f32 %v3558_v49, %v686_v50 }
 0x29a   : > { %v3768_v52 = vpop.f32.mrf.mxu0 }
 0x29b   : > { %v4841_v53 = vpack.c.bf16 %v687_v51, %v687_v51 }
 0x29c   : > { %v689_v54 = vpop.f32.mrf.mxu0 }
 0x29d   : > { %v690_v55 = vadd.f32 %v3558_v49, %v689_v54  ;;  %711 = vrot.lane.b32.xlu0 %v4841_v53, %s4493_s21 }
 0x29e   : > { %v3769_v56 = vpop.f32.mrf.mxu0 }
 0x29f   : > { %v4845_v57 = vpack.c.bf16 %v690_v55, %v690_v55 }
 0x2a1   : > { %760 = vrot.lane.b32.xlu1 %v4845_v57, %s4493_s21 }
 0x30f   : > { %v712_v58 = vpop.permute.xlu0 %711 }
 0x310   : > { %v718_v59 = vsel %vm713_vm6, %v712_v58, 0 }
 0x311   : > { %3771 = vmatpush3.bf16.xpose.msra.mxu1 %v718_v59 }
 0x312   : > { %3782 = vmatprep.subr.bf16.mxu1 %v4491_v15 }
 0x313   : > { %v761_v60 = vpop.permute.xlu1 %760 }
 0x314   : > { %v766_v61 = vsel %vm713_vm6, %v761_v60, 0 }
 0x315   : > { %3777 = vmatpush3.bf16.xpose.msra.mxu0 %v766_v61 }
 0x316   : > { %3788 = vmatprep.subr.bf16.mxu0 %v4491_v15 }
 0x318   : > { %3773 = vmatmul.mubr.msk.bf16.vlgmr.msra.gmra.mxu1 %vm713_vm6, %v4841_v53 }
 0x319   : > { %3784 = vmatprep.mubr.msk.bf16.mxu1 %vm4492_vm1, %v4491_v15 }
 0x31c   : > { %3779 = vmatmul.mubr.msk.bf16.vlgmr.msra.gmra.mxu0 %vm713_vm6, %v4845_v57 }
 0x31d   : > { %3790 = vmatprep.mubr.msk.bf16.mxu0 %vm4492_vm1, %v4491_v15 }
 0x3d8   : > { %v754_v63 = vpop.f32.mrf.mxu1 }
 0x3d9   : > { %v755_v2 = vadd.f32 %v4862_v62, %v754_v63 }
 0x3da   : > { %v3774_v3 = vpop.f32.mrf.mxu1 }
 0x3db   : > { %v808_v5 = vsel %vm713_vm6, %v755_v2, -inf }
 0x3dc   : > { %v757_v6 = vpop.f32.mrf.mxu1  ;;  %809 = vmax.xlane.f32.xlu1 %v808_v5  ;;  %v802_v7 = vpop.f32.mrf.mxu0 }
 0x3dd   : > { %v803_v8 = vadd.f32 %v4866_v4, %v802_v7 }
 0x3de   : > { %v3775_v9 = vpop.f32.mrf.mxu1  ;;  %v3780_v10 = vpop.f32.mrf.mxu0 }
 0x3df   : > { %v811_v11 = vsel %vm713_vm6, %v803_v8, -inf }
 0x3e0   : > { %812 = vmax.xlane.f32.xlu0 %v811_v11  ;;  %v805_v12 = vpop.f32.mrf.mxu0 }
 0x3e2   : > { %v3781_v13 = vpop.f32.mrf.mxu0 }
 0x3ed   : > { %881 = vrot.lane.b32.xlu1 %v4845_v57, %s4494_s20 }
 0x3f1   : > { %933 = vrot.lane.b32.xlu1 %v4841_v53, %s4495_s12 }
 0x465   : > { %v810_v14 = vpop.xlane.xlu1 %809 }
 0x466   : > { %v814_v16 = vsub.f32 %v755_v2, %v810_v14 }
 0x468   : > { %v816_v17 = vmul.f32 1.442695, %v814_v16 }
 0x469   : > { %v882_v18 = vpop.permute.xlu1 %881  ;;  %v813_v19 = vpop.xlane.xlu0 %812 }
 0x46a   : > { %4166 = vpow2.f32 %v816_v17  ;;  %v887_v20 = vsel %vm837_vm7, %v882_v18, 0  ;;  %v815_v21 = vsub.f32 %v803_v8, %v813_v19 }
 0x46b   : > { %3789 = vmatpush3.bf16.msra.mxu0 %v887_v20 }
 0x46c   : > { %v818_v22 = vmul.f32 1.442695, %v815_v21  ;;  %3800 = vmatprep.subr.bf16.mxu0 %v4491_v15 }
 0x46d   : > { %v934_v27 = vpop.permute.xlu1 %933 }
 0x46e   : > { %4168 = vpow2.f32 %v818_v22  ;;  %v939_v40 = vsel %vm713_vm6, %v934_v27, 0 }
 0x477   : > { %v4167_v23 = vpop.eup %4166 }
 0x478   : > { %v820_v24 = vsel %vm713_vm6, %v4167_v23, 0.0 }
 0x479   : > { %821 = vadd.xlane.f32.xlu0 %v820_v24 }
 0x47b   : > { %v4169_v25 = vpop.eup %4168 }
 0x47c   : > { %v823_v26 = vsel %vm713_vm6, %v4169_v25, 0.0 }
 0x47d   : > { %824 = vadd.xlane.f32.xlu1 %v823_v26 }
 0x48e   : > { %983 = vrot.lane.b32.xlu1 %v4845_v57, %s4495_s12 }
 0x48f   : > { %832 = vrot.lane.b32.xlu0 %v4841_v53, %s4494_s20 }
 0x492   : > { %981 = vrot.lane.b32.xlu1 %v4845_v57, %s4496_s22 }
 0x493   : > { %931 = vrot.lane.b32.xlu0 %v4841_v53, %s4496_s22 }
 0x502   : > { %v822_v28 = vpop.xlane.xlu0 %821 }
 0x503   : > { %4170 = vrcp.f32 %v822_v28 }
 0x506   : > { %v825_v29 = vpop.xlane.xlu1 %824  ;;  %v833_v30 = vpop.permute.xlu0 %832 }
 0x507   : > { %4172 = vrcp.f32 %v825_v29  ;;  %v839_v31 = vsel %vm837_vm7, %v833_v30, 0 }
 0x508   : > { %3783 = vmatpush3.bf16.msra.mxu1 %v839_v31 }
 0x509   : > { %3794 = vmatprep.subr.bf16.mxu1 %v4491_v15 }
 0x50a   : > { %v984_v42 = vpop.permute.xlu1 %983  ;;  %v932_v45 = vpop.permute.xlu0 %931 }
 0x50b   : > { %v989_v44 = vsel %vm713_vm6, %v984_v42, 0 }
 0x50e   : > { %v982_v46 = vpop.permute.xlu1 %981 }
 0x510   : > { %v4171_v32 = vpop.eup %4170 }
 0x511   : > { %v828_v34 = vmul.f32 %v4171_v32, %v4167_v23 }
 0x513   : > { %v830_v37 = vpack.c.bf16 %v828_v34, %v828_v34 }
 0x514   : > { %v4173_v39 = vpop.eup %4172 }
 0x515   : > { %3785 = vmatmul.mubr.msk.bf16.vlgmr.msra.gmra.mxu1 %vm713_vm6, %v830_v37  ;;  %v829_v41 = vmul.f32 %v4173_v39, %v4169_v25 }
 0x516   : > { %3795 = vmatpush3.bf16.xpose.msra.mxu1 %v939_v40  ;;  %3796 = vmatprep.mubr.msk.bf16.mxu1 %vm4492_vm1, %v4491_v15 }
 0x517   : > { %v831_v43 = vpack.c.bf16 %v829_v41, %v829_v41  ;;  %3806 = vmatprep.subr.bf16.mxu1 %v4491_v15 }
 0x519   : > { %3791 = vmatmul.mubr.msk.bf16.vlgmr.msra.gmra.mxu0 %vm713_vm6, %v831_v43 }
 0x51a   : > { %3801 = vmatpush3.bf16.xpose.msra.mxu0 %v989_v44  ;;  %3802 = vmatprep.mubr.msk.bf16.mxu0 %vm4492_vm1, %v4491_v15 }
 0x51b   : > { %3812 = vmatprep.subr.bf16.mxu0 %v4491_v15 }
 0x51d   : > { %3797 = vmatmul.mubr.msk.bf16.vlgmr.msra.gmra.mxu1 %vm713_vm6, %v932_v45 }
 0x51e   : > { %3808 = vmatprep.mubr.msk.bf16.mxu1 %vm4492_vm1, %v4491_v15 }
 0x521   : > { %3803 = vmatmul.mubr.msk.bf16.vlgmr.msra.gmra.mxu0 %vm713_vm6, %v982_v46 }
 0x522   : > { %3814 = vmatprep.mubr.msk.bf16.mxu0 %vm4492_vm1, %v4491_v15 }
 0x5d5   : > { %v875_v47 = vpop.f32.mrf.mxu1 }
 0x5d6   : > { %929 = vst.msk [vmem:[#allocation2] sm:$0xff] %vm713_vm6, %v875_v47 }
 0x5d7   : > { %v3786_v48 = vpop.f32.mrf.mxu1 }
 0x5d9   : > { %v878_v49 = vpop.f32.mrf.mxu1  ;;  %v923_v50 = vpop.f32.mrf.mxu0 }
 0x5da   : > { %930 = vst.msk [vmem:[#allocation2 + $0x8] sm:$0xff] %vm713_vm6, %v923_v50 }
 0x5db   : > { %v3787_v51 = vpop.f32.mrf.mxu1  ;;  %v3792_v52 = vpop.f32.mrf.mxu0 }
 0x5dd   : > { %v926_v54 = vpop.f32.mrf.mxu0  ;;  %v975_v55 = vpop.f32.mrf.mxu1 }
 0x5de   : > { %v976_v56 = vadd.f32 %v4862_v62, %v975_v55 }
 0x5df   : > { %v3793_v58 = vpop.f32.mrf.mxu0  ;;  %v3798_v59 = vpop.f32.mrf.mxu1 }
 0x5e0   : > { %v1031_v60 = vsel %vm713_vm6, %v976_v56, -inf }
 0x5e1   : > { %1032 = vmax.xlane.f32.xlu0 %v1031_v60  ;;  %v978_v61 = vpop.f32.mrf.mxu1  ;;  %v1025_v63 = vpop.f32.mrf.mxu0 }
 0x5e2   : > { %v1026_v2 = vadd.f32 %v4866_v4, %v1025_v63 }
 0x5e3   : > { %v3799_v3 = vpop.f32.mrf.mxu1  ;;  %v3804_v5 = vpop.f32.mrf.mxu0 }
 0x5e4   : > { %v1034_v6 = vsel %vm713_vm6, %v1026_v2, -inf }
 0x5e5   : > { %1035 = vmax.xlane.f32.xlu1 %v1034_v6  ;;  %v1028_v7 = vpop.f32.mrf.mxu0 }
 0x5e7   : > { %v3805_v8 = vpop.f32.mrf.mxu0 }
 0x5f6   : > { %1103 = vrot.lane.b32.xlu1 %v4845_v57, %s4497_s4 }
 0x5fa   : > { %1164 = vrot.lane.b32.xlu1 %v4841_v53, %s4498_s16 }
 0x5fe   : > { %1214 = vrot.lane.b32.xlu1 %v4845_v57, %s4498_s16 }
 0x602   : > { %1212 = vrot.lane.b32.xlu1 %v4845_v57, %s4499_s13 }
 0x66a   : > { %v1033_v9 = vpop.xlane.xlu0 %1032 }
 0x66b   : > { %v1037_v10 = vsub.f32 %v976_v56, %v1033_v9 }
 0x66d   : > { %v1039_v11 = vmul.f32 1.442695, %v1037_v10 }
 0x66e   : > { %v1036_v12 = vpop.xlane.xlu1 %1035 }
 0x66f   : > { %4174 = vpow2.f32 %v1039_v11  ;;  %v1038_v13 = vsub.f32 %v1026_v2, %v1036_v12 }
 0x671   : > { %v1041_v14 = vmul.f32 1.442695, %v1038_v13 }
 0x672   : > { %v1104_v16 = vpop.permute.xlu1 %1103 }
 0x673   : > { %4176 = vpow2.f32 %v1041_v14  ;;  %v1109_v17 = vsel %vm837_vm7, %v1104_v16, 0 }
 0x674   : > { %3813 = vmatpush3.bf16.msra.mxu0 %v1109_v17 }
 0x675   : > { %3824 = vmatprep.subr.bf16.mxu0 %v4491_v15 }
 0x676   : > { %v1165_v27 = vpop.permute.xlu1 %1164 }
 0x677   : > { %v1170_v31 = vsel %vm713_vm6, %v1165_v27, 0 }
 0x67a   : > { %v1215_v34 = vpop.permute.xlu1 %1214 }
 0x67b   : > { %v1220_v39 = vsel %vm713_vm6, %v1215_v34, 0 }
 0x67c   : > { %v4175_v18 = vpop.eup %4174 }
 0x67d   : > { %v1043_v19 = vsel %vm713_vm6, %v4175_v18, 0.0 }
 0x67e   : > { %1044 = vadd.xlane.f32.xlu0 %v1043_v19  ;;  %v1213_v41 = vpop.permute.xlu1 %1212 }
 0x680   : > { %v4177_v20 = vpop.eup %4176 }
 0x681   : > { %v1046_v21 = vsel %vm713_vm6, %v4177_v20, 0.0 }
 0x682   : > { %1047 = vadd.xlane.f32.xlu0 %v1046_v21 }
 0x698   : > { %1055 = vrot.lane.b32.xlu0 %v4841_v53, %s4497_s4 }
 0x69c   : > { %1162 = vrot.lane.b32.xlu0 %v4841_v53, %s4499_s13 }
 0x707   : > { %v1045_v22 = vpop.xlane.xlu0 %1044 }
 0x708   : > { %4178 = vrcp.f32 %v1045_v22 }
 0x70b   : > { %v1048_v23 = vpop.xlane.xlu0 %1047 }
 0x70c   : > { %4180 = vrcp.f32 %v1048_v23 }
 0x70f   : > { %v1056_v24 = vpop.permute.xlu0 %1055 }
 0x710   : > { %v1061_v25 = vsel %vm837_vm7, %v1056_v24, 0 }
 0x711   : > { %3807 = vmatpush3.bf16.msra.mxu1 %v1061_v25 }
 0x712   : > { %3818 = vmatprep.subr.bf16.mxu1 %v4491_v15 }
 0x713   : > { %v1163_v40 = vpop.permute.xlu0 %1162 }
 0x715   : > { %v4179_v26 = vpop.eup %4178 }
 0x716   : > { %v1051_v28 = vmul.f32 %v4179_v26, %v4175_v18 }
 0x718   : > { %v1053_v29 = vpack.c.bf16 %v1051_v28, %v1051_v28 }
 0x719   : > { %v4181_v30 = vpop.eup %4180 }
 0x71a   : > { %3809 = vmatmul.mubr.msk.bf16.vlgmr.msra.gmra.mxu1 %vm713_vm6, %v1053_v29  ;;  %v1052_v32 = vmul.f32 %v4181_v30, %v4177_v20 }
 0x71b   : > { %3819 = vmatpush3.bf16.xpose.msra.mxu1 %v1170_v31  ;;  %3820 = vmatprep.mubr.msk.bf16.mxu1 %vm4492_vm1, %v4491_v15 }
 0x71c   : > { %v1054_v37 = vpack.c.bf16 %v1052_v32, %v1052_v32  ;;  %3830 = vmatprep.subr.bf16.mxu1 %v4491_v15 }
 0x71e   : > { %3815 = vmatmul.mubr.msk.bf16.vlgmr.msra.gmra.mxu0 %vm713_vm6, %v1054_v37 }
 0x71f   : > { %3825 = vmatpush3.bf16.xpose.msra.mxu0 %v1220_v39  ;;  %3826 = vmatprep.mubr.msk.bf16.mxu0 %vm4492_vm1, %v4491_v15 }
 0x720   : > { %3836 = vmatprep.subr.bf16.mxu0 %v4491_v15 }
 0x722   : > { %3821 = vmatmul.mubr.msk.bf16.vlgmr.msra.gmra.mxu1 %vm713_vm6, %v1163_v40 }
 0x723   : > { %3832 = vmatprep.mubr.msk.bf16.mxu1 %vm4492_vm1, %v4491_v15 }
 0x726   : > { %3827 = vmatmul.mubr.msk.bf16.vlgmr.msra.gmra.mxu0 %vm713_vm6, %v1213_v41 }
 0x727   : > { %3838 = vmatprep.mubr.msk.bf16.mxu0 %vm4492_vm1, %v4491_v15 }
 0x7da   : > { %v4945_v42 = vpop.f32.mrf.mxu1 }
 0x7dc   : > { %v3810_v43 = vpop.f32.mrf.mxu1 }
 0x7de   : > { %v1100_v44 = vpop.f32.mrf.mxu1  ;;  %v4947_v45 = vpop.f32.mrf.mxu0 }
 0x7e0   : > { %v3811_v46 = vpop.f32.mrf.mxu1  ;;  %v3816_v47 = vpop.f32.mrf.mxu0 }
 0x7e2   : > { %v1148_v48 = vpop.f32.mrf.mxu0  ;;  %v1206_v49 = vpop.f32.mrf.mxu1 }
 0x7e3   : > { %v1207_v50 = vadd.f32 %v4862_v62, %v1206_v49 }
 0x7e4   : > { %v3817_v51 = vpop.f32.mrf.mxu0  ;;  %v3822_v52 = vpop.f32.mrf.mxu1 }
 0x7e5   : > { %v1262_v54 = vsel %vm713_vm6, %v1207_v50, -inf }
 0x7e6   : > { %1263 = vmax.xlane.f32.xlu0 %v1262_v54  ;;  %v1209_v55 = vpop.f32.mrf.mxu1  ;;  %v1256_v56 = vpop.f32.mrf.mxu0 }
 0x7e7   : > { %v1257_v58 = vadd.f32 %v4866_v4, %v1256_v56 }
 0x7e8   : > { %v3823_v59 = vpop.f32.mrf.mxu1  ;;  %v3828_v60 = vpop.f32.mrf.mxu0 }
 0x7e9   : > { %v1265_v61 = vsel %vm713_vm6, %v1257_v58, -inf }
 0x7ea   : > { %1266 = vmax.xlane.f32.xlu1 %v1265_v61  ;;  %v1259_v63 = vpop.f32.mrf.mxu0 }
 0x7ec   : > { %v3829_v2 = vpop.f32.mrf.mxu0 }
 0x7fb   : > { %1334 = vrot.lane.b32.xlu1 %v4845_v57, %s4500_s25 }
 0x7ff   : > { %1395 = vrot.lane.b32.xlu1 %v4841_v53, %s4501_s14 }
 0x803   : > { %1445 = vrot.lane.b32.xlu1 %v4845_v57, %s4501_s14 }
 0x807   : > { %1443 = vrot.lane.b32.xlu1 %v4845_v57, %s4502_s24 }
 0x86f   : > { %v1264_v3 = vpop.xlane.xlu0 %1263 }
 0x870   : > { %v1268_v5 = vsub.f32 %v1207_v50, %v1264_v3 }
 0x872   : > { %v1270_v6 = vmul.f32 1.442695, %v1268_v5 }
 0x873   : > { %v1267_v7 = vpop.xlane.xlu1 %1266 }
 0x874   : > { %4182 = vpow2.f32 %v1270_v6  ;;  %v1269_v8 = vsub.f32 %v1257_v58, %v1267_v7 }
 0x876   : > { %v1272_v9 = vmul.f32 1.442695, %v1269_v8 }
 0x877   : > { %v1335_v10 = vpop.permute.xlu1 %1334 }
 0x878   : > { %4184 = vpow2.f32 %v1272_v9  ;;  %v1340_v11 = vsel %vm837_vm7, %v1335_v10, 0 }
 0x879   : > { %3837 = vmatpush3.bf16.msra.mxu0 %v1340_v11 }
 0x87a   : > { %3848 = vmatprep.subr.bf16.mxu0 %v4491_v15 }
 0x87b   : > { %v1396_v22 = vpop.permute.xlu1 %1395 }
 0x87c   : > { %v1401_v26 = vsel %vm713_vm6, %v1396_v22, 0  ;;  %v4138_v22 = vld [vmem:[%s5448_s5 + $0x8] sm:$0xff]  }
 0x87f   : > { %v1446_v28 = vpop.permute.xlu1 %1445 }
 0x880   : > { %v1451_v30 = vsel %vm713_vm6, %v1446_v28, 0 }
 0x881   : > { %v4183_v12 = vpop.eup %4182 }
 0x882   : > { %v1274_v13 = vsel %vm713_vm6, %v4183_v12, 0.0 }
 0x883   : > { %1275 = vadd.xlane.f32.xlu0 %v1274_v13  ;;  %v1444_v32 = vpop.permute.xlu1 %1443 }
 0x885   : > { %v4185_v14 = vpop.eup %4184 }
 0x886   : > { %v1277_v16 = vsel %vm713_vm6, %v4185_v14, 0.0 }
 0x887   : > { %1278 = vadd.xlane.f32.xlu0 %v1277_v16 }
 0x89d   : > { %1286 = vrot.lane.b32.xlu0 %v4841_v53, %s4500_s25 }
 0x8a1   : > { %1393 = vrot.lane.b32.xlu0 %v4841_v53, %s4502_s24 }
 0x90c   : > { %v1276_v17 = vpop.xlane.xlu0 %1275 }
 0x90d   : > { %4186 = vrcp.f32 %v1276_v17 }
 0x910   : > { %v1279_v18 = vpop.xlane.xlu0 %1278 }
 0x911   : > { %4188 = vrcp.f32 %v1279_v18 }
 0x914   : > { %v1287_v19 = vpop.permute.xlu0 %1286 }
 0x915   : > { %v1292_v20 = vsel %vm837_vm7, %v1287_v19, 0 }
 0x916   : > { %3831 = vmatpush3.bf16.msra.mxu1 %v1292_v20 }
 0x917   : > { %3842 = vmatprep.subr.bf16.mxu1 %v4491_v15 }
 0x918   : > { %v1394_v31 = vpop.permute.xlu0 %1393 }
 0x91a   : > { %v4187_v21 = vpop.eup %4186 }
 0x91b   : > { %v1282_v23 = vmul.f32 %v4187_v21, %v4183_v12 }
 0x91d   : > { %v1284_v24 = vpack.c.bf16 %v1282_v23, %v1282_v23  ;;  %v4139_v23 = vld [vmem:[%s5448_s5] sm:$0xff]  }
 0x91e   : > { %v4189_v25 = vpop.eup %4188 }
 0x91f   : > { %3833 = vmatmul.mubr.msk.bf16.vlgmr.msra.gmra.mxu1 %vm713_vm6, %v1284_v24  ;;  %v1283_v27 = vmul.f32 %v4189_v25, %v4185_v14 }
 0x920   : > { %3843 = vmatpush3.bf16.xpose.msra.mxu1 %v1401_v26  ;;  %3844 = vmatprep.mubr.msk.bf16.mxu1 %vm4492_vm1, %v4491_v15 }
 0x921   : > { %v1285_v29 = vpack.c.bf16 %v1283_v27, %v1283_v27  ;;  %3854 = vmatprep.subr.bf16.mxu1 %v4491_v15 }
 0x923   : > { %3839 = vmatmul.mubr.msk.bf16.vlgmr.msra.gmra.mxu0 %vm713_vm6, %v1285_v29 }
 0x924   : > { %3849 = vmatpush3.bf16.xpose.msra.mxu0 %v1451_v30  ;;  %3850 = vmatprep.mubr.msk.bf16.mxu0 %vm4492_vm1, %v4491_v15 }
 0x925   : > { %3860 = vmatprep.subr.bf16.mxu0 %v4491_v15 }
 0x927   : > { %3845 = vmatmul.mubr.msk.bf16.vlgmr.msra.gmra.mxu1 %vm713_vm6, %v1394_v31 }
 0x928   : > { %3856 = vmatprep.mubr.msk.bf16.mxu1 %vm4492_vm1, %v4491_v15 }
 0x92b   : > { %3851 = vmatmul.mubr.msk.bf16.vlgmr.msra.gmra.mxu0 %vm713_vm6, %v1444_v32 }
 0x92c   : > { %3862 = vmatprep.mubr.msk.bf16.mxu0 %vm4492_vm1, %v4491_v15 }
 0x9df   : > { %v1328_v34 = vpop.f32.mrf.mxu1 }
 0x9e1   : > { %v3834_v37 = vpop.f32.mrf.mxu1 }
 0x9e3   : > { %v1331_v39 = vpop.f32.mrf.mxu1  ;;  %v1376_v40 = vpop.f32.mrf.mxu0 }
 0x9e5   : > { %v3835_v41 = vpop.f32.mrf.mxu1  ;;  %v3840_v43 = vpop.f32.mrf.mxu0 }
 0x9e6   : > { %v1691_v41 = vsub.s32 2, %v4822_v33 }
 0x9e7   : > { %v1379_v44 = vpop.f32.mrf.mxu0  ;;  %v1437_v46 = vpop.f32.mrf.mxu1 }
 0x9e8   : > { %v1438_v47 = vadd.f32 %v4862_v62, %v1437_v46  ;;  %v1692_v43 = vrot.slane %v4830_v36, %v1691_v41 }
 0x9e9   : > { %v3841_v48 = vpop.f32.mrf.mxu0  ;;  %v3846_v49 = vpop.f32.mrf.mxu1 }
 0x9ea   : > { %v1493_v50 = vsel %vm713_vm6, %v1438_v47, -inf }
 0x9eb   : > { %1494 = vmax.xlane.f32.xlu0 %v1493_v50  ;;  %v1440_v51 = vpop.f32.mrf.mxu1  ;;  %v1487_v52 = vpop.f32.mrf.mxu0 }
 0x9ec   : > { %v1488_v54 = vadd.f32 %v4866_v4, %v1487_v52 }
 0x9ed   : > { %v3847_v55 = vpop.f32.mrf.mxu1  ;;  %v3852_v56 = vpop.f32.mrf.mxu0 }
 0x9ee   : > { %v1496_v58 = vsel %vm713_vm6, %v1488_v54, -inf }
 0x9ef   : > { %1497 = vmax.xlane.f32.xlu1 %v1496_v58  ;;  %v1490_v59 = vpop.f32.mrf.mxu0 }
 0x9f1   : > { %v3853_v60 = vpop.f32.mrf.mxu0 }
 0xa00   : > { %1565 = vrot.lane.b32.xlu1 %v4845_v57, %s4503_s19 }
 0xa04   : > { %1153 = vrot.lane.b32.xlu1 %v4945_v42, %s5476_s8 }
 0xa08   : > { %1155 = vrot.lane.b32.xlu1 %v4947_v45, %s5476_s8 }
 0xa0c   : > { %1386 = vrot.lane.b32.xlu1 %v1376_v40, %s5472_s10 }
 0xa74   : > { %v1495_v62 = vpop.xlane.xlu0 %1494 }
 0xa75   : > { %v1499_v4 = vsub.f32 %v1438_v47, %v1495_v62 }
 0xa77   : > { %v1501_v61 = vmul.f32 1.442695, %v1499_v4 }
 0xa78   : > { %v1498_v63 = vpop.xlane.xlu1 %1497 }
 0xa79   : > { %4190 = vpow2.f32 %v1501_v61  ;;  %v1500_v2 = vsub.f32 %v1488_v54, %v1498_v63 }
 0xa7b   : > { %v1503_v3 = vmul.f32 1.442695, %v1500_v2  ;;  %v4140_v2 = vld [vmem:[%s5450_s7 + $0x8] sm:$0xff]  }
 0xa7c   : > { %v1566_v5 = vpop.permute.xlu1 %1565 }
 0xa7d   : > { %4192 = vpow2.f32 %v1503_v3  ;;  %v1571_v57 = vsel %vm837_vm7, %v1566_v5, 0  ;;  %v4141_v3 = vld [vmem:[%s5450_s7] sm:$0xff]   ;;  %v4142_v5 = vld [vmem:[%s5452_s9 + $0x18] sm:$0xff]  }
 0xa7e   : > { %3861 = vmatpush3.bf16.msra.mxu0 %v1571_v57 }
 0xa7f   : > { %3874 = vmatprep.subr.bf16.mxu0 %v4491_v15 }
 0xa80   : > { %v1154_v42 = vpop.permute.xlu1 %1153 }
 0xa81   : > { %1160 = vst.msk [vmem:[#allocation2] sm:$0xff] %vm1159_vm8, %v1154_v42 }
 0xa84   : > { %v1156_v45 = vpop.permute.xlu1 %1155 }
 0xa85   : > { %1161 = vst.msk [vmem:[#allocation2 + $0x8] sm:$0xff] %vm1159_vm8, %v1156_v45 }
 0xa86   : > { %v4191_v6 = vpop.eup %4190 }
 0xa87   : > { %v1505_v7 = vsel %vm713_vm6, %v4191_v6, 0.0 }
 0xa88   : > { %1506 = vadd.xlane.f32.xlu0 %v1505_v7  ;;  %v1387_v8 = vpop.permute.xlu1 %1386 }
 0xa89   : > { %1392 = vst.msk [vmem:[#allocation2 + $0x8] sm:$0xff] %vm1390_vm9, %v1387_v8 }
 0xa8a   : > { %v4193_v9 = vpop.eup %4192 }
 0xa8b   : > { %v1508_v10 = vsel %vm713_vm6, %v4193_v9, 0.0 }
 0xa8c   : > { %1509 = vadd.xlane.f32.xlu0 %v1508_v10 }
 0xaa2   : > { %1517 = vrot.lane.b32.xlu0 %v4841_v53, %s4503_s19 }
 0xaa6   : > { %1384 = vrot.lane.b32.xlu0 %v1328_v34, %s5472_s10  ;;  %s5474_s10 = smov 24  }
 0xb11   : > { %v1507_v11 = vpop.xlane.xlu0 %1506 }
 0xb12   : > { %4194 = vrcp.f32 %v1507_v11 }
 0xb15   : > { %v1510_v12 = vpop.xlane.xlu0 %1509 }
 0xb16   : > { %4196 = vrcp.f32 %v1510_v12 }
 0xb19   : > { %v1518_v13 = vpop.permute.xlu0 %1517 }
 0xb1a   : > { %v1523_v14 = vsel %vm837_vm7, %v1518_v13, 0 }
 0xb1b   : > { %3855 = vmatpush3.bf16.msra.mxu1 %v1523_v14 }
 0xb1c   : > { %3866 = vmatprep.subr.bf16.mxu1 %v4491_v15 }
 0xb1d   : > { %v1385_v16 = vpop.permute.xlu0 %1384 }
 0xb1e   : > { %1391 = vst.msk [vmem:[#allocation2] sm:$0xff] %vm1390_vm9, %v1385_v16 }
 0xb1f   : > { %v4195_v17 = vpop.eup %4194 }
 0xb20   : > { %v1513_v18 = vmul.f32 %v4195_v17, %v4191_v6 }
 0xb22   : > { %v1515_v19 = vpack.c.bf16 %v1513_v18, %v1513_v18 }
 0xb23   : > { %v4197_v20 = vpop.eup %4196 }
 0xb24   : > { %3857 = vmatmul.mubr.msk.bf16.vlgmr.msra.gmra.mxu1 %vm713_vm6, %v1515_v19  ;;  %v1514_v53 = vmul.f32 %v4197_v20, %v4193_v9  ;;  %v1735_v20 = vsub.s32 3, %v4822_v33 }
 0xb25   : > { %3870 = vmatprep.mubr.msk.bf16.mxu1 %vm4492_vm1, %v4491_v15  ;;  %3867 = vmatpush3.bf16.msra.mxu1 %v4138_v22 }
 0xb26   : > { %v1516_v21 = vpack.c.bf16 %v1514_v53, %v1514_v53  ;;  %3868 = vmatprep.subr.bf16.mxu1 %v4491_v15  ;;  %v1736_v53 = vrot.slane %v4830_v36, %v1735_v20 }
 0xb28   : > { %3863 = vmatmul.mubr.msk.bf16.vlgmr.msra.gmra.mxu0 %vm713_vm6, %v1516_v21  ;;  %v1743_v21 = vsub.s32 4, %v4822_v33 }
 0xb29   : > { %3878 = vmatprep.mubr.msk.bf16.mxu0 %vm4492_vm1, %v4491_v15  ;;  %3869 = vmatpush3.bf16.msra.mxu1 %v4139_v23 }
 0xb2a   : > { %3882 = vmatprep.subr.bf16.mxu1 %v4491_v15  ;;  %3875 = vmatpush3.bf16.msra.mxu0 %v4140_v2 }
 0xb2b   : > { %3876 = vmatprep.subr.bf16.mxu0 %v4491_v15 }
 0xb2e   : > { %3877 = vmatpush3.bf16.msra.mxu0 %v4141_v3 }
 0xb2f   : > { %3894 = vmatprep.subr.bf16.mxu0 %v4491_v15 }
 0xbe4   : > { %v1559_v24 = vpop.f32.mrf.mxu1 }
 0xbe5   : > { %1615 = vrot.lane.b32.xlu0 %v1559_v24, %s5474_s10 }
 0xbe6   : > { %v3858_v25 = vpop.f32.mrf.mxu1 }
 0xbe8   : > { %v1562_v26 = vpop.f32.mrf.mxu1  ;;  %v1607_v27 = vpop.f32.mrf.mxu0 }
 0xbe9   : > { %1617 = vrot.lane.b32.xlu1 %v1607_v27, %s5474_s10  ;;  %v1744_v26 = vrot.slane %v4830_v36, %v1743_v21 }
 0xbea   : > { %v3859_v28 = vpop.f32.mrf.mxu1  ;;  %v3864_v29 = vpop.f32.mrf.mxu0 }
 0xbec   : > { %v1610_v30 = vpop.f32.mrf.mxu0 }
 0xbee   : > { %v3865_v31 = vpop.f32.mrf.mxu0 }
 0xc57   : > { %v1616_v32 = vpop.permute.xlu0 %1615 }
 0xc58   : > { %1622 = vst.msk [vmem:[#allocation2] sm:$0xff] %vm1621_vm10, %v1616_v32  ;;  %v4143_v32 = vld [vmem:[%s5452_s9 + $0x10] sm:$0xff]  }
 0xc5b   : > { %v1618_v34 = vpop.permute.xlu1 %1617 }
 0xc5c   : > { %1623 = vst.msk [vmem:[#allocation2 + $0x8] sm:$0xff] %vm1621_vm10, %v1618_v34  ;;  %v4144_v34 = vld [vmem:[%s5452_s9 + $0x8] sm:$0xff]  }
 0xc5f   : > { %v1624_v37 = vld [vmem:[#allocation2] sm:$0xff] }
 0xc63   : > { %v1625_v39 = vld [vmem:[#allocation2 + $0x8] sm:$0xff] }
 0xc64   : > { %v1626_v40 = vpack.c.bf16 %v1625_v39, %v1624_v37  ;;  %v4145_v37 = vld [vmem:[%s5452_s9] sm:$0xff]   ;;  %v3585_v39 = vld [vmem:[#allocation9] ss:$0 sm:$0xff] }
 0xc66   : > { %3871 = vmatmul.mubr.msk.bf16.vlgmr.msra.gmra.mxu1 %vm571_vm0, %v1626_v40 }
 0xc67   : > { %3890 = vmatprep.mubr.msk.bf16.mxu1 %vm4492_vm1, %v4491_v15  ;;  %3883 = vmatpush3.bf16.msra.mxu1 %v4142_v5 }
 0xc68   : > { %3884 = vmatprep.subr.bf16.mxu1 %v4491_v15 }
 0xc6b   : > { %3885 = vmatpush3.bf16.msra.mxu1 %v4143_v32 }
 0xc6c   : > { %3886 = vmatprep.subr.bf16.mxu1 %v4491_v15 }
 0xc6f   : > { %3887 = vmatpush3.bf16.msra.mxu1 %v4144_v34 }
 0xc70   : > { %3888 = vmatprep.subr.bf16.mxu1 %v4491_v15 }
 0xc73   : > { %3889 = vmatpush3.bf16.msra.mxu1 %v4145_v37 }
 0xc74   : > { %3908 = vmatprep.subr.bf16.mxu1 %v4491_v15 }
 0xd26   : > { %v1680_v44 = vpop.f32.mrf.mxu1 }
 0xd27   : > { %v1687_v46 = vadd.f32 %v1680_v44, %v4796_v0 }
 0xd28   : > { %v3872_v47 = vpop.f32.mrf.mxu1 }
 0xd29   : > { %v5037_v48 = vadd.f32 %v1692_v43, %v1687_v46 }
 0xd2a   : > { %v1683_v49 = vpop.f32.mrf.mxu1 }
 0xd2b   : > { %v1688_v50 = vadd.f32 %v1683_v49, %v4798_v1  ;;  %v1695_v51 = vsel %vm571_vm0, %v5037_v48, 0.0 }
 0xd2c   : > { %1696 = vadd.xlane.f32.xlu0 %v1695_v51  ;;  %v3873_v52 = vpop.f32.mrf.mxu1 }
 0xd2d   : > { %v5042_v54 = vadd.f32 %v1692_v43, %v1688_v50 }
 0xd2f   : > { %v1698_v55 = vsel %vm571_vm0, %v5042_v54, 0.0 }
 0xd30   : > { %1699 = vadd.xlane.f32.xlu1 %v1698_v55  ;;  %v1899_v55 = vsub.s32 5, %v4822_v33 }
 0xdb5   : > { %v1697_v56 = vpop.xlane.xlu0 %1696 }
 0xdb6   : > { %v1701_v58 = vmul.f32 0.03125, %v1697_v56  ;;  %v1900_v56 = vrot.slane %v4830_v36, %v1899_v55 }
 0xdb8   : > { %v1703_v0 = vsub.f32 %v5037_v48, %v1701_v58 }
 0xdb9   : > { %v1700_v59 = vpop.xlane.xlu1 %1699 }
 0xdba   : > { %v1702_v60 = vmul.f32 0.03125, %v1700_v59  ;;  %v1705_v62 = vmul.f32 %v1703_v0, %v1703_v0  ;;  %v1737_v23 = vmul.f32 %v1736_v53, %v1703_v0 }
 0xdbc   : > { %v1704_v1 = vsub.f32 %v5042_v54, %v1702_v60  ;;  %v1707_v4 = vsel %vm571_vm0, %v1705_v62, 0.0 }
 0xdbd   : > { %1708 = vadd.xlane.f32.xlu0 %v1707_v4 }
 0xdbe   : > { %v1706_v61 = vmul.f32 %v1704_v1, %v1704_v1  ;;  %v1738_v24 = vmul.f32 %v1736_v53, %v1704_v1 }
 0xdc0   : > { %v1710_v63 = vsel %vm571_vm0, %v1706_v61, 0.0 }
 0xdc1   : > { %1711 = vadd.xlane.f32.xlu0 %v1710_v63 }
 0xe46   : > { %v1709_v57 = vpop.xlane.xlu0 %1708 }
 0xe47   : > { %v1713_v42 = vmul.f32 0.032258064, %v1709_v57 }
 0xe49   : > { %4198 = vrsqrt.f32 %v1713_v42  ;;  %vm1717_vm11 = vcmp.eq.f32.partialorder %v1713_v42, inf  ;;  %v1720_v9 = vand.u32 2147483648, %v1713_v42  ;;  %vm1719_vm12 = vcmp.eq.f32.partialorder %v1713_v42, 0.0 }
 0xe4a   : > { %v1712_v45 = vpop.xlane.xlu0 %1711 }
 0xe4b   : > { %v1714_v6 = vmul.f32 0.032258064, %v1712_v45 }
 0xe4d   : > { %4200 = vrsqrt.f32 %v1714_v6  ;;  %vm1724_vm13 = vcmp.eq.f32.partialorder %v1714_v6, inf  ;;  %v1727_v16 = vand.u32 2147483648, %v1714_v6  ;;  %vm1726_vm14 = vcmp.eq.f32.partialorder %v1714_v6, 0.0 }
 0xe56   : > { %v4199_v7 = vpop.eup %4198 }
 0xe57   : > { %v1716_v8 = vmul.f32 %v4199_v7, %v1713_v42 }
 0xe59   : > { %v1718_v10 = vsel %vm1717_vm11, %v1713_v42, %v1716_v8  ;;  %v4146_v8 = vld [vmem:[%s5446_s3 + $0x18] sm:$0xff]  }
 0xe5a   : > { %v4201_v11 = vpop.eup %4200  ;;  %v1721_v12 = vsel %vm1719_vm12, %v1720_v9, %v1718_v10  ;;  %v4147_v9 = vld [vmem:[%s5446_s3 + $0x10] sm:$0xff]  }
 0xe5b   : > { %v1729_v13 = vadd.f32 1e-06, %v1721_v12  ;;  %v1723_v14 = vmul.f32 %v4201_v11, %v1714_v6 }
 0xe5d   : > { %4202 = vrcp.f32 %v1729_v13  ;;  %v1725_v17 = vsel %vm1724_vm13, %v1714_v6, %v1723_v14 }
 0xe5e   : > { %v1728_v18 = vsel %vm1726_vm14, %v1727_v16, %v1725_v17 }
 0xe5f   : > { %v1730_v19 = vadd.f32 1e-06, %v1728_v18 }
 0xe61   : > { %4204 = vrcp.f32 %v1730_v19 }
 0xe6a   : > { %v4203_v22 = vpop.eup %4202 }
 0xe6b   : > { %v1739_v25 = vmul.f32 %v4203_v22, %v1737_v23 }
 0xe6d   : > { %v1745_v29 = vadd.f32 %v1744_v26, %v1739_v25 }
 0xe6e   : > { %v4205_v27 = vpop.eup %4204 }
 0xe6f   : > { %v1740_v28 = vmul.f32 %v4205_v27, %v1738_v24 }
 0xe71   : > { %v1746_v30 = vadd.f32 %v1744_v26, %v1740_v28  ;;  %v5117_v28 = vld [vmem:[%s5449_s6 + $0x8] sm:$0x3f] }
 0xe73   : > { %v1747_v31 = vpack.c.bf16 %v1746_v30, %v1745_v29  ;;  %v1946_v29 = vrot.slane %v5117_v28, %v4825_v35  ;;  %v1954_v30 = vrot.slane %v5117_v28, %v621_v38 }
 0xe75   : > { %3879 = vmatmul.mubr.msk.bf16.vlgmr.msra.gmra.mxu0 %vm571_vm0, %v1747_v31 }
 0xe76   : > { %3898 = vmatprep.mubr.msk.bf16.mxu0 %vm4492_vm1, %v4491_v15  ;;  %3895 = vmatpush3.bf16.msra.mxu0 %v4146_v8 }
 0xe77   : > { %3896 = vmatprep.subr.bf16.mxu0 %v4491_v15 }
 0xe7a   : > { %3897 = vmatpush3.bf16.msra.mxu0 %v4147_v9 }
 0xe7b   : > { %3902 = vmatprep.subr.bf16.mxu0 %v4491_v15 }
 0xf35   : > { %v1808_v40 = vpop.f32.mrf.mxu0 }
 0xf36   : > { %v1809_v44 = vadd.f32 %v3585_v39, %v1808_v40 }
 0xf37   : > { %v3880_v43 = vpop.f32.mrf.mxu0 }
 0xf38   : > { %v1815_v50 = vmax.f32 %v1809_v44, 0.0 }
 0xf39   : > { %v1811_v46 = vpop.f32.mrf.mxu0 }
 0xf3a   : > { %v1812_v47 = vadd.f32 %v3585_v39, %v1811_v46 }
 0xf3b   : > { %v3881_v49 = vpop.f32.mrf.mxu0 }
 0xf3c   : > { %v1816_v51 = vmax.f32 %v1812_v47, 0.0  ;;  %v3599_v47 = vld [vmem:[#allocation8 + $0x1] ss:$0 sm:$0xff] }
 0xf3e   : > { %v1817_v52 = vpack.c.bf16 %v1816_v51, %v1815_v50 }
 0xf40   : > { %3891 = vmatmul.mubr.msk.bf16.vlgmr.msra.gmra.mxu1 %vm1850_vm15, %v1817_v52 }
 0xf41   : > { %3910 = vmatprep.mubr.msk.bf16.mxu1 %vm4492_vm1, %v4491_v15 }
0x1000   : > { %v1888_v58 = vpop.f32.mrf.mxu1 }
0x1001   : > { %v1895_v0 = vadd.f32 %v1888_v58, %v5037_v48 }
0x1002   : > { %v3892_v59 = vpop.f32.mrf.mxu1 }
0x1003   : > { %v5093_v60 = vadd.f32 %v1900_v56, %v1895_v0 }
0x1004   : > { %v1891_v62 = vpop.f32.mrf.mxu1 }
0x1005   : > { %v1896_v1 = vadd.f32 %v1891_v62, %v5042_v54  ;;  %v1905_v4 = vsel %vm571_vm0, %v5093_v60, 0.0 }
0x1006   : > { %1906 = vadd.xlane.f32.xlu0 %v1905_v4  ;;  %v3893_v61 = vpop.f32.mrf.mxu1 }
0x1007   : > { %v5098_v63 = vadd.f32 %v1900_v56, %v1896_v1 }
0x1009   : > { %v1908_v2 = vsel %vm571_vm0, %v5098_v63, 0.0 }
0x100a   : > { %1909 = vadd.xlane.f32.xlu1 %v1908_v2  ;;  %v5148_v2 = vld [vmem:[%s4771_s15] ss:$0 sm:$0xff] }
0x108f   : > { %v1907_v36 = vpop.xlane.xlu0 %1906 }
0x1090   : > { %v1911_v3 = vmul.f32 0.03125, %v1907_v36 }
0x1092   : > { %v1913_v48 = vsub.f32 %v5093_v60, %v1911_v3 }
0x1093   : > { %v1910_v5 = vpop.xlane.xlu1 %1909 }
0x1094   : > { %v1912_v57 = vmul.f32 0.03125, %v1910_v5  ;;  %v1915_v42 = vmul.f32 %v1913_v48, %v1913_v48  ;;  %v1947_v31 = vmul.f32 %v1946_v29, %v1913_v48 }
0x1096   : > { %v1914_v54 = vsub.f32 %v5098_v63, %v1912_v57  ;;  %v1917_v45 = vsel %vm571_vm0, %v1915_v42, 0.0  ;;  %v5153_v42 = vld [vmem:[%s4771_s15 + $0x1] ss:$0 sm:$0xff]  ;;  %s5507_s15 = smov 8  }
0x1097   : > { %1918 = vadd.xlane.f32.xlu0 %v1917_v45 }
0x1098   : > { %v1916_v6 = vmul.f32 %v1914_v54, %v1914_v54  ;;  %v1948_v37 = vmul.f32 %v1946_v29, %v1914_v54 }
0x109a   : > { %v1920_v7 = vsel %vm571_vm0, %v1916_v6, 0.0 }
0x109b   : > { %1921 = vadd.xlane.f32.xlu1 %v1920_v7 }
0x1120   : > { %v1919_v10 = vpop.xlane.xlu0 %1918 }
0x1121   : > { %v1923_v11 = vmul.f32 0.032258064, %v1919_v10 }
0x1123   : > { %4206 = vrsqrt.f32 %v1923_v11  ;;  %vm1927_vm2 = vcmp.eq.f32.partialorder %v1923_v11, inf  ;;  %v1930_v17 = vand.u32 2147483648, %v1923_v11  ;;  %vm1929_vm3 = vcmp.eq.f32.partialorder %v1923_v11, 0.0 }
0x1124   : > { %v1922_v12 = vpop.xlane.xlu1 %1921 }
0x1125   : > { %v1924_v13 = vmul.f32 0.032258064, %v1922_v12 }
0x1127   : > { %4208 = vrsqrt.f32 %v1924_v13  ;;  %vm1934_vm4 = vcmp.eq.f32.partialorder %v1924_v13, inf  ;;  %v1937_v24 = vand.u32 2147483648, %v1924_v13  ;;  %vm1936_vm5 = vcmp.eq.f32.partialorder %v1924_v13, 0.0 }
0x1130   : > { %v4207_v14 = vpop.eup %4206 }
0x1131   : > { %v1926_v16 = vmul.f32 %v4207_v14, %v1923_v11 }
0x1133   : > { %v1928_v18 = vsel %vm1927_vm2, %v1923_v11, %v1926_v16 }
0x1134   : > { %v4209_v19 = vpop.eup %4208  ;;  %v1931_v53 = vsel %vm1929_vm3, %v1930_v17, %v1928_v18 }
0x1135   : > { %v1939_v22 = vadd.f32 1e-06, %v1931_v53  ;;  %v1933_v23 = vmul.f32 %v4209_v19, %v1924_v13 }
0x1137   : > { %4210 = vrcp.f32 %v1939_v22  ;;  %v1935_v25 = vsel %vm1934_vm4, %v1924_v13, %v1933_v23 }
0x1138   : > { %v1938_v26 = vsel %vm1936_vm5, %v1937_v24, %v1935_v25 }
0x1139   : > { %v1940_v27 = vadd.f32 1e-06, %v1938_v26 }
0x113b   : > { %4212 = vrcp.f32 %v1940_v27 }
0x1144   : > { %v4211_v32 = vpop.eup %4210 }
0x1145   : > { %v1949_v34 = vmul.f32 %v4211_v32, %v1947_v31 }
0x1147   : > { %v1955_v39 = vadd.f32 %v1954_v30, %v1949_v34 }
0x1148   : > { %v4213_v40 = vpop.eup %4212 }
0x1149   : > { %v1950_v43 = vmul.f32 %v4213_v40, %v1948_v37 }
0x114b   : > { %v1956_v44 = vadd.f32 %v1954_v30, %v1950_v43 }
0x114d   : > { %v1957_v46 = vpack.c.bf16 %v1956_v44, %v1955_v39 }
0x114f   : > { %3899 = vmatmul.mubr.msk.bf16.vlgmr.msra.gmra.mxu0 %vm571_vm0, %v1957_v46 }
0x1150   : > { %3904 = vmatprep.mubr.msk.bf16.mxu0 %vm4492_vm1, %v4491_v15 }
0x120f   : > { %v2020_v49 = vpop.f32.mrf.mxu0 }
0x1210   : > { %v2021_v50 = vadd.f32 %v3599_v47, %v2020_v49 }
0x1211   : > { %v3900_v51 = vpop.f32.mrf.mxu0 }
0x1212   : > { %v5127_v52 = vpack.c.bf16 %v2021_v50, %v2021_v50 }
0x1213   : > { %v2023_v38 = vpop.f32.mrf.mxu0 }
0x1214   : > { %v2024_v56 = vadd.f32 %v3599_v47, %v2023_v38  ;;  %2033 = vrot.lane.b32.xlu0 %v5127_v52, %s4493_s21 }
0x1215   : > { %v3901_v58 = vpop.f32.mrf.mxu0 }
0x1216   : > { %v5131_v0 = vpack.c.bf16 %v2024_v56, %v2024_v56 }
0x1218   : > { %2081 = vrot.lane.b32.xlu1 %v5131_v0, %s4493_s21  ;;  %s5508_s21 = smov 16  }
0x1286   : > { %v2034_v59 = vpop.permute.xlu0 %2033 }
0x1287   : > { %v2039_v62 = vsel %vm713_vm6, %v2034_v59, 0 }
0x1288   : > { %3903 = vmatpush3.bf16.xpose.msra.mxu0 %v2039_v62 }
0x1289   : > { %3914 = vmatprep.subr.bf16.mxu0 %v4491_v15 }
0x128a   : > { %v2082_v1 = vpop.permute.xlu1 %2081 }
0x128b   : > { %v2087_v4 = vsel %vm713_vm6, %v2082_v1, 0 }
0x128c   : > { %3909 = vmatpush3.bf16.xpose.msra.mxu1 %v2087_v4 }
0x128d   : > { %3920 = vmatprep.subr.bf16.mxu1 %v4491_v15 }
0x128f   : > { %3905 = vmatmul.mubr.msk.bf16.vlgmr.msra.gmra.mxu0 %vm713_vm6, %v5127_v52 }
0x1290   : > { %3916 = vmatprep.mubr.msk.bf16.mxu0 %vm4492_vm1, %v4491_v15 }
0x1293   : > { %3911 = vmatmul.mubr.msk.bf16.vlgmr.msra.gmra.mxu1 %vm713_vm6, %v5131_v0 }
0x1294   : > { %3922 = vmatprep.mubr.msk.bf16.mxu1 %vm4492_vm1, %v4491_v15 }
0x134f   : > { %v2075_v61 = vpop.f32.mrf.mxu0 }
0x1350   : > { %v2076_v36 = vadd.f32 %v5148_v2, %v2075_v61 }
0x1351   : > { %v3906_v3 = vpop.f32.mrf.mxu0 }
0x1352   : > { %v2129_v48 = vsel %vm713_vm6, %v2076_v36, -inf }
0x1353   : > { %v2123_v5 = vpop.f32.mrf.mxu1  ;;  %2130 = vmax.xlane.f32.xlu1 %v2129_v48  ;;  %v2078_v57 = vpop.f32.mrf.mxu0 }
0x1354   : > { %v2124_v54 = vadd.f32 %v5153_v42, %v2123_v5 }
0x1355   : > { %v3907_v45 = vpop.f32.mrf.mxu0  ;;  %v3912_v6 = vpop.f32.mrf.mxu1 }
0x1356   : > { %v2132_v7 = vsel %vm713_vm6, %v2124_v54, -inf }
0x1357   : > { %2133 = vmax.xlane.f32.xlu0 %v2132_v7  ;;  %v2126_v8 = vpop.f32.mrf.mxu1 }
0x1359   : > { %v3913_v9 = vpop.f32.mrf.mxu1 }
0x1364   : > { %2201 = vrot.lane.b32.xlu1 %v5131_v0, %s4494_s20 }
0x1368   : > { %2253 = vrot.lane.b32.xlu1 %v5127_v52, %s4495_s12 }
0x13dc   : > { %v2131_v10 = vpop.xlane.xlu1 %2130 }
0x13dd   : > { %v2135_v11 = vsub.f32 %v2076_v36, %v2131_v10 }
0x13df   : > { %v2137_v12 = vmul.f32 1.442695, %v2135_v11 }
0x13e0   : > { %v2134_v13 = vpop.xlane.xlu0 %2133  ;;  %v2202_v14 = vpop.permute.xlu1 %2201 }
0x13e1   : > { %4214 = vpow2.f32 %v2137_v12  ;;  %v2136_v16 = vsub.f32 %v2124_v54, %v2134_v13  ;;  %v2207_v17 = vsel %vm837_vm7, %v2202_v14, 0 }
0x13e2   : > { %3921 = vmatpush3.bf16.msra.mxu1 %v2207_v17 }
0x13e3   : > { %v2139_v18 = vmul.f32 1.442695, %v2136_v16  ;;  %3932 = vmatprep.subr.bf16.mxu1 %v4491_v15 }
0x13e4   : > { %v2254_v24 = vpop.permute.xlu1 %2253 }
0x13e5   : > { %4216 = vpow2.f32 %v2139_v18  ;;  %v2259_v37 = vsel %vm713_vm6, %v2254_v24, 0 }
0x13ee   : > { %v4215_v19 = vpop.eup %4214 }
0x13ef   : > { %v2141_v53 = vsel %vm713_vm6, %v4215_v19, 0.0 }
0x13f0   : > { %2142 = vadd.xlane.f32.xlu0 %v2141_v53 }
0x13f2   : > { %v4217_v22 = vpop.eup %4216 }
0x13f3   : > { %v2144_v23 = vsel %vm713_vm6, %v4217_v22, 0.0 }
0x13f4   : > { %2145 = vadd.xlane.f32.xlu1 %v2144_v23 }
0x1405   : > { %2303 = vrot.lane.b32.xlu1 %v5131_v0, %s4495_s12 }
0x1406   : > { %2153 = vrot.lane.b32.xlu0 %v5127_v52, %s4494_s20 }
0x1409   : > { %2301 = vrot.lane.b32.xlu1 %v5131_v0, %s4496_s22 }
0x140a   : > { %2251 = vrot.lane.b32.xlu0 %v5127_v52, %s4496_s22 }
0x1479   : > { %v2143_v25 = vpop.xlane.xlu0 %2142 }
0x147a   : > { %4218 = vrcp.f32 %v2143_v25 }
0x147d   : > { %v2154_v26 = vpop.permute.xlu0 %2153  ;;  %v2146_v27 = vpop.xlane.xlu1 %2145 }
0x147e   : > { %v2159_v29 = vsel %vm837_vm7, %v2154_v26, 0  ;;  %4220 = vrcp.f32 %v2146_v27 }
0x147f   : > { %3915 = vmatpush3.bf16.msra.mxu0 %v2159_v29 }
0x1480   : > { %3926 = vmatprep.subr.bf16.mxu0 %v4491_v15 }
0x1481   : > { %v2304_v40 = vpop.permute.xlu1 %2303  ;;  %v2252_v46 = vpop.permute.xlu0 %2251 }
0x1482   : > { %v2309_v44 = vsel %vm713_vm6, %v2304_v40, 0 }
0x1485   : > { %v2302_v47 = vpop.permute.xlu1 %2301 }
0x1487   : > { %v4219_v30 = vpop.eup %4218 }
0x1488   : > { %v2149_v31 = vmul.f32 %v4219_v30, %v4215_v19 }
0x148a   : > { %v2151_v32 = vpack.c.bf16 %v2149_v31, %v2149_v31 }
0x148b   : > { %v4221_v34 = vpop.eup %4220 }
0x148c   : > { %3917 = vmatmul.mubr.msk.bf16.vlgmr.msra.gmra.mxu0 %vm713_vm6, %v2151_v32  ;;  %v2150_v39 = vmul.f32 %v4221_v34, %v4217_v22 }
0x148d   : > { %3927 = vmatpush3.bf16.xpose.msra.mxu0 %v2259_v37  ;;  %3928 = vmatprep.mubr.msk.bf16.mxu0 %vm4492_vm1, %v4491_v15 }
0x148e   : > { %v2152_v43 = vpack.c.bf16 %v2150_v39, %v2150_v39  ;;  %3938 = vmatprep.subr.bf16.mxu0 %v4491_v15 }
0x1490   : > { %3923 = vmatmul.mubr.msk.bf16.vlgmr.msra.gmra.mxu1 %vm713_vm6, %v2152_v43 }
0x1491   : > { %3933 = vmatpush3.bf16.xpose.msra.mxu1 %v2309_v44  ;;  %3934 = vmatprep.mubr.msk.bf16.mxu1 %vm4492_vm1, %v4491_v15 }
0x1492   : > { %3944 = vmatprep.subr.bf16.mxu1 %v4491_v15 }
0x1494   : > { %3929 = vmatmul.mubr.msk.bf16.vlgmr.msra.gmra.mxu0 %vm713_vm6, %v2252_v46 }
0x1495   : > { %3940 = vmatprep.mubr.msk.bf16.mxu0 %vm4492_vm1, %v4491_v15 }
0x1498   : > { %3935 = vmatmul.mubr.msk.bf16.vlgmr.msra.gmra.mxu1 %vm713_vm6, %v2302_v47 }
0x1499   : > { %3946 = vmatprep.mubr.msk.bf16.mxu1 %vm4492_vm1, %v4491_v15 }
0x154c   : > { %v2195_v49 = vpop.f32.mrf.mxu0 }
0x154d   : > { %2249 = vst.msk [vmem:[#allocation2] sm:$0xff] %vm713_vm6, %v2195_v49 }
0x154e   : > { %v3918_v50 = vpop.f32.mrf.mxu0 }
0x1550   : > { %v2198_v51 = vpop.f32.mrf.mxu0  ;;  %v2243_v38 = vpop.f32.mrf.mxu1 }
0x1551   : > { %2250 = vst.msk [vmem:[#allocation2 + $0x8] sm:$0xff] %vm713_vm6, %v2243_v38 }
0x1552   : > { %v3919_v56 = vpop.f32.mrf.mxu0  ;;  %v3924_v58 = vpop.f32.mrf.mxu1 }
0x1554   : > { %v2246_v59 = vpop.f32.mrf.mxu1  ;;  %v2295_v62 = vpop.f32.mrf.mxu0 }
0x1555   : > { %v2296_v1 = vadd.f32 %v5148_v2, %v2295_v62 }
0x1556   : > { %v3925_v4 = vpop.f32.mrf.mxu1  ;;  %v3930_v61 = vpop.f32.mrf.mxu0 }
0x1557   : > { %v2351_v36 = vsel %vm713_vm6, %v2296_v1, -inf }
0x1558   : > { %v2345_v3 = vpop.f32.mrf.mxu1  ;;  %2352 = vmax.xlane.f32.xlu0 %v2351_v36  ;;  %v2298_v48 = vpop.f32.mrf.mxu0 }
0x1559   : > { %v2346_v5 = vadd.f32 %v5153_v42, %v2345_v3 }
0x155a   : > { %v3931_v57 = vpop.f32.mrf.mxu0  ;;  %v3936_v54 = vpop.f32.mrf.mxu1 }
0x155b   : > { %v2354_v45 = vsel %vm713_vm6, %v2346_v5, -inf }
0x155c   : > { %2355 = vmax.xlane.f32.xlu1 %v2354_v45  ;;  %v2348_v6 = vpop.f32.mrf.mxu1 }
0x155e   : > { %v3937_v7 = vpop.f32.mrf.mxu1 }
0x156d   : > { %2423 = vrot.lane.b32.xlu1 %v5131_v0, %s4497_s4 }
0x1571   : > { %2483 = vrot.lane.b32.xlu1 %v5127_v52, %s4498_s16 }
0x1575   : > { %2533 = vrot.lane.b32.xlu1 %v5131_v0, %s4498_s16  ;;  %s5509_s16 = smov 24  }
0x1579   : > { %2531 = vrot.lane.b32.xlu1 %v5131_v0, %s4499_s13 }
0x15e1   : > { %v2353_v8 = vpop.xlane.xlu0 %2352 }
0x15e2   : > { %v2357_v9 = vsub.f32 %v2296_v1, %v2353_v8 }
0x15e4   : > { %v2359_v10 = vmul.f32 1.442695, %v2357_v9 }
0x15e5   : > { %v2356_v11 = vpop.xlane.xlu1 %2355 }
0x15e6   : > { %4222 = vpow2.f32 %v2359_v10  ;;  %v2358_v12 = vsub.f32 %v2346_v5, %v2356_v11 }
0x15e8   : > { %v2361_v13 = vmul.f32 1.442695, %v2358_v12 }
0x15e9   : > { %v2424_v14 = vpop.permute.xlu1 %2423 }
0x15ea   : > { %4224 = vpow2.f32 %v2361_v13  ;;  %v2429_v16 = vsel %vm837_vm7, %v2424_v14, 0 }
0x15eb   : > { %3945 = vmatpush3.bf16.msra.mxu1 %v2429_v16 }
0x15ec   : > { %3956 = vmatprep.subr.bf16.mxu1 %v4491_v15 }
0x15ed   : > { %v2484_v27 = vpop.permute.xlu1 %2483 }
0x15ee   : > { %v2489_v32 = vsel %vm713_vm6, %v2484_v27, 0 }
0x15f1   : > { %v2534_v37 = vpop.permute.xlu1 %2533 }
0x15f2   : > { %v2539_v40 = vsel %vm713_vm6, %v2534_v37, 0 }
0x15f3   : > { %v4223_v17 = vpop.eup %4222 }
0x15f4   : > { %v2363_v18 = vsel %vm713_vm6, %v4223_v17, 0.0 }
0x15f5   : > { %2364 = vadd.xlane.f32.xlu0 %v2363_v18  ;;  %v2532_v44 = vpop.permute.xlu1 %2531 }
0x15f7   : > { %v4225_v19 = vpop.eup %4224 }
0x15f8   : > { %v2366_v53 = vsel %vm713_vm6, %v4225_v19, 0.0 }
0x15f9   : > { %2367 = vadd.xlane.f32.xlu0 %v2366_v53 }
0x160f   : > { %2375 = vrot.lane.b32.xlu0 %v5127_v52, %s4497_s4 }
0x1613   : > { %2481 = vrot.lane.b32.xlu0 %v5127_v52, %s4499_s13 }
0x167e   : > { %v2365_v22 = vpop.xlane.xlu0 %2364 }
0x167f   : > { %4226 = vrcp.f32 %v2365_v22 }
0x1682   : > { %v2368_v23 = vpop.xlane.xlu0 %2367 }
0x1683   : > { %4228 = vrcp.f32 %v2368_v23 }
0x1686   : > { %v2376_v24 = vpop.permute.xlu0 %2375 }
0x1687   : > { %v2381_v25 = vsel %vm837_vm7, %v2376_v24, 0 }
0x1688   : > { %3939 = vmatpush3.bf16.msra.mxu0 %v2381_v25 }
0x1689   : > { %3950 = vmatprep.subr.bf16.mxu0 %v4491_v15 }
0x168a   : > { %v2482_v43 = vpop.permute.xlu0 %2481 }
0x168c   : > { %v4227_v26 = vpop.eup %4226 }
0x168d   : > { %v2371_v29 = vmul.f32 %v4227_v26, %v4223_v17 }
0x168f   : > { %v2373_v30 = vpack.c.bf16 %v2371_v29, %v2371_v29 }
0x1690   : > { %v4229_v31 = vpop.eup %4228 }
0x1691   : > { %3941 = vmatmul.mubr.msk.bf16.vlgmr.msra.gmra.mxu0 %vm713_vm6, %v2373_v30  ;;  %v2372_v34 = vmul.f32 %v4229_v31, %v4225_v19 }
0x1692   : > { %3951 = vmatpush3.bf16.xpose.msra.mxu0 %v2489_v32  ;;  %3952 = vmatprep.mubr.msk.bf16.mxu0 %vm4492_vm1, %v4491_v15 }
0x1693   : > { %v2374_v39 = vpack.c.bf16 %v2372_v34, %v2372_v34  ;;  %3962 = vmatprep.subr.bf16.mxu0 %v4491_v15 }
0x1695   : > { %3947 = vmatmul.mubr.msk.bf16.vlgmr.msra.gmra.mxu1 %vm713_vm6, %v2374_v39 }
0x1696   : > { %3957 = vmatpush3.bf16.xpose.msra.mxu1 %v2539_v40  ;;  %3958 = vmatprep.mubr.msk.bf16.mxu1 %vm4492_vm1, %v4491_v15 }
0x1697   : > { %3968 = vmatprep.subr.bf16.mxu1 %v4491_v15 }
0x1699   : > { %3953 = vmatmul.mubr.msk.bf16.vlgmr.msra.gmra.mxu0 %vm713_vm6, %v2482_v43 }
0x169a   : > { %3964 = vmatprep.mubr.msk.bf16.mxu0 %vm4492_vm1, %v4491_v15 }
0x169d   : > { %3959 = vmatmul.mubr.msk.bf16.vlgmr.msra.gmra.mxu1 %vm713_vm6, %v2532_v44 }
0x169e   : > { %3970 = vmatprep.mubr.msk.bf16.mxu1 %vm4492_vm1, %v4491_v15 }
0x1751   : > { %v5231_v46 = vpop.f32.mrf.mxu0 }
0x1753   : > { %v3942_v47 = vpop.f32.mrf.mxu0 }
0x1755   : > { %v2420_v49 = vpop.f32.mrf.mxu0  ;;  %v5233_v50 = vpop.f32.mrf.mxu1 }
0x1757   : > { %v3943_v51 = vpop.f32.mrf.mxu0  ;;  %v3948_v38 = vpop.f32.mrf.mxu1 }
0x1759   : > { %v2468_v56 = vpop.f32.mrf.mxu1  ;;  %v2525_v58 = vpop.f32.mrf.mxu0 }
0x175a   : > { %v2526_v59 = vadd.f32 %v5148_v2, %v2525_v58 }
0x175b   : > { %v3949_v62 = vpop.f32.mrf.mxu1  ;;  %v3954_v1 = vpop.f32.mrf.mxu0 }
0x175c   : > { %v2581_v4 = vsel %vm713_vm6, %v2526_v59, -inf }
0x175d   : > { %v2575_v61 = vpop.f32.mrf.mxu1  ;;  %2582 = vmax.xlane.f32.xlu0 %v2581_v4  ;;  %v2528_v36 = vpop.f32.mrf.mxu0 }
0x175e   : > { %v2576_v3 = vadd.f32 %v5153_v42, %v2575_v61 }
0x175f   : > { %v3955_v48 = vpop.f32.mrf.mxu0  ;;  %v3960_v5 = vpop.f32.mrf.mxu1 }
0x1760   : > { %v2584_v57 = vsel %vm713_vm6, %v2576_v3, -inf }
0x1761   : > { %2585 = vmax.xlane.f32.xlu1 %v2584_v57  ;;  %v2578_v54 = vpop.f32.mrf.mxu1 }
0x1763   : > { %v3961_v45 = vpop.f32.mrf.mxu1 }
0x1772   : > { %2653 = vrot.lane.b32.xlu1 %v5131_v0, %s4500_s25 }
0x1776   : > { %2713 = vrot.lane.b32.xlu1 %v5127_v52, %s4501_s14 }
0x177a   : > { %2763 = vrot.lane.b32.xlu1 %v5131_v0, %s4501_s14  ;;  %s5511_s14 = sld [smem:[#allocation23_spill]] }
0x177e   : > { %2761 = vrot.lane.b32.xlu1 %v5131_v0, %s4502_s24 }
0x1780   : > { %p5513_p0 = scmp.ne.s32.totalorder %s5511_s14, 0 }
0x17e6   : > { %v2583_v6 = vpop.xlane.xlu0 %2582 }
0x17e7   : > { %v2587_v7 = vsub.f32 %v2526_v59, %v2583_v6 }
0x17e9   : > { %v2589_v8 = vmul.f32 1.442695, %v2587_v7 }
0x17ea   : > { %v2586_v9 = vpop.xlane.xlu1 %2585 }
0x17eb   : > { %4230 = vpow2.f32 %v2589_v8  ;;  %v2588_v10 = vsub.f32 %v2576_v3, %v2586_v9 }
0x17ed   : > { %v2591_v11 = vmul.f32 1.442695, %v2588_v10 }
0x17ee   : > { %v2654_v12 = vpop.permute.xlu1 %2653 }
0x17ef   : > { %4232 = vpow2.f32 %v2591_v11  ;;  %v2659_v13 = vsel %vm837_vm7, %v2654_v12, 0 }
0x17f0   : > { %3969 = vmatpush3.bf16.msra.mxu1 %v2659_v13 }
0x17f1   : > { %3980 = vmatprep.subr.bf16.mxu1 %v4491_v15 }
0x17f2   : > { %v2714_v25 = vpop.permute.xlu1 %2713 }
0x17f3   : > { %v2719_v30 = vsel %vm713_vm6, %v2714_v25, 0 }
0x17f6   : > { %v2764_v32 = vpop.permute.xlu1 %2763 }
0x17f7   : > { %v2769_v37 = vsel %vm713_vm6, %v2764_v32, 0 }
0x17f8   : > { %v4231_v14 = vpop.eup %4230 }
0x17f9   : > { %v2593_v16 = vsel %vm713_vm6, %v4231_v14, 0.0 }
0x17fa   : > { %2594 = vadd.xlane.f32.xlu0 %v2593_v16  ;;  %v2762_v40 = vpop.permute.xlu1 %2761 }
0x17fc   : > { %v4233_v17 = vpop.eup %4232 }
0x17fd   : > { %v2596_v18 = vsel %vm713_vm6, %v4233_v17, 0.0 }
0x17fe   : > { %2597 = vadd.xlane.f32.xlu0 %v2596_v18 }
0x1814   : > { %2605 = vrot.lane.b32.xlu0 %v5127_v52, %s4500_s25  ;;  %s5510_s25 = sld [smem:[#allocation28_spill]] }
0x1818   : > { %2711 = vrot.lane.b32.xlu0 %v5127_v52, %s4502_s24  ;;  %s3666_s24 = sshll.u32 %s4601_s29, 8  ;;  %s4508_s29 = smov [#allocation12]  }
0x1819   : > { %s5397_s17 = scalar_lea.hbm %s5512_s18, %s3666_s24  ;;  %s4410_s20 = sshll.u32 %s4508_s29, 4  ;;  %s4411_s20 = int_to_ptr.vmem [resolvable:$false] %s4410_s20 }
0x181a   : > { %s4412_s12 = scalar_lea.vmem %s4411_s20, 512 }
0x1883   : > { %v2595_v19 = vpop.xlane.xlu0 %2594 }
0x1884   : > { %4234 = vrcp.f32 %v2595_v19 }
0x1887   : > { %v2598_v53 = vpop.xlane.xlu0 %2597 }
0x1888   : > { %4236 = vrcp.f32 %v2598_v53 }
0x188b   : > { %v2606_v22 = vpop.permute.xlu0 %2605 }
0x188c   : > { %v2611_v23 = vsel %vm837_vm7, %v2606_v22, 0 }
0x188d   : > { %3963 = vmatpush3.bf16.msra.mxu0 %v2611_v23 }
0x188e   : > { %3974 = vmatprep.subr.bf16.mxu0 %v4491_v15 }
0x188f   : > { %v2712_v39 = vpop.permute.xlu0 %2711 }
0x1891   : > { %v4235_v24 = vpop.eup %4234 }
0x1892   : > { %v2601_v26 = vmul.f32 %v4235_v24, %v4231_v14 }
0x1894   : > { %v2603_v27 = vpack.c.bf16 %v2601_v26, %v2601_v26 }
0x1895   : > { %v4237_v29 = vpop.eup %4236 }
0x1896   : > { %3965 = vmatmul.mubr.msk.bf16.vlgmr.msra.gmra.mxu0 %vm713_vm6, %v2603_v27  ;;  %v2602_v31 = vmul.f32 %v4237_v29, %v4233_v17  ;;  %v4148_v29 = vld [vmem:[%s5448_s5 + $0x18] sm:$0xff]  }
0x1897   : > { %3975 = vmatpush3.bf16.xpose.msra.mxu0 %v2719_v30  ;;  %3976 = vmatprep.mubr.msk.bf16.mxu0 %vm4492_vm1, %v4491_v15  ;;  %v4149_v30 = vld [vmem:[%s5448_s5 + $0x10] sm:$0xff]  }
0x1898   : > { %v2604_v34 = vpack.c.bf16 %v2602_v31, %v2602_v31  ;;  %3986 = vmatprep.subr.bf16.mxu0 %v4491_v15 }
0x189a   : > { %3971 = vmatmul.mubr.msk.bf16.vlgmr.msra.gmra.mxu1 %vm713_vm6, %v2604_v34 }
0x189b   : > { %3981 = vmatpush3.bf16.xpose.msra.mxu1 %v2769_v37  ;;  %3982 = vmatprep.mubr.msk.bf16.mxu1 %vm4492_vm1, %v4491_v15 }
0x189c   : > { %3992 = vmatprep.subr.bf16.mxu1 %v4491_v15 }
0x189e   : > { %3977 = vmatmul.mubr.msk.bf16.vlgmr.msra.gmra.mxu0 %vm713_vm6, %v2712_v39 }
0x189f   : > { %3988 = vmatprep.mubr.msk.bf16.mxu0 %vm4492_vm1, %v4491_v15 }
0x18a2   : > { %3983 = vmatmul.mubr.msk.bf16.vlgmr.msra.gmra.mxu1 %vm713_vm6, %v2762_v40 }
0x18a3   : > { %3994 = vmatprep.mubr.msk.bf16.mxu1 %vm4492_vm1, %v4491_v15 }
0x1956   : > { %v2647_v43 = vpop.f32.mrf.mxu0 }
0x1958   : > { %v3966_v44 = vpop.f32.mrf.mxu0 }
0x195a   : > { %v2650_v47 = vpop.f32.mrf.mxu0  ;;  %v2695_v49 = vpop.f32.mrf.mxu1 }
0x195c   : > { %v3967_v51 = vpop.f32.mrf.mxu0  ;;  %v3972_v38 = vpop.f32.mrf.mxu1 }
0x195e   : > { %v2698_v56 = vpop.f32.mrf.mxu1  ;;  %v2755_v58 = vpop.f32.mrf.mxu0 }
0x195f   : > { %v2756_v59 = vadd.f32 %v5148_v2, %v2755_v58  ;;  %v3010_v58 = vrot.slane %v5117_v28, %v1691_v41 }
0x1960   : > { %v3973_v62 = vpop.f32.mrf.mxu1  ;;  %v3978_v1 = vpop.f32.mrf.mxu0 }
0x1961   : > { %v2811_v4 = vsel %vm713_vm6, %v2756_v59, -inf }
0x1962   : > { %v2805_v61 = vpop.f32.mrf.mxu1  ;;  %2812 = vmax.xlane.f32.xlu0 %v2811_v4  ;;  %v2758_v36 = vpop.f32.mrf.mxu0 }
0x1963   : > { %v2806_v3 = vadd.f32 %v5153_v42, %v2805_v61 }
0x1964   : > { %v3979_v48 = vpop.f32.mrf.mxu0  ;;  %v3984_v5 = vpop.f32.mrf.mxu1 }
0x1965   : > { %v2814_v57 = vsel %vm713_vm6, %v2806_v3, -inf }
0x1966   : > { %2815 = vmax.xlane.f32.xlu1 %v2814_v57  ;;  %v2808_v54 = vpop.f32.mrf.mxu1 }
0x1968   : > { %v3985_v45 = vpop.f32.mrf.mxu1 }
0x1977   : > { %2883 = vrot.lane.b32.xlu1 %v5131_v0, %s4503_s19 }
0x197b   : > { %2473 = vrot.lane.b32.xlu1 %v5231_v46, %s5507_s15 }
0x197f   : > { %2475 = vrot.lane.b32.xlu1 %v5233_v50, %s5507_s15 }
0x1983   : > { %2705 = vrot.lane.b32.xlu1 %v2695_v49, %s5508_s21 }
0x19eb   : > { %v2813_v2 = vpop.xlane.xlu0 %2812 }
0x19ec   : > { %v2817_v42 = vsub.f32 %v2756_v59, %v2813_v2 }
0x19ee   : > { %v2819_v6 = vmul.f32 1.442695, %v2817_v42 }
0x19ef   : > { %v2816_v7 = vpop.xlane.xlu1 %2815 }
0x19f0   : > { %4238 = vpow2.f32 %v2819_v6  ;;  %v2818_v8 = vsub.f32 %v2806_v3, %v2816_v7 }
0x19f2   : > { %v2821_v9 = vmul.f32 1.442695, %v2818_v8 }
0x19f3   : > { %v2884_v10 = vpop.permute.xlu1 %2883 }
0x19f4   : > { %4240 = vpow2.f32 %v2821_v9  ;;  %v2889_v11 = vsel %vm837_vm7, %v2884_v10, 0  ;;  %v4150_v9 = vld [vmem:[%s5450_s7 + $0x18] sm:$0xff]   ;;  %v4151_v10 = vld [vmem:[%s5450_s7 + $0x10] sm:$0xff]  }
0x19f5   : > { %3993 = vmatpush3.bf16.msra.mxu1 %v2889_v11  ;;  %v4152_v11 = vld [vmem:[%s5452_s9 + $0x38] sm:$0xff]  }
0x19f6   : > { %4006 = vmatprep.subr.bf16.mxu1 %v4491_v15 }
0x19f7   : > { %v2474_v0 = vpop.permute.xlu1 %2473 }
0x19f8   : > { %2479 = vst.msk [vmem:[#allocation2] sm:$0xff] %vm1159_vm8, %v2474_v0 }
0x19fb   : > { %v2476_v46 = vpop.permute.xlu1 %2475 }
0x19fc   : > { %2480 = vst.msk [vmem:[#allocation2 + $0x8] sm:$0xff] %vm1159_vm8, %v2476_v46 }
0x19fd   : > { %v4239_v50 = vpop.eup %4238 }
0x19fe   : > { %v2823_v12 = vsel %vm713_vm6, %v4239_v50, 0.0 }
0x19ff   : > { %v2706_v13 = vpop.permute.xlu1 %2705  ;;  %2824 = vadd.xlane.f32.xlu0 %v2823_v12 }
0x1a00   : > { %2710 = vst.msk [vmem:[#allocation2 + $0x8] sm:$0xff] %vm1390_vm9, %v2706_v13 }
0x1a01   : > { %v4241_v14 = vpop.eup %4240 }
0x1a02   : > { %v2826_v16 = vsel %vm713_vm6, %v4241_v14, 0.0 }
0x1a03   : > { %2827 = vadd.xlane.f32.xlu0 %v2826_v16 }
0x1a19   : > { %2835 = vrot.lane.b32.xlu0 %v5127_v52, %s4503_s19 }
0x1a1d   : > { %2703 = vrot.lane.b32.xlu0 %v2647_v43, %s5508_s21 }
0x1a88   : > { %v2825_v17 = vpop.xlane.xlu0 %2824 }
0x1a89   : > { %4242 = vrcp.f32 %v2825_v17 }
0x1a8c   : > { %v2828_v18 = vpop.xlane.xlu0 %2827 }
0x1a8d   : > { %4244 = vrcp.f32 %v2828_v18 }
0x1a90   : > { %v2836_v19 = vpop.permute.xlu0 %2835 }
0x1a91   : > { %v2841_v53 = vsel %vm837_vm7, %v2836_v19, 0 }
0x1a92   : > { %3987 = vmatpush3.bf16.msra.mxu0 %v2841_v53 }
0x1a93   : > { %3998 = vmatprep.subr.bf16.mxu0 %v4491_v15 }
0x1a94   : > { %v2704_v22 = vpop.permute.xlu0 %2703 }
0x1a95   : > { %2709 = vst.msk [vmem:[#allocation2] sm:$0xff] %vm1390_vm9, %v2704_v22 }
0x1a96   : > { %v4243_v23 = vpop.eup %4242 }
0x1a97   : > { %v2831_v24 = vmul.f32 %v4243_v23, %v4239_v50 }
0x1a99   : > { %v2833_v25 = vpack.c.bf16 %v2831_v24, %v2831_v24 }
0x1a9a   : > { %v4245_v26 = vpop.eup %4244 }
0x1a9b   : > { %3989 = vmatmul.mubr.msk.bf16.vlgmr.msra.gmra.mxu0 %vm713_vm6, %v2833_v25  ;;  %v2832_v52 = vmul.f32 %v4245_v26, %v4241_v14 }
0x1a9c   : > { %4002 = vmatprep.mubr.msk.bf16.mxu0 %vm4492_vm1, %v4491_v15  ;;  %3999 = vmatpush3.bf16.msra.mxu0 %v4148_v29 }
0x1a9d   : > { %v2834_v27 = vpack.c.bf16 %v2832_v52, %v2832_v52  ;;  %4000 = vmatprep.subr.bf16.mxu0 %v4491_v15  ;;  %v3054_v52 = vrot.slane %v5117_v28, %v1735_v20  ;;  %v4153_v20 = vld [vmem:[%s5452_s9 + $0x30] sm:$0xff]  }
0x1a9f   : > { %3995 = vmatmul.mubr.msk.bf16.vlgmr.msra.gmra.mxu1 %vm713_vm6, %v2834_v27 }
0x1aa0   : > { %4010 = vmatprep.mubr.msk.bf16.mxu1 %vm4492_vm1, %v4491_v15  ;;  %4001 = vmatpush3.bf16.msra.mxu0 %v4149_v30 }
0x1aa1   : > { %4014 = vmatprep.subr.bf16.mxu0 %v4491_v15  ;;  %4007 = vmatpush3.bf16.msra.mxu1 %v4150_v9 }
0x1aa2   : > { %4008 = vmatprep.subr.bf16.mxu1 %v4491_v15 }
0x1aa5   : > { %4009 = vmatpush3.bf16.msra.mxu1 %v4151_v10 }
0x1aa6   : > { %4026 = vmatprep.subr.bf16.mxu1 %v4491_v15 }
0x1b5b   : > { %v2877_v31 = vpop.f32.mrf.mxu0 }
0x1b5c   : > { %2933 = vrot.lane.b32.xlu0 %v2877_v31, %s5509_s16 }
0x1b5d   : > { %v3990_v32 = vpop.f32.mrf.mxu0 }
0x1b5e   : > { %v3062_v32 = vrot.slane %v5117_v28, %v1743_v21  ;;  %v4154_v21 = vld [vmem:[%s5452_s9 + $0x28] sm:$0xff]  }
0x1b5f   : > { %v2880_v34 = vpop.f32.mrf.mxu0  ;;  %v2925_v37 = vpop.f32.mrf.mxu1 }
0x1b60   : > { %2935 = vrot.lane.b32.xlu1 %v2925_v37, %s5509_s16 }
0x1b61   : > { %v3991_v39 = vpop.f32.mrf.mxu0  ;;  %v3996_v40 = vpop.f32.mrf.mxu1 }
0x1b63   : > { %v2928_v43 = vpop.f32.mrf.mxu1 }
0x1b65   : > { %v3997_v44 = vpop.f32.mrf.mxu1 }
0x1b66   : > { %v4155_v44 = vld [vmem:[%s5452_s9 + $0x20] sm:$0xff]  }
0x1bce   : > { %v2934_v47 = vpop.permute.xlu0 %2933 }
0x1bcf   : > { %2939 = vst.msk [vmem:[#allocation2] sm:$0xff] %vm1621_vm10, %v2934_v47  ;;  %v3632_v47 = vld [vmem:[#allocation9 + $0x1] ss:$0 sm:$0xff] }
0x1bd2   : > { %v2936_v49 = vpop.permute.xlu1 %2935 }
0x1bd3   : > { %2940 = vst.msk [vmem:[#allocation2 + $0x8] sm:$0xff] %vm1621_vm10, %v2936_v49 }
0x1bd6   : > { %v2941_v51 = vld [vmem:[#allocation2] sm:$0xff] }
0x1bda   : > { %v2942_v38 = vld [vmem:[#allocation2 + $0x8] sm:$0xff] }
0x1bdb   : > { %v2943_v56 = vpack.c.bf16 %v2942_v38, %v2941_v51 }
0x1bdd   : > { %4003 = vmatmul.mubr.msk.bf16.vlgmr.msra.gmra.mxu0 %vm571_vm0, %v2943_v56 }
0x1bde   : > { %4022 = vmatprep.mubr.msk.bf16.mxu0 %vm4492_vm1, %v4491_v15  ;;  %4015 = vmatpush3.bf16.msra.mxu0 %v4152_v11  ;;  %v4156_v11 = vld [vmem:[%s5454_s11 + $0x8] sm:$0xff]  }
0x1bdf   : > { %4016 = vmatprep.subr.bf16.mxu0 %v4491_v15 }
0x1be2   : > { %4017 = vmatpush3.bf16.msra.mxu0 %v4153_v20  ;;  %v3345_v20 = vld [vmem:[%s4778_s30] sm:$0x1] }
0x1be3   : > { %4018 = vmatprep.subr.bf16.mxu0 %v4491_v15  ;;  %vm3347_vm13 = vcmp.gt.f32.partialorder %v3345_v20, 0.5 }
0x1be6   : > { %4019 = vmatpush3.bf16.msra.mxu0 %v4154_v21  ;;  %v3346_v21 = vld [vmem:[%s4778_s30 + $0x1] sm:$0x1]  ;;  %s3555_s30 = sshll.u32 %s4767_s1, 4 }
0x1be7   : > { %4020 = vmatprep.subr.bf16.mxu0 %v4491_v15  ;;  %vm3348_vm14 = vcmp.gt.f32.partialorder %v3346_v21, 0.5  ;;  %s555_s19 = scalar_lea.vmem [#allocation12], %s3555_s30 }
0x1be8   : > { %s3401_s8 = sshll.u32 %s555_s19, 4  ;;  %s5399_s8 = int_to_ptr.vmem [resolvable:$true] %s3401_s8 }
0x1be9   : > { %s4406_s21 = scalar_lea.vmem %s5399_s8, 256  ;;  %p4413_p1 = scmp.lt.s32.totalorder %s5399_s8, %s4411_s20 }
0x1bea   : > { %4021 = vmatpush3.bf16.msra.mxu0 %v4155_v44  ;;  %v4507_v44 = vmov 0   ;;  %p4407_p13 = scmp.ne.s32.totalorder %s5399_s8, %s4406_s21  ;;  %p4414_p4 = scmp.lt.s32.totalorder %s4412_s12, %s4406_s21 }
0x1bec   : > { %p4408_p2 = pnand %p4407_p13, %p5513_p0  ;;  %p4415_p6 = por %p4414_p4, %p4413_p1 }
0x1bee   : > { %p4409_p10 = pneg %p4408_p2 }
0x1bf0   : > { %p4416_p7 = pnand %p4415_p6, %p4409_p10 }
0x1c9d   : > { %v2998_v59 = vpop.f32.mrf.mxu0 }
0x1c9e   : > { %v3005_v62 = vadd.f32 %v2998_v59, %v5093_v60 }
0x1c9f   : > { %v4004_v1 = vpop.f32.mrf.mxu0 }
0x1ca0   : > { %v5322_v4 = vadd.f32 %v3010_v58, %v3005_v62 }
0x1ca1   : > { %v3001_v61 = vpop.f32.mrf.mxu0 }
0x1ca2   : > { %v3006_v36 = vadd.f32 %v3001_v61, %v5098_v63  ;;  %v3013_v3 = vsel %vm571_vm0, %v5322_v4, 0.0 }
0x1ca3   : > { %3014 = vadd.xlane.f32.xlu0 %v3013_v3  ;;  %v4005_v48 = vpop.f32.mrf.mxu0 }
0x1ca4   : > { %v5327_v5 = vadd.f32 %v3010_v58, %v3006_v36  ;;  %v3220_v36 = vrot.slane %v5117_v28, %v1899_v55 }
0x1ca6   : > { %v3016_v57 = vsel %vm571_vm0, %v5327_v5, 0.0 }
0x1ca7   : > { %3017 = vadd.xlane.f32.xlu1 %v3016_v57 }
0x1d2c   : > { %v3015_v41 = vpop.xlane.xlu0 %3014 }
0x1d2d   : > { %v3019_v54 = vmul.f32 0.03125, %v3015_v41 }
0x1d2f   : > { %v3021_v60 = vsub.f32 %v5322_v4, %v3019_v54 }
0x1d30   : > { %v3018_v45 = vpop.xlane.xlu1 %3017 }
0x1d31   : > { %v3020_v2 = vmul.f32 0.03125, %v3018_v45  ;;  %v3023_v42 = vmul.f32 %v3021_v60, %v3021_v60  ;;  %v3055_v29 = vmul.f32 %v3054_v52, %v3021_v60 }
0x1d33   : > { %v3022_v63 = vsub.f32 %v5327_v5, %v3020_v2  ;;  %v3025_v6 = vsel %vm571_vm0, %v3023_v42, 0.0 }
0x1d34   : > { %3026 = vadd.xlane.f32.xlu0 %v3025_v6 }
0x1d35   : > { %v3024_v7 = vmul.f32 %v3022_v63, %v3022_v63  ;;  %v3056_v30 = vmul.f32 %v3054_v52, %v3022_v63  ;;  %v3649_v52 = vld [vmem:[#allocation11] ss:$0 sm:$0xff] }
0x1d37   : > { %v3028_v8 = vsel %vm571_vm0, %v3024_v7, 0.0 }
0x1d38   : > { %3029 = vadd.xlane.f32.xlu0 %v3028_v8 }
0x1dbd   : > { %v3027_v0 = vpop.xlane.xlu0 %3026 }
0x1dbe   : > { %v3031_v46 = vmul.f32 0.032258064, %v3027_v0  ;;  %v4157_v0 = vld [vmem:[%s5454_s11] sm:$0xff]  }
0x1dc0   : > { %4246 = vrsqrt.f32 %v3031_v46  ;;  %vm3035_vm6 = vcmp.eq.f32.partialorder %v3031_v46, inf  ;;  %v3038_v16 = vand.u32 2147483648, %v3031_v46  ;;  %vm3037_vm7 = vcmp.eq.f32.partialorder %v3031_v46, 0.0 }
0x1dc1   : > { %v3030_v50 = vpop.xlane.xlu0 %3029 }
0x1dc2   : > { %v3032_v12 = vmul.f32 0.032258064, %v3030_v50 }
0x1dc4   : > { %4248 = vrsqrt.f32 %v3032_v12  ;;  %vm3042_vm8 = vcmp.eq.f32.partialorder %v3032_v12, inf  ;;  %v3045_v23 = vand.u32 2147483648, %v3032_v12  ;;  %vm3044_vm9 = vcmp.eq.f32.partialorder %v3032_v12, 0.0 }
0x1dcd   : > { %v4247_v13 = vpop.eup %4246 }
0x1dce   : > { %v3034_v14 = vmul.f32 %v4247_v13, %v3031_v46 }
0x1dd0   : > { %v3036_v17 = vsel %vm3035_vm6, %v3031_v46, %v3034_v14 }
0x1dd1   : > { %v4249_v18 = vpop.eup %4248  ;;  %v3039_v19 = vsel %vm3037_vm7, %v3038_v16, %v3036_v17 }
0x1dd2   : > { %v3047_v53 = vadd.f32 1e-06, %v3039_v19  ;;  %v3041_v22 = vmul.f32 %v4249_v18, %v3032_v12 }
0x1dd4   : > { %4250 = vrcp.f32 %v3047_v53  ;;  %v3043_v24 = vsel %vm3042_vm8, %v3032_v12, %v3041_v22 }
0x1dd5   : > { %v3046_v25 = vsel %vm3044_vm9, %v3045_v23, %v3043_v24 }
0x1dd6   : > { %v3048_v26 = vadd.f32 1e-06, %v3046_v25 }
0x1dd8   : > { %4252 = vrcp.f32 %v3048_v26 }
0x1de1   : > { %v4251_v27 = vpop.eup %4250 }
0x1de2   : > { %v3057_v31 = vmul.f32 %v4251_v27, %v3055_v29 }
0x1de4   : > { %v3063_v39 = vadd.f32 %v3062_v32, %v3057_v31 }
0x1de5   : > { %v4253_v34 = vpop.eup %4252 }
0x1de6   : > { %v3058_v37 = vmul.f32 %v4253_v34, %v3056_v30  ;;  %v3650_v34 = vld [vmem:[#allocation11 + $0x1] ss:$0 sm:$0xff] }
0x1de8   : > { %v3064_v40 = vadd.f32 %v3062_v32, %v3058_v37 }
0x1dea   : > { %v3065_v43 = vpack.c.bf16 %v3064_v40, %v3063_v39 }
0x1dec   : > { %4011 = vmatmul.mubr.msk.bf16.vlgmr.msra.gmra.mxu1 %vm571_vm0, %v3065_v43 }
0x1ded   : > { %4030 = vmatprep.mubr.msk.bf16.mxu1 %vm4492_vm1, %v4491_v15  ;;  %4027 = vmatpush3.bf16.msra.mxu1 %v4156_v11 }
0x1dee   : > { %4028 = vmatprep.subr.bf16.mxu1 %v4491_v15 }
0x1df1   : > { %4029 = vmatpush3.bf16.msra.mxu1 %v4157_v0 }
0x1eac   : > { %v3128_v49 = vpop.f32.mrf.mxu1 }
0x1ead   : > { %v3129_v38 = vadd.f32 %v3632_v47, %v3128_v49 }
0x1eae   : > { %v4012_v51 = vpop.f32.mrf.mxu1 }
0x1eaf   : > { %v3135_v62 = vmax.f32 %v3129_v38, 0.0  ;;  %v3350_v51 = vsel %vm3348_vm14, 1, %v4507_v44  ;;  %v3651_v38 = vld [vmem:[%s5510_s25] ss:$0 sm:$0xff] }
0x1eb0   : > { %v3131_v56 = vpop.f32.mrf.mxu1 }
0x1eb1   : > { %v3132_v58 = vadd.f32 %v3632_v47, %v3131_v56  ;;  %v3349_v47 = vsel %vm3347_vm13, 1, %v4507_v44 }
0x1eb2   : > { %v4013_v59 = vpop.f32.mrf.mxu1  ;;  %v3354_v49 = vrot.slane %v3349_v47, %v4825_v35 }
0x1eb3   : > { %v3136_v1 = vmax.f32 %v3132_v58, 0.0  ;;  %v3358_v58 = vrot.slane %v3350_v51, %v4825_v35 }
0x1eb5   : > { %v3137_v61 = vpack.c.bf16 %v3136_v1, %v3135_v62 }
0x1eb7   : > { %4023 = vmatmul.mubr.msk.bf16.vlgmr.msra.gmra.mxu0 %vm1850_vm15, %v3137_v61  ;;  %vm3359_vm15 = vcmp.eq.s32.totalorder %v3354_v49, 1 }
0x1f77   : > { %v3208_v3 = vpop.f32.mrf.mxu0 }
0x1f78   : > { %v3215_v48 = vadd.f32 %v3208_v3, %v5322_v4 }
0x1f79   : > { %v4024_v57 = vpop.f32.mrf.mxu0 }
0x1f7a   : > { %v3221_v41 = vadd.f32 %v3220_v36, %v3215_v48 }
0x1f7b   : > { %v3211_v54 = vpop.f32.mrf.mxu0 }
0x1f7c   : > { %v3216_v60 = vadd.f32 %v3211_v54, %v5327_v5  ;;  %v3225_v45 = vsel %vm571_vm0, %v3221_v41, 0.0 }
0x1f7d   : > { %3226 = vadd.xlane.f32.xlu0 %v3225_v45  ;;  %v4025_v2 = vpop.f32.mrf.mxu0 }
0x1f7e   : > { %v3222_v42 = vadd.f32 %v3220_v36, %v3216_v60 }
0x1f80   : > { %v3228_v63 = vsel %vm571_vm0, %v3222_v42, 0.0 }
0x1f81   : > { %3229 = vadd.xlane.f32.xlu1 %v3228_v63 }
0x2006   : > { %v3227_v6 = vpop.xlane.xlu0 %3226 }
0x2007   : > { %v3231_v33 = vmul.f32 0.03125, %v3227_v6 }
0x2009   : > { %v3233_v7 = vsub.f32 %v3221_v41, %v3231_v33 }
0x200a   : > { %v3230_v55 = vpop.xlane.xlu1 %3229 }
0x200b   : > { %v3232_v28 = vmul.f32 0.03125, %v3230_v55  ;;  %v3235_v8 = vmul.f32 %v3233_v7, %v3233_v7  ;;  %v3267_v29 = vmul.f32 %v3649_v52, %v3233_v7 }
0x200d   : > { %v3234_v4 = vsub.f32 %v3222_v42, %v3232_v28  ;;  %v3237_v9 = vsel %vm571_vm0, %v3235_v8, 0.0 }
0x200e   : > { %3238 = vadd.xlane.f32.xlu0 %v3237_v9 }
0x200f   : > { %v3236_v10 = vmul.f32 %v3234_v4, %v3234_v4  ;;  %v3268_v30 = vmul.f32 %v3649_v52, %v3234_v4 }
0x2011   : > { %v3240_v5 = vsel %vm571_vm0, %v3236_v10, 0.0 }
0x2012   : > { %3241 = vadd.xlane.f32.xlu1 %v3240_v5 }
0x2097   : > { %v3239_v46 = vpop.xlane.xlu0 %3238 }
0x2098   : > { %v3243_v50 = vmul.f32 0.032258064, %v3239_v46 }
0x209a   : > { %4254 = vrsqrt.f32 %v3243_v50  ;;  %vm3247_vm1 = vcmp.eq.f32.partialorder %v3243_v50, inf  ;;  %v3250_v17 = vand.u32 2147483648, %v3243_v50  ;;  %vm3249_vm10 = vcmp.eq.f32.partialorder %v3243_v50, 0.0 }
0x209b   : > { %v3242_v12 = vpop.xlane.xlu1 %3241 }
0x209c   : > { %v3244_v13 = vmul.f32 0.032258064, %v3242_v12 }
0x209e   : > { %4256 = vrsqrt.f32 %v3244_v13  ;;  %vm3254_vm11 = vcmp.eq.f32.partialorder %v3244_v13, inf  ;;  %v3257_v24 = vand.u32 2147483648, %v3244_v13  ;;  %vm3256_vm12 = vcmp.eq.f32.partialorder %v3244_v13, 0.0 }
0x20a7   : > { %v4255_v14 = vpop.eup %4254 }
0x20a8   : > { %v3246_v16 = vmul.f32 %v4255_v14, %v3243_v50 }
0x20aa   : > { %v3248_v18 = vsel %vm3247_vm1, %v3243_v50, %v3246_v16 }
0x20ab   : > { %v4257_v19 = vpop.eup %4256  ;;  %v3251_v53 = vsel %vm3249_vm10, %v3250_v17, %v3248_v18 }
0x20ac   : > { %v3259_v22 = vadd.f32 1e-06, %v3251_v53  ;;  %v3253_v23 = vmul.f32 %v4257_v19, %v3244_v13 }
0x20ae   : > { %4258 = vrcp.f32 %v3259_v22  ;;  %v3255_v15 = vsel %vm3254_vm11, %v3244_v13, %v3253_v23 }
0x20af   : > { %v3258_v25 = vsel %vm3256_vm12, %v3257_v24, %v3255_v15 }
0x20b0   : > { %v3260_v26 = vadd.f32 1e-06, %v3258_v25 }
0x20b2   : > { %4260 = vrcp.f32 %v3260_v26 }
0x20bb   : > { %v4259_v27 = vpop.eup %4258 }
0x20bc   : > { %v3269_v31 = vmul.f32 %v4259_v27, %v3267_v29 }
0x20be   : > { %v3275_v39 = vadd.f32 %v3650_v34, %v3269_v31 }
0x20bf   : > { %v4261_v32 = vpop.eup %4260 }
0x20c0   : > { %v3270_v37 = vmul.f32 %v4261_v32, %v3268_v30 }
0x20c2   : > { %v3276_v40 = vadd.f32 %v3650_v34, %v3270_v37 }
0x20c4   : > { %v3277_v43 = vpack.c.bf16 %v3276_v40, %v3275_v39 }
0x20c6   : > { %4031 = vmatmul.mubr.msk.bf16.vlgmr.msra.gmra.mxu1 %vm571_vm0, %v3277_v43  ;;  %vm3360_vm0 = vcmp.eq.s32.totalorder %v3358_v58, 1 }
0x2186   : > { %v3338_v56 = vpop.f32.mrf.mxu1 }
0x2187   : > { %v3339_v59 = vadd.f32 %v3651_v38, %v3338_v56 }
0x2188   : > { %v4032_v62 = vpop.f32.mrf.mxu1 }
0x2189   : > { %v3361_v1 = vsel %vm3359_vm15, -1e+09, %v3339_v59 }
0x218a   : > { %3363 = vmax.xlane.f32.xlu0 %v3361_v1  ;;  %v3341_v61 = vpop.f32.mrf.mxu1 }
0x218b   : > { %v3342_v36 = vadd.f32 %v3651_v38, %v3341_v61 }
0x218c   : > { %v4033_v3 = vpop.f32.mrf.mxu1 }
0x218d   : > { %v3362_v48 = vsel %vm3360_vm0, -1e+09, %v3342_v36 }
0x218e   : > { %3365 = vmax.xlane.f32.xlu1 %v3362_v48 }
0x2213   : > { %v3364_v57 = vpop.xlane.xlu0 %3363 }
0x2214   : > { %v3367_v41 = vsub.f32 %v3361_v1, %v3364_v57 }
0x2216   : > { %v3369_v54 = vmul.f32 1.442695, %v3367_v41 }
0x2217   : > { %v3366_v60 = vpop.xlane.xlu1 %3365 }
0x2218   : > { %4262 = vpow2.f32 %v3369_v54  ;;  %v3368_v45 = vsub.f32 %v3362_v48, %v3366_v60 }
0x221a   : > { %v3371_v2 = vmul.f32 1.442695, %v3368_v45 }
0x221c   : > { %4264 = vpow2.f32 %v3371_v2 }
0x2225   : > { %v4263_v35 = vpop.eup %4262 }
0x2226   : > { %3373 = vadd.xlane.f32.xlu0 %v4263_v35 }
0x2229   : > { %v4265_v42 = vpop.eup %4264 }
0x222a   : > { %3375 = vadd.xlane.f32.xlu1 %v4265_v42 }
0x22af   : > { %v3374_v63 = vpop.xlane.xlu0 %3373 }
0x22b0   : > { %4266 = vlog2.f32 %v3374_v63 }
0x22b3   : > { %v3376_v6 = vpop.xlane.xlu1 %3375 }
0x22b4   : > { %4268 = vlog2.f32 %v3376_v6 }
0x22bd   : > { %v4267_v33 = vpop.eup %4266 }
0x22be   : > { %v3378_v7 = vmul.f32 0.6931472, %v4267_v33 }
0x22c0   : > { %v3381_v55 = vadd.f32 %v3378_v7, %v3364_v57 }
0x22c1   : > { %v4269_v28 = vpop.eup %4268 }
0x22c2   : > { %v3383_v8 = vsub.f32 %v3361_v1, %v3381_v55  ;;  %v3380_v4 = vmul.f32 0.6931472, %v4269_v28 }
0x22c4   : > { %3385 = vst [vmem:[%s555_s19] sm:$0xff] %v3383_v8  ;;  %v3382_v9 = vadd.f32 %v3380_v4, %v3366_v60 }
0x22c6   : > { %v3384_v10 = vsub.f32 %v3362_v48, %v3382_v9 }
0x22c8   : > { %3386 = vst [vmem:[%s555_s19 + $0x8] sm:$0xff] %v3384_v10 }
0x22c9   : > { %4419 = shalt.err (!%p4416_p7)
}
0x22ca   : > { %s4420_s22 = scalar_lea.hbm %s5397_s17, 256  ;;  %s4424_s13 = scalar_lea.hbm %s5512_s18, 512 }
0x22cb   : > { %p4421_p5 = scmp.ne.s32.totalorder %s5397_s17, %s4420_s22  ;;  %p4425_p3 = scmp.lt.s32.totalorder %s5397_s17, %s5512_s18 }
0x22cc   : > { %p4426_p12 = scmp.lt.s32.totalorder %s4424_s13, %s4420_s22 }
0x22cd   : > { %p4422_p8 = pnand %p4421_p5, %p5513_p0 }
0x22ce   : > { %p4427_p9 = por %p4426_p12, %p4425_p3 }
0x22cf   : > { %p4423_p11 = pneg %p4422_p8 }
0x22d1   : > { %p4428_p13 = pnand %p4427_p9, %p4423_p11 }
0x22d3   : > { %4431 = shalt.err (!%p4428_p13)
}
0x22d4   : > { %s4509_s24 = smov 128  }
0x22d5   : > { %4050 = dma.vmem_to_hbm [thread:$0]  (%p5513_p0), %s5399_s8, 256, %s5397_s17, %s3388_s23, %s4509_s24, %s4509_s24, %s5507_s15  }
0x22d6 PF: > { %s5514_s19 = sld [smem:[#allocation18_spill]]  ;;  %p5517_p10 = scmp.ge.s32.totalorder %s4482_s28, 2 }
0x22d7   : > { %s5515_s10 = sld [smem:[#allocation20_spill]] }
0x22dc   : > { %s3416_s27 = sand.u32 1, %s5514_s19  }
0x22dd   : > { %p5516_p2 = scmp.ne.s32.totalorder %s5515_s10, 0  ;;  %s3417_s21 = scalar_lea.sflag [#allocation5], %s3416_s27 }
0x22df   : > { %p4070_p1 = pnand %p5517_p10, %p5516_p2 }
0x22e1   : > { %p4071_p4 = pneg %p4070_p1 }
0x22e3   : > { %4465 = dma.done.wait (%p4071_p4), %s3417_s21, 256  }
0x22e4   : > { %4467 = vsyncadd (%p4071_p4), %s3417_s21, 4294967040  ;;  %s5518_s28 = sld [smem:[#allocation21_spill]]  ;;  %s5521_s25 = smov %s4474_s26 }
0x22e5   : > { %s5519_s14 = sld [smem:[#allocation19_spill]] }
0x22e6   : > { %s5520_s27 = sld [smem:[#allocation22_spill]] }
0x22ea   : > { %p30_p6 = scmp.ge.s32.totalorder %s5518_s28, 4  }
0x22eb   : > { %s5522_s26 = smov %s5519_s14 }
0x22ec   :  { %32 = sbr.rel (!%p30_p6) target bundleno = 15 (0xf), region = 152 }
0x22f1   :  { %3422 = vsyncpa [#allocation4], 1 }
0x22f2   :  { %3424 = vsyncpa [#allocation4 + $0x1], 1 }
0x22f3   :  { %3425 = vsyncpa [#allocation7], 1 }
0x22f4   :  { %3427 = vsyncpa [#allocation7 + $0x1], 1 }
0x22f5   :  { %3428 = vsyncpa [#allocation10], 1 }
0x22f6   :  { %3429 = vsyncpa [#allocation5], 1 }
0x22f7   :  { %3431 = vsyncpa [#allocation5 + $0x1], 1 }

</bundles_post_ra>
